<compile_context>
chip_gen: v6e
topology: v6e:2x2x1
jax: 0.10.0
libtpu: 0.0.40
codegen_flags: <defaults>
</compile_context>

<pallas_src>
import jax
import jax.numpy as jnp
from jax.experimental import pallas as pl
from jax.experimental.pallas import tpu as pltpu

VMEM = pltpu.MemorySpace.VMEM
VMEM_LIMIT = 32 * 1024 * 1024   # raise v5e's 16 MiB scoped default; matches v6e/v7x default

# model hyper-parameters (defaults of PassModel_SAGE.__init__)
H_NA = 16       # na_lstm_hidden_dim (== att_dim; equality is required by the fused-stack kernel)
L_NA = 3        # na_lstm_hidden_layer
H_GCN = 64      # gcn_hidden_dim
H_LIN = 256     # linear_hidden_dim
ATT_DIM = 16    # att_dim
D_IN = 4        # trajectory feature dim (GRU input size)
N_STACK = 3     # fused GRU stacks: [na, ta, aa]
HF = N_STACK * H_NA   # 48 = fused hidden width
N_HEAD = 4      # SAGE layer-1 heads
H_HEAD = H_GCN // N_HEAD  # 16


def _pick_node_tile(n):
    # destination-row tile for the grid; whole array for small / awkward N.
    for t in (512, 256, 128):
        if n % t == 0:
            return t
    return n


# ------------------------------ fused 3-stack / 3-layer GRU --------------------------------
def fused_gru_kernel(x_ref, wih0_ref, wih12_ref, whh_ref, bih_ref, bhh_ref,
                     hfin_ref, seq_ref, gxr_ref, gxz_ref, gxn_ref):
    # x:    (T, nb, D_IN)  time-major node block
    # seq / gx{r,z,n}: (T*nb, HF) VMEM scratch (inter-layer sequence & hoisted input gates)
    # Weight layout (see pack_fused_gru): gate order [r, z, n]; fused hidden = [na(16)|ta(16)|aa(16)].
    T, nb, din = x_ref.shape
    hf = whh_ref.shape[-1]

    for l in range(L_NA):
        # ---- hoisted input projection: one GEMM over all T*nb rows per gate (off the serial path)
        if l == 0:
            inp2d = x_ref[...].reshape(T * nb, din)
            wr, wz, wn = wih0_ref[0], wih0_ref[1], wih0_ref[2]
        else:
            inp2d = seq_ref[...]                                   # (T*nb, HF) previous layer output
            wr, wz, wn = wih12_ref[l - 1, 0], wih12_ref[l - 1, 1], wih12_ref[l - 1, 2]
        gxr_ref[...] = jnp.dot(inp2d, wr, preferred_element_type=jnp.float32) + bih_ref[l, 0]
        gxz_ref[...] = jnp.dot(inp2d, wz, preferred_element_type=jnp.float32) + bih_ref[l, 1]
        gxn_ref[...] = jnp.dot(inp2d, wn, preferred_element_type=jnp.float32) + bih_ref[l, 2]

        whr, whz, whn = whh_ref[l, 0], whh_ref[l, 1], whh_ref[l, 2]
        bhr, bhz, bhn = bhh_ref[l, 0], bhh_ref[l, 1], bhh_ref[l, 2]

        def step(t, h):
            row = pl.multiple_of(t * nb, nb)
            ghr = jnp.dot(h, whr, preferred_element_type=jnp.float32) + bhr
            ghz = jnp.dot(h, whz, preferred_element_type=jnp.float32) + bhz
            ghn = jnp.dot(h, whn, preferred_element_type=jnp.float32) + bhn
            r = jax.nn.sigmoid(gxr_ref[pl.ds(row, nb), :] + ghr)
            z = jax.nn.sigmoid(gxz_ref[pl.ds(row, nb), :] + ghz)
            n = jnp.tanh(gxn_ref[pl.ds(row, nb), :] + r * ghn)
            h_new = (1.0 - z) * n + z * h
            # safe overwrite: this layer's gx already consumed seq[row:row+nb]
            seq_ref[pl.ds(row, nb), :] = h_new
            return h_new

        h_last = jax.lax.fori_loop(0, T, step, jnp.zeros((nb, hf), jnp.float32))
        hfin_ref[l] = h_last


def fused_gru(x_seq, gp):
    T, n, din = x_seq.shape
    tile = _pick_node_tile(n)
    grid = (n // tile,)
    return pl.pallas_call(
        fused_gru_kernel,
        out_shape=jax.ShapeDtypeStruct((L_NA, n, HF), jnp.float32),
        grid=grid,
        in_specs=[
            pl.BlockSpec((T, tile, din), lambda i: (0, i, 0)),
            pl.BlockSpec((3, din, HF), lambda i: (0, 0, 0)),              # wih0   (gates, D_IN, 48)
            pl.BlockSpec((L_NA - 1, 3, HF, HF), lambda i: (0, 0, 0, 0)),  # wih12  (layers 1-2)
            pl.BlockSpec((L_NA, 3, HF, HF), lambda i: (0, 0, 0, 0)),      # whh
            pl.BlockSpec((L_NA, 3, 1, HF), lambda i: (0, 0, 0, 0)),       # bih
            pl.BlockSpec((L_NA, 3, 1, HF), lambda i: (0, 0, 0, 0)),       # bhh
        ],
        out_specs=pl.BlockSpec((L_NA, tile, HF), lambda i: (0, i, 0)),
        scratch_shapes=[pltpu.VMEM((T * tile, HF), jnp.float32) for _ in range(4)],
        compiler_params=pltpu.CompilerParams(
            dimension_semantics=("parallel",),
            vmem_limit_bytes=VMEM_LIMIT),
    )(x_seq, gp['wih0'], gp['wih12'], gp['whh'], gp['bih'], gp['bhh'])


# ------------------- SAGE layer 1: 4 fused att==3 heads + fused F.elu ----------------------
def sage_layer1_kernel(adj_ref, hfull_ref, htile_ref, tfull_ref, ttile_ref,
                       wsrc_ref, wdst_ref, b_ref, wf_ref, whcat_ref, o_ref):
    # adj: (tile, N) mask [dst, src]; h: traj_feat (48-wide); t: att_feat (16-wide).
    adj = adj_ref[...]
    h_full = hfull_ref[...]
    h_tile = htile_ref[...]
    t_full = tfull_ref[...]
    t_tile = ttile_ref[...]

    # self term of all 4 heads in one lane-dense matmul: (tile, 48) @ (48, 64)
    out = jnp.dot(h_tile, whcat_ref[...], preferred_element_type=jnp.float32)

    for k in range(N_HEAD):
        a_dst = jnp.dot(t_tile, wdst_ref[k], preferred_element_type=jnp.float32)      # (tile, 1)
        a_src = jax.lax.dot_general(wsrc_ref[k], t_full, (((1,), (1,)), ((), ())),
                                    preferred_element_type=jnp.float32)               # (1, N)
        e = jax.nn.sigmoid(a_dst + a_src + b_ref[k]) * adj                             # (tile, N)
        f = jnp.dot(e, h_full, preferred_element_type=jnp.float32)                     # (tile, 48)
        # wf_ref[k] is (48, 64) with head k's (48,16) block placed at its output columns
        # (zero elsewhere) -> accumulate without lane slicing / concat.
        out = out + jnp.dot(f, wf_ref[k], preferred_element_type=jnp.float32)

    # fused F.elu applied between layer1 and layer2 of the torch model
    # (exp(min(x,0))-1 instead of expm1: identical modulo tiny rounding, guaranteed to lower)
    o_ref[...] = jnp.where(out > 0.0, out, jnp.exp(jnp.minimum(out, 0.0)) - 1.0)


def sage_layer1(adj, h, t, p):
    n = h.shape[0]
    tile = _pick_node_tile(n)
    grid = (n // tile,)
    return pl.pallas_call(
        sage_layer1_kernel,
        out_shape=jax.ShapeDtypeStruct((n, H_GCN), jnp.float32),
        grid=grid,
        in_specs=[
            pl.BlockSpec((tile, n), lambda i: (i, 0)),           # adj, dst-row tile
            pl.BlockSpec((n, HF), lambda i: (0, 0)),             # h full (src side, resident)
            pl.BlockSpec((tile, HF), lambda i: (i, 0)),          # h dst rows
            pl.BlockSpec((n, ATT_DIM), lambda i: (0, 0)),        # t full (src side)
            pl.BlockSpec((tile, ATT_DIM), lambda i: (i, 0)),     # t dst rows
            pl.BlockSpec((N_HEAD, 1, ATT_DIM), lambda i: (0, 0, 0)),
            pl.BlockSpec((N_HEAD, ATT_DIM, 1), lambda i: (0, 0, 0)),
            pl.BlockSpec((N_HEAD, 1, 1), lambda i: (0, 0, 0)),
            pl.BlockSpec((N_HEAD, HF, H_GCN), lambda i: (0, 0, 0)),
            pl.BlockSpec((HF, H_GCN), lambda i: (0, 0)),
        ],
        out_specs=pl.BlockSpec((tile, H_GCN), lambda i: (i, 0)),
        compiler_params=pltpu.CompilerParams(
            dimension_semantics=("parallel",),
            vmem_limit_bytes=VMEM_LIMIT),
    )(adj, h, h, t, t, p['wsrc'], p['wdst'], p['b'], p['wf'], p['whcat'])


# ------------------------------ SAGE layer 2: att==0 ---------------------------------------
def sage_layer2_kernel(adj_ref, hfull_ref, htile_ref, wsrc_ref, wdst_ref,
                       wf_ref, wh_ref, o_ref):
    # h here is already the ELU'd concatenated layer-1 output (as in the torch forward).
    adj = adj_ref[...]
    h_full = hfull_ref[...]
    h_tile = htile_ref[...]
    a_dst = jnp.dot(h_tile, wdst_ref[...], preferred_element_type=jnp.float32)        # (tile, 1)
    a_src = jax.lax.dot_general(wsrc_ref[...], h_full, (((1,), (1,)), ((), ())),
                                preferred_element_type=jnp.float32)                   # (1, N)
    e = jax.nn.sigmoid(a_dst + a_src) * adj                                            # (tile, N)
    f = jnp.dot(e, h_full, preferred_element_type=jnp.float32)                         # (tile, 64)
    o_ref[...] = (jnp.dot(f, wf_ref[...], preferred_element_type=jnp.float32) +
                  jnp.dot(h_tile, wh_ref[...], preferred_element_type=jnp.float32))


def sage_layer2(adj, h, p):
    n = h.shape[0]
    tile = _pick_node_tile(n)
    grid = (n // tile,)
    return pl.pallas_call(
        sage_layer2_kernel,
        out_shape=jax.ShapeDtypeStruct((n, H_GCN), jnp.float32),
        grid=grid,
        in_specs=[
            pl.BlockSpec((tile, n), lambda i: (i, 0)),
            pl.BlockSpec((n, H_GCN), lambda i: (0, 0)),
            pl.BlockSpec((tile, H_GCN), lambda i: (i, 0)),
            pl.BlockSpec((1, H_GCN), lambda i: (0, 0)),
            pl.BlockSpec((H_GCN, 1), lambda i: (0, 0)),
            pl.BlockSpec((H_GCN, H_GCN), lambda i: (0, 0)),
            pl.BlockSpec((H_GCN, H_GCN), lambda i: (0, 0)),
        ],
        out_specs=pl.BlockSpec((tile, H_GCN), lambda i: (i, 0)),
        compiler_params=pltpu.CompilerParams(
            dimension_semantics=("parallel",),
            vmem_limit_bytes=VMEM_LIMIT),
    )(adj, h, h, p['wsrc'], p['wdst'], p['wf'], p['wh'])


# ------------------------------------- Predictor -------------------------------------------
def predictor_kernel(gf_ref, gt_ref, tf_ref, tt_ref,
                     w1a_ref, w1b_ref, w1c_ref, w1d_ref, b1_ref, w2_ref, b2_ref, o_ref):
    # W1 split by row blocks -> the (Q,160) union concat is never materialized.
    hid = (jnp.dot(gf_ref[...], w1a_ref[...], preferred_element_type=jnp.float32) +
           jnp.dot(gt_ref[...], w1b_ref[...], preferred_element_type=jnp.float32) +
           jnp.dot(tf_ref[...], w1c_ref[...], preferred_element_type=jnp.float32) +
           jnp.dot(tt_ref[...], w1d_ref[...], preferred_element_type=jnp.float32) +
           b1_ref[...])
    hid = jnp.maximum(hid, 0.0)
    o_ref[...] = jax.nn.sigmoid(
        jnp.dot(hid, w2_ref[...], preferred_element_type=jnp.float32) + b2_ref[...])


def predictor(g_from, g_to, t2_from, t2_to, p):
    q = g_from.shape[0]
    return pl.pallas_call(
        predictor_kernel,
        out_shape=jax.ShapeDtypeStruct((q, 1), jnp.float32),
        in_specs=[pl.BlockSpec(memory_space=VMEM) for _ in range(11)],
        out_specs=pl.BlockSpec(memory_space=VMEM),
        compiler_params=pltpu.CompilerParams(vmem_limit_bytes=VMEM_LIMIT),
    )(g_from, g_to, t2_from, t2_to,
      p['w1a'], p['w1b'], p['w1c'], p['w1d'], p['b1'], p['w2'], p['b2'])


# ---------------------------- parameter initialization / packing ---------------------------
# TODO(synk): orthogonal_ init of GRU weights is replaced by deterministic Gaussian init
#             (biases kept at zero, as in the module); forward semantics unchanged.
def init_gru_stack(key, in_dim, hidden, layers):
    params = []
    for l in range(layers):
        d = in_dim if l == 0 else hidden
        key, k1, k2 = jax.random.split(key, 3)
        w_ih = 0.4 * jax.random.normal(k1, (3 * hidden, d), jnp.float32)        # torch (3H, d)
        w_hh = 0.4 * jax.random.normal(k2, (3 * hidden, hidden), jnp.float32)   # torch (3H, H)
        b_ih = jnp.zeros((3 * hidden,), jnp.float32)
        b_hh = jnp.zeros((3 * hidden,), jnp.float32)
        params.append((w_ih, w_hh, b_ih, b_hh))
    return key, params


def pack_fused_gru(stacks):
    # stacks = [na, ta, aa] torch-layout GRU params; fused hidden layout is [na|ta|aa].
    H = H_NA

    def gate_w(w, g):   # (3H, d) -> rows of gate g (torch gate order r, z, n)
        return w[g * H:(g + 1) * H]

    def gate_b(b, g):
        return b[g * H:(g + 1) * H]

    def blockdiag(blocks):   # list of (H, d_s) column blocks on the diagonal -> (sum d, HF)
        out = jnp.zeros((HF, HF), jnp.float32)
        for s, blk in enumerate(blocks):
            out = out.at[s * H:(s + 1) * H, s * H:(s + 1) * H].set(blk)
        return out

    wih0 = jnp.stack([
        jnp.concatenate([gate_w(stacks[s][0][0], g).T for s in range(N_STACK)], axis=1)
        for g in range(3)])                                                     # (3, D_IN, 48)
    wih12 = jnp.stack([
        jnp.stack([blockdiag([gate_w(stacks[s][l][0], g).T for s in range(N_STACK)])
                   for g in range(3)])
        for l in range(1, L_NA)])                                               # (2, 3, 48, 48)
    whh = jnp.stack([
        jnp.stack([blockdiag([gate_w(stacks[s][l][1], g).T for s in range(N_STACK)])
                   for g in range(3)])
        for l in range(L_NA)])                                                  # (3, 3, 48, 48)
    bih = jnp.stack([
        jnp.stack([jnp.concatenate([gate_b(stacks[s][l][2], g) for s in range(N_STACK)])
                   for g in range(3)])
        for l in range(L_NA)]).reshape(L_NA, 3, 1, HF)
    bhh = jnp.stack([
        jnp.stack([jnp.concatenate([gate_b(stacks[s][l][3], g) for s in range(N_STACK)])
                   for g in range(3)])
        for l in range(L_NA)]).reshape(L_NA, 3, 1, HF)
    return dict(wih0=wih0, wih12=wih12, whh=whh, bih=bih, bhh=bhh)


def init_sage1(key):
    in_dim = HF                     # 48
    wsrc, wdst, b = [], [], []
    wf_pad = jnp.zeros((N_HEAD, HF, H_GCN), jnp.float32)
    wh_cat = jnp.zeros((HF, H_GCN), jnp.float32)
    for k in range(N_HEAD):
        key, k1, k2, k3 = jax.random.split(key, 4)
        fc_w = 0.2 * jax.random.normal(k1, (H_HEAD, 2 * in_dim), jnp.float32)   # Linear(96,16,bias=False)
        attn_w = 0.2 * jax.random.normal(k2, (1, 2 * ATT_DIM), jnp.float32)     # Linear(32,1)
        attn_b = 0.2 * jax.random.normal(k3, (1,), jnp.float32)
        wf_pad = wf_pad.at[k, :, k * H_HEAD:(k + 1) * H_HEAD].set(fc_w[:, :in_dim].T)
        wh_cat = wh_cat.at[:, k * H_HEAD:(k + 1) * H_HEAD].set(fc_w[:, in_dim:].T)
        wsrc.append(attn_w[:, :ATT_DIM])        # (1, 16)  src-t projection
        wdst.append(attn_w[:, ATT_DIM:].T)      # (16, 1)  dst-t projection
        b.append(attn_b.reshape(1, 1))
    return key, dict(wsrc=jnp.stack(wsrc), wdst=jnp.stack(wdst), b=jnp.stack(b),
                     wf=wf_pad, whcat=wh_cat)


def init_sage2(key):
    in_dim = out_dim = H_GCN
    key, k1, k2 = jax.random.split(key, 3)
    fc_w = 0.2 * jax.random.normal(k1, (out_dim, 2 * in_dim), jnp.float32)      # Linear(128,64,bias=False)
    attn_w = 0.2 * jax.random.normal(k2, (1, 2 * out_dim), jnp.float32)         # Linear(128,1,bias=False)
    return key, dict(wf=fc_w[:, :in_dim].T, wh=fc_w[:, in_dim:].T,
                     wsrc=attn_w[:, :out_dim], wdst=attn_w[:, out_dim:].T)


def init_predictor(key):
    in_dim = 2 * (H_NA + H_GCN)     # 160, union layout [g_from(64)|g_to(64)|t2_from(16)|t2_to(16)]
    key, k1, k2, k3, k4 = jax.random.split(key, 5)
    w1 = 0.1 * jax.random.normal(k1, (H_LIN, in_dim), jnp.float32)
    b1 = 0.1 * jax.random.normal(k2, (H_LIN,), jnp.float32)
    w2 = 0.1 * jax.random.normal(k3, (1, H_LIN), jnp.float32)
    b2 = 0.1 * jax.random.normal(k4, (1,), jnp.float32)
    w1t = w1.T
    return key, dict(w1a=w1t[:H_GCN], w1b=w1t[H_GCN:2 * H_GCN],
                     w1c=w1t[2 * H_GCN:2 * H_GCN + H_NA], w1d=w1t[2 * H_GCN + H_NA:],
                     b1=b1.reshape(1, -1), w2=w2.T, b2=b2.reshape(1, 1))


def init_all_params(key):
    key, na = init_gru_stack(key, D_IN, H_NA, L_NA)       # NodeAttribute GRU
    key, ta = init_gru_stack(key, D_IN, H_NA, L_NA)       # TrajAttribute GRU
    key, aa = init_gru_stack(key, D_IN, ATT_DIM, L_NA)    # attention-feature GRU (ATT_DIM == H_NA)
    gru = pack_fused_gru([na, ta, aa])
    key, layer1 = init_sage1(key)
    key, layer2 = init_sage2(key)
    key, pred = init_predictor(key)
    return dict(gru=gru, layer1=layer1, layer2=layer2, pred=pred)


# ---------------------------------------- forward ------------------------------------------
def pass_model_forward(params, adj, x, q_from, q_to):
    # x: (N, T, 4) -> time-major (T, N, 4), matching trajs.permute(1, 0, 2)
    x_seq = jnp.transpose(x, (1, 0, 2))
    hfin = fused_gru(x_seq, params['gru'])                     # (L_NA, N, 48=[na|ta|aa]) final hiddens

    traj_feat = jnp.concatenate(
        [hfin[l, :, :H_NA] for l in range(L_NA)], axis=1)      # (N, 48) = hn.permute(1,0,2).reshape
    traj_feat2 = hfin[L_NA - 1, :, H_NA:2 * H_NA]              # (N, 16) = ta hn[-1]
    att_feat = hfin[L_NA - 1, :, 2 * H_NA:]                    # (N, 16) = aa hn[-1]

    h_elu = sage_layer1(adj, traj_feat, att_feat, params['layer1'])   # (N, 64), F.elu fused in-kernel
    g_feat = sage_layer2(adj, h_elu, params['layer2'])                # (N, 64)

    # TODO(synk): query gather stays at XLA level; fusing it via PrefetchScalarGridSpec row
    #             gather into the predictor only pays off for large Q.
    return predictor(g_feat[q_from], g_feat[q_to],
                     traj_feat2[q_from], traj_feat2[q_to], params['pred'])   # (Q, 1), sigmoid applied


if __name__ == "__main__":
    key = jax.random.PRNGKey(0)
    N, T, Q = 8, 8, 4

    key, kx = jax.random.split(key)
    x = jax.random.normal(kx, (N, T, D_IN), jnp.float32)

    # small deterministic directed graph (src -> dst) as dense adjacency mask adj[dst, src]
    src = jnp.array([0, 1, 2, 3, 4, 5, 6, 7, 0, 2, 4, 6], dtype=jnp.int32)
    dst = jnp.array([1, 2, 3, 4, 5, 6, 7, 0, 3, 5, 7, 1], dtype=jnp.int32)
    adj = jnp.zeros((N, N), jnp.float32).at[dst, src].set(1.0)

    q_from = jnp.array([0, 2, 4, 6], dtype=jnp.int32)
    q_to = jnp.array([1, 3, 5, 7], dtype=jnp.int32)

    params = init_all_params(key)

    out = jax.jit(pass_model_forward)(params, adj, x, q_from, q_to)
    out = jax.block_until_ready(out)
    assert out.shape == (Q, 1) and out.dtype == jnp.float32
    assert bool(jnp.all(jnp.isfinite(out)))
    print("KERNEL_OK")
</pallas_src>

<mosaic_0001>
module attributes {stable_mosaic.version = 11 : i64} {
  func.func @sage_layer2_kernel(%arg0: i32, %arg1: memref<8x8xf32, #tpu.memory_space<vmem>>, %arg2: memref<8x64xf32, #tpu.memory_space<vmem>>, %arg3: memref<8x64xf32, #tpu.memory_space<vmem>>, %arg4: memref<1x64xf32, #tpu.memory_space<vmem>>, %arg5: memref<64x1xf32, #tpu.memory_space<vmem>>, %arg6: memref<64x64xf32, #tpu.memory_space<vmem>>, %arg7: memref<64x64xf32, #tpu.memory_space<vmem>>, %arg8: memref<8x64xf32, #tpu.memory_space<vmem>>) attributes {dimension_semantics = [#tpu.dimension_semantics<parallel>], iteration_bounds = array<i64: 1>, scalar_prefetch = 0 : i64, scratch_operands = 0 : i64, tpu.core_type = #tpu.core_type<tc>, window_params = [{transform_indices = @transform_0, window_bounds = array<i64: 8, 8>}, {pipeline_mode = #tpu.pipeline_mode<synchronous>, transform_indices = @transform_1, window_bounds = array<i64: 8, 64>}, {transform_indices = @transform_2, window_bounds = array<i64: 8, 64>}, {pipeline_mode = #tpu.pipeline_mode<synchronous>, transform_indices = @transform_3, window_bounds = array<i64: 1, 64>}, {pipeline_mode = #tpu.pipeline_mode<synchronous>, transform_indices = @transform_4, window_bounds = array<i64: 64, 1>}, {pipeline_mode = #tpu.pipeline_mode<synchronous>, transform_indices = @transform_5, window_bounds = array<i64: 64, 64>}, {pipeline_mode = #tpu.pipeline_mode<synchronous>, transform_indices = @transform_6, window_bounds = array<i64: 64, 64>}, {transform_indices = @transform_7, window_bounds = array<i64: 8, 64>}]} {
    %c0 = arith.constant 0 : index
    %c0_0 = arith.constant 0 : index
    %0 = vector.load %arg1[%c0, %c0_0] : memref<8x8xf32, #tpu.memory_space<vmem>>, vector<8x8xf32>
    %c0_1 = arith.constant 0 : index
    %c0_2 = arith.constant 0 : index
    %1 = vector.load %arg2[%c0_1, %c0_2] : memref<8x64xf32, #tpu.memory_space<vmem>>, vector<8x64xf32>
    %c0_3 = arith.constant 0 : index
    %c0_4 = arith.constant 0 : index
    %2 = vector.load %arg3[%c0_3, %c0_4] : memref<8x64xf32, #tpu.memory_space<vmem>>, vector<8x64xf32>
    %c0_5 = arith.constant 0 : index
    %c0_6 = arith.constant 0 : index
    %3 = vector.load %arg5[%c0_5, %c0_6] : memref<64x1xf32, #tpu.memory_space<vmem>>, vector<64x1xf32>
    %cst = arith.constant dense<0.000000e+00> : vector<8x1xf32>
    %4 = tpu.matmul %2, %3, %cst {dimension_numbers = #tpu.dot_dimension_numbers<[1], [0], [0], [1], [0, 0, 1, 1], [], []>} : vector<8x64xf32>, vector<64x1xf32>, vector<8x1xf32> -> vector<8x1xf32>
    %c0_7 = arith.constant 0 : index
    %c0_8 = arith.constant 0 : index
    %5 = vector.load %arg4[%c0_7, %c0_8] : memref<1x64xf32, #tpu.memory_space<vmem>>, vector<1x64xf32>
    %cst_9 = arith.constant dense<0.000000e+00> : vector<1x8xf32>
    %6 = tpu.matmul %5, %1, %cst_9 {dimension_numbers = #tpu.dot_dimension_numbers<[1], [1], [0], [0], [0, 0, 1, 0], [], []>} : vector<1x64xf32>, vector<8x64xf32>, vector<1x8xf32> -> vector<1x8xf32>
    %7 = vector.broadcast %4 : vector<8x1xf32> to vector<8x8xf32>
    %8 = vector.broadcast %6 : vector<1x8xf32> to vector<8x8xf32>
    %9 = arith.addf %7, %8 : vector<8x8xf32>
    %10 = arith.negf %9 : vector<8x8xf32>
    %11 = math.exp %10 : vector<8x8xf32>
    %cst_10 = arith.constant 1.000000e+00 : f32
    %12 = vector.broadcast %cst_10 : f32 to vector<8x8xf32>
    %13 = arith.addf %12, %11 : vector<8x8xf32>
    %14 = arith.divf %12, %13 : vector<8x8xf32>
    %15 = arith.mulf %14, %0 : vector<8x8xf32>
    %cst_11 = arith.constant dense<0.000000e+00> : vector<8x64xf32>
    %16 = tpu.matmul %15, %1, %cst_11 {dimension_numbers = #tpu.dot_dimension_numbers<[1], [0], [0], [1], [0, 0, 1, 1], [], []>} : vector<8x8xf32>, vector<8x64xf32>, vector<8x64xf32> -> vector<8x64xf32>
    %c0_12 = arith.constant 0 : index
    %c0_13 = arith.constant 0 : index
    %17 = vector.load %arg6[%c0_12, %c0_13] : memref<64x64xf32, #tpu.memory_space<vmem>>, vector<64x64xf32>
    %cst_14 = arith.constant dense<0.000000e+00> : vector<8x64xf32>
    %18 = tpu.matmul %16, %17, %cst_14 {dimension_numbers = #tpu.dot_dimension_numbers<[1], [0], [0], [1], [0, 0, 1, 1], [], []>} : vector<8x64xf32>, vector<64x64xf32>, vector<8x64xf32> -> vector<8x64xf32>
    %c0_15 = arith.constant 0 : index
    %c0_16 = arith.constant 0 : index
    %19 = vector.load %arg7[%c0_15, %c0_16] : memref<64x64xf32, #tpu.memory_space<vmem>>, vector<64x64xf32>
    %cst_17 = arith.constant dense<0.000000e+00> : vector<8x64xf32>
    %20 = tpu.matmul %2, %19, %cst_17 {dimension_numbers = #tpu.dot_dimension_numbers<[1], [0], [0], [1], [0, 0, 1, 1], [], []>} : vector<8x64xf32>, vector<64x64xf32>, vector<8x64xf32> -> vector<8x64xf32>
    %21 = arith.addf %18, %20 : vector<8x64xf32>
    %c0_18 = arith.constant 0 : index
    %c0_19 = arith.constant 0 : index
    %22 = vector.load %arg8[%c0_18, %c0_19] : memref<8x64xf32, #tpu.memory_space<vmem>>, vector<8x64xf32>
    tpu.vector_store %arg8[%c0_18, %c0_19], %21 {strides = array<i32>} : memref<8x64xf32, #tpu.memory_space<vmem>>, vector<8x64xf32>,
    return
  }
  func.func @transform_0(%arg0: i32) -> (i32, i32) {
    %c0_i32 = arith.constant 0 : i32
    %c0_i32_0 = arith.constant 0 : i32
    return %arg0, %c0_i32 : i32, i32
  }
  func.func @transform_1(%arg0: i32) -> (i32, i32) {
    %c0_i32 = arith.constant 0 : i32
    %c0_i32_0 = arith.constant 0 : i32
    %c0_i32_1 = arith.constant 0 : i32
    return %c0_i32, %c0_i32_0 : i32, i32
  }
  func.func @transform_2(%arg0: i32) -> (i32, i32) {
    %c0_i32 = arith.constant 0 : i32
    %c0_i32_0 = arith.constant 0 : i32
    return %arg0, %c0_i32 : i32, i32
  }
  func.func @transform_3(%arg0: i32) -> (i32, i32) {
    %c0_i32 = arith.constant 0 : i32
    %c0_i32_0 = arith.constant 0 : i32
    %c0_i32_1 = arith.constant 0 : i32
    return %c0_i32, %c0_i32_0 : i32, i32
  }
  func.func @transform_4(%arg0: i32) -> (i32, i32) {
    %c0_i32 = arith.constant 0 : i32
    %c0_i32_0 = arith.constant 0 : i32
    %c0_i32_1 = arith.constant 0 : i32
    return %c0_i32, %c0_i32_0 : i32, i32
  }
  func.func @transform_5(%arg0: i32) -> (i32, i32) {
    %c0_i32 = arith.constant 0 : i32
    %c0_i32_0 = arith.constant 0 : i32
    %c0_i32_1 = arith.constant 0 : i32
    return %c0_i32, %c0_i32_0 : i32, i32
  }
  func.func @transform_6(%arg0: i32) -> (i32, i32) {
    %c0_i32 = arith.constant 0 : i32
    %c0_i32_0 = arith.constant 0 : i32
    %c0_i32_1 = arith.constant 0 : i32
    return %c0_i32, %c0_i32_0 : i32, i32
  }
  func.func @transform_7(%arg0: i32) -> (i32, i32) {
    %c0_i32 = arith.constant 0 : i32
    %c0_i32_0 = arith.constant 0 : i32
    return %arg0, %c0_i32 : i32, i32
  }
}

module attributes {stable_mosaic.version = 11 : i64} {
  func.func @fused_gru_kernel(%arg0: i32, %arg1: memref<8x8x4xf32, #tpu.memory_space<vmem>>, %arg2: memref<3x4x48xf32, #tpu.memory_space<vmem>>, %arg3: memref<2x3x48x48xf32, #tpu.memory_space<vmem>>, %arg4: memref<3x3x48x48xf32, #tpu.memory_space<vmem>>, %arg5: memref<3x3x1x48xf32, #tpu.memory_space<vmem>>, %arg6: memref<3x3x1x48xf32, #tpu.memory_space<vmem>>, %arg7: memref<3x8x48xf32, #tpu.memory_space<vmem>>, %arg8: memref<64x48xf32, #tpu.memory_space<vmem>>, %arg9: memref<64x48xf32, #tpu.memory_space<vmem>>, %arg10: memref<64x48xf32, #tpu.memory_space<vmem>>, %arg11: memref<64x48xf32, #tpu.memory_space<vmem>>) attributes {dimension_semantics = [#tpu.dimension_semantics<parallel>], iteration_bounds = array<i64: 1>, scalar_prefetch = 0 : i64, scratch_operands = 4 : i64, tpu.core_type = #tpu.core_type<tc>, window_params = [{transform_indices = @transform_0, window_bounds = array<i64: 8, 8, 4>}, {pipeline_mode = #tpu.pipeline_mode<synchronous>, transform_indices = @transform_1, window_bounds = array<i64: 3, 4, 48>}, {pipeline_mode = #tpu.pipeline_mode<synchronous>, transform_indices = @transform_2, window_bounds = array<i64: 2, 3, 48, 48>}, {pipeline_mode = #tpu.pipeline_mode<synchronous>, transform_indices = @transform_3, window_bounds = array<i64: 3, 3, 48, 48>}, {pipeline_mode = #tpu.pipeline_mode<synchronous>, transform_indices = @transform_4, window_bounds = array<i64: 3, 3, 1, 48>}, {pipeline_mode = #tpu.pipeline_mode<synchronous>, transform_indices = @transform_5, window_bounds = array<i64: 3, 3, 1, 48>}, {transform_indices = @transform_6, window_bounds = array<i64: 3, 8, 48>}]} {
    %c0 = arith.constant 0 : index
    %c0_0 = arith.constant 0 : index
    %c0_1 = arith.constant 0 : index
    %0 = vector.load %arg1[%c0, %c0_0, %c0_1] : memref<8x8x4xf32, #tpu.memory_space<vmem>>, vector<8x8x4xf32>
    %1 = vector.shape_cast %0 : vector<8x8x4xf32> to vector<64x4xf32>
    %c0_2 = arith.constant 0 : index
    %c0_3 = arith.constant 0 : index
    %c0_4 = arith.constant 0 : index
    %2 = vector.load %arg2[%c0_2, %c0_3, %c0_4] : memref<3x4x48xf32, #tpu.memory_space<vmem>>, vector<1x4x48xf32>
    %3 = vector.shape_cast %2 : vector<1x4x48xf32> to vector<4x48xf32>
    %c1 = arith.constant 1 : index
    %c0_5 = arith.constant 0 : index
    %c0_6 = arith.constant 0 : index
    %4 = vector.load %arg2[%c1, %c0_5, %c0_6] : memref<3x4x48xf32, #tpu.memory_space<vmem>>, vector<1x4x48xf32>
    %5 = vector.shape_cast %4 : vector<1x4x48xf32> to vector<4x48xf32>
    %c2 = arith.constant 2 : index
    %c0_7 = arith.constant 0 : index
    %c0_8 = arith.constant 0 : index
    %6 = vector.load %arg2[%c2, %c0_7, %c0_8] : memref<3x4x48xf32, #tpu.memory_space<vmem>>, vector<1x4x48xf32>
    %7 = vector.shape_cast %6 : vector<1x4x48xf32> to vector<4x48xf32>
    %cst = arith.constant dense<0.000000e+00> : vector<64x48xf32>
    %8 = tpu.matmul %1, %3, %cst {dimension_numbers = #tpu.dot_dimension_numbers<[1], [0], [0], [1], [0, 0, 1, 1], [], []>} : vector<64x4xf32>, vector<4x48xf32>, vector<64x48xf32> -> vector<64x48xf32>
    %c0_9 = arith.constant 0 : index
    %c0_10 = arith.constant 0 : index
    %c0_11 = arith.constant 0 : index
    %c0_12 = arith.constant 0 : index
    %9 = vector.load %arg5[%c0_9, %c0_10, %c0_11, %c0_12] : memref<3x3x1x48xf32, #tpu.memory_space<vmem>>, vector<1x1x1x48xf32>
    %10 = vector.shape_cast %9 : vector<1x1x1x48xf32> to vector<1x48xf32>
    %11 = vector.broadcast %10 : vector<1x48xf32> to vector<64x48xf32>
    %12 = arith.addf %8, %11 : vector<64x48xf32>
    %c0_13 = arith.constant 0 : index
    %c0_14 = arith.constant 0 : index
    %13 = vector.load %arg9[%c0_13, %c0_14] : memref<64x48xf32, #tpu.memory_space<vmem>>, vector<64x48xf32>
    tpu.vector_store %arg9[%c0_13, %c0_14], %12 {strides = array<i32>} : memref<64x48xf32, #tpu.memory_space<vmem>>, vector<64x48xf32>,
    %cst_15 = arith.constant dense<0.000000e+00> : vector<64x48xf32>
    %14 = tpu.matmul %1, %5, %cst_15 {dimension_numbers = #tpu.dot_dimension_numbers<[1], [0], [0], [1], [0, 0, 1, 1], [], []>} : vector<64x4xf32>, vector<4x48xf32>, vector<64x48xf32> -> vector<64x48xf32>
    %c0_16 = arith.constant 0 : index
    %c1_17 = arith.constant 1 : index
    %c0_18 = arith.constant 0 : index
    %c0_19 = arith.constant 0 : index
    %15 = vector.load %arg5[%c0_16, %c1_17, %c0_18, %c0_19] : memref<3x3x1x48xf32, #tpu.memory_space<vmem>>, vector<1x1x1x48xf32>
    %16 = vector.shape_cast %15 : vector<1x1x1x48xf32> to vector<1x48xf32>
    %17 = vector.broadcast %16 : vector<1x48xf32> to vector<64x48xf32>
    %18 = arith.addf %14, %17 : vector<64x48xf32>
    %c0_20 = arith.constant 0 : index
    %c0_21 = arith.constant 0 : index
    %19 = vector.load %arg10[%c0_20, %c0_21] : memref<64x48xf32, #tpu.memory_space<vmem>>, vector<64x48xf32>
    tpu.vector_store %arg10[%c0_20, %c0_21], %18 {strides = array<i32>} : memref<64x48xf32, #tpu.memory_space<vmem>>, vector<64x48xf32>,
    %cst_22 = arith.constant dense<0.000000e+00> : vector<64x48xf32>
    %20 = tpu.matmul %1, %7, %cst_22 {dimension_numbers = #tpu.dot_dimension_numbers<[1], [0], [0], [1], [0, 0, 1, 1], [], []>} : vector<64x4xf32>, vector<4x48xf32>, vector<64x48xf32> -> vector<64x48xf32>
    %c0_23 = arith.constant 0 : index
    %c2_24 = arith.constant 2 : index
    %c0_25 = arith.constant 0 : index
    %c0_26 = arith.constant 0 : index
    %21 = vector.load %arg5[%c0_23, %c2_24, %c0_25, %c0_26] : memref<3x3x1x48xf32, #tpu.memory_space<vmem>>, vector<1x1x1x48xf32>
    %22 = vector.shape_cast %21 : vector<1x1x1x48xf32> to vector<1x48xf32>
    %23 = vector.broadcast %22 : vector<1x48xf32> to vector<64x48xf32>
    %24 = arith.addf %20, %23 : vector<64x48xf32>
    %c0_27 = arith.constant 0 : index
    %c0_28 = arith.constant 0 : index
    %25 = vector.load %arg11[%c0_27, %c0_28] : memref<64x48xf32, #tpu.memory_space<vmem>>, vector<64x48xf32>
    tpu.vector_store %arg11[%c0_27, %c0_28], %24 {strides = array<i32>} : memref<64x48xf32, #tpu.memory_space<vmem>>, vector<64x48xf32>,
    %c0_29 = arith.constant 0 : index
    %c0_30 = arith.constant 0 : index
    %c0_31 = arith.constant 0 : index
    %c0_32 = arith.constant 0 : index
    %26 = vector.load %arg4[%c0_29, %c0_30, %c0_31, %c0_32] : memref<3x3x48x48xf32, #tpu.memory_space<vmem>>, vector<1x1x48x48xf32>
    %27 = vector.shape_cast %26 : vector<1x1x48x48xf32> to vector<48x48xf32>
    %c0_33 = arith.constant 0 : index
    %c1_34 = arith.constant 1 : index
    %c0_35 = arith.constant 0 : index
    %c0_36 = arith.constant 0 : index
    %28 = vector.load %arg4[%c0_33, %c1_34, %c0_35, %c0_36] : memref<3x3x48x48xf32, #tpu.memory_space<vmem>>, vector<1x1x48x48xf32>
    %29 = vector.shape_cast %28 : vector<1x1x48x48xf32> to vector<48x48xf32>
    %c0_37 = arith.constant 0 : index
    %c2_38 = arith.constant 2 : index
    %c0_39 = arith.constant 0 : index
    %c0_40 = arith.constant 0 : index
    %30 = vector.load %arg4[%c0_37, %c2_38, %c0_39, %c0_40] : memref<3x3x48x48xf32, #tpu.memory_space<vmem>>, vector<1x1x48x48xf32>
    %31 = vector.shape_cast %30 : vector<1x1x48x48xf32> to vector<48x48xf32>
    %c0_41 = arith.constant 0 : index
    %c0_42 = arith.constant 0 : index
    %c0_43 = arith.constant 0 : index
    %c0_44 = arith.constant 0 : index
    %32 = vector.load %arg6[%c0_41, %c0_42, %c0_43, %c0_44] : memref<3x3x1x48xf32, #tpu.memory_space<vmem>>, vector<1x1x1x48xf32>
    %33 = vector.shape_cast %32 : vector<1x1x1x48xf32> to vector<1x48xf32>
    %c0_45 = arith.constant 0 : index
    %c1_46 = arith.constant 1 : index
    %c0_47 = arith.constant 0 : index
    %c0_48 = arith.constant 0 : index
    %34 = vector.load %arg6[%c0_45, %c1_46, %c0_47, %c0_48] : memref<3x3x1x48xf32, #tpu.memory_space<vmem>>, vector<1x1x1x48xf32>
    %35 = vector.shape_cast %34 : vector<1x1x1x48xf32> to vector<1x48xf32>
    %c0_49 = arith.constant 0 : index
    %c2_50 = arith.constant 2 : index
    %c0_51 = arith.constant 0 : index
    %c0_52 = arith.constant 0 : index
    %36 = vector.load %arg6[%c0_49, %c2_50, %c0_51, %c0_52] : memref<3x3x1x48xf32, #tpu.memory_space<vmem>>, vector<1x1x1x48xf32>
    %37 = vector.shape_cast %36 : vector<1x1x1x48xf32> to vector<1x48xf32>
    %cst_53 = arith.constant 0.000000e+00 : f32
    %38 = vector.broadcast %cst_53 : f32 to vector<8x48xf32>
    %c0_i32 = arith.constant 0 : i32
    %c8_i32 = arith.constant 8 : i32
    %39 = arith.addi %c0_i32, %c8_i32 : i32
    %c1_i32 = arith.constant 1 : i32
    %40 = scf.for %arg12 = %c0_i32 to %39 step %c1_i32 iter_args(%arg13 = %38) -> (vector<8x48xf32>)  : i32 {
      %c8_i32_192 = arith.constant 8 : i32
      %130 = arith.muli %arg12, %c8_i32_192 : i32
      %131 = tpu.assume_multiple %130, 8 : i32
      %cst_193 = arith.constant dense<0.000000e+00> : vector<8x48xf32>
      %132 = tpu.matmul %arg13, %27, %cst_193 {dimension_numbers = #tpu.dot_dimension_numbers<[1], [0], [0], [1], [0, 0, 1, 1], [], []>} : vector<8x48xf32>, vector<48x48xf32>, vector<8x48xf32> -> vector<8x48xf32>
      %133 = vector.broadcast %33 : vector<1x48xf32> to vector<8x48xf32>
      %134 = arith.addf %132, %133 : vector<8x48xf32>
      %cst_194 = arith.constant dense<0.000000e+00> : vector<8x48xf32>
      %135 = tpu.matmul %arg13, %29, %cst_194 {dimension_numbers = #tpu.dot_dimension_numbers<[1], [0], [0], [1], [0, 0, 1, 1], [], []>} : vector<8x48xf32>, vector<48x48xf32>, vector<8x48xf32> -> vector<8x48xf32>
      %136 = vector.broadcast %35 : vector<1x48xf32> to vector<8x48xf32>
      %137 = arith.addf %135, %136 : vector<8x48xf32>
      %cst_195 = arith.constant dense<0.000000e+00> : vector<8x48xf32>
      %138 = tpu.matmul %arg13, %31, %cst_195 {dimension_numbers = #tpu.dot_dimension_numbers<[1], [0], [0], [1], [0, 0, 1, 1], [], []>} : vector<8x48xf32>, vector<48x48xf32>, vector<8x48xf32> -> vector<8x48xf32>
      %139 = vector.broadcast %37 : vector<1x48xf32> to vector<8x48xf32>
      %140 = arith.addf %138, %139 : vector<8x48xf32>
      %141 = arith.index_cast %131 : i32 to index
      %c0_196 = arith.constant 0 : index
      %142 = vector.load %arg9[%141, %c0_196] : memref<64x48xf32, #tpu.memory_space<vmem>>, vector<8x48xf32>
      %143 = arith.addf %142, %134 : vector<8x48xf32>
      %144 = arith.negf %143 : vector<8x48xf32>
      %145 = math.exp %144 : vector<8x48xf32>
      %cst_197 = arith.constant 1.000000e+00 : f32
      %146 = vector.broadcast %cst_197 : f32 to vector<8x48xf32>
      %147 = arith.addf %146, %145 : vector<8x48xf32>
      %148 = arith.divf %146, %147 : vector<8x48xf32>
      %149 = arith.index_cast %131 : i32 to index
      %c0_198 = arith.constant 0 : index
      %150 = vector.load %arg10[%149, %c0_198] : memref<64x48xf32, #tpu.memory_space<vmem>>, vector<8x48xf32>
      %151 = arith.addf %150, %137 : vector<8x48xf32>
      %152 = arith.negf %151 : vector<8x48xf32>
      %153 = math.exp %152 : vector<8x48xf32>
      %cst_199 = arith.constant 1.000000e+00 : f32
      %154 = vector.broadcast %cst_199 : f32 to vector<8x48xf32>
      %155 = arith.addf %154, %153 : vector<8x48xf32>
      %156 = arith.divf %154, %155 : vector<8x48xf32>
      %157 = arith.index_cast %131 : i32 to index
      %c0_200 = arith.constant 0 : index
      %158 = vector.load %arg11[%157, %c0_200] : memref<64x48xf32, #tpu.memory_space<vmem>>, vector<8x48xf32>
      %159 = arith.mulf %148, %140 : vector<8x48xf32>
      %160 = arith.addf %158, %159 : vector<8x48xf32>
      %161 = math.tanh %160 : vector<8x48xf32>
      %cst_201 = arith.constant 1.000000e+00 : f32
      %162 = vector.broadcast %cst_201 : f32 to vector<8x48xf32>
      %163 = arith.subf %162, %156 : vector<8x48xf32>
      %164 = arith.mulf %163, %161 : vector<8x48xf32>
      %165 = arith.mulf %156, %arg13 : vector<8x48xf32>
      %166 = arith.addf %164, %165 : vector<8x48xf32>
      %167 = arith.index_cast %131 : i32 to index
      %c0_202 = arith.constant 0 : index
      %168 = vector.load %arg8[%167, %c0_202] : memref<64x48xf32, #tpu.memory_space<vmem>>, vector<8x48xf32>
      tpu.vector_store %arg8[%167, %c0_202], %166 {strides = array<i32>} : memref<64x48xf32, #tpu.memory_space<vmem>>, vector<8x48xf32>,
      scf.yield %166 : vector<8x48xf32>
    }
    %c8_i32_54 = arith.constant 8 : i32
    %c0_55 = arith.constant 0 : index
    %c0_56 = arith.constant 0 : index
    %c0_57 = arith.constant 0 : index
    %41 = vector.load %arg7[%c0_55, %c0_56, %c0_57] : memref<3x8x48xf32, #tpu.memory_space<vmem>>, vector<1x8x48xf32>
    %42 = vector.shape_cast %41 : vector<1x8x48xf32> to vector<8x48xf32>
    %43 = vector.shape_cast %40 : vector<8x48xf32> to vector<1x8x48xf32>
    tpu.vector_store %arg7[%c0_55, %c0_56, %c0_57], %43 {strides = array<i32>} : memref<3x8x48xf32, #tpu.memory_space<vmem>>, vector<1x8x48xf32>,
    %c0_58 = arith.constant 0 : index
    %c0_59 = arith.constant 0 : index
    %44 = vector.load %arg8[%c0_58, %c0_59] : memref<64x48xf32, #tpu.memory_space<vmem>>, vector<64x48xf32>
    %c0_60 = arith.constant 0 : index
    %c0_61 = arith.constant 0 : index
    %c0_62 = arith.constant 0 : index
    %c0_63 = arith.constant 0 : index
    %45 = vector.load %arg3[%c0_60, %c0_61, %c0_62, %c0_63] : memref<2x3x48x48xf32, #tpu.memory_space<vmem>>, vector<1x1x48x48xf32>
    %46 = vector.shape_cast %45 : vector<1x1x48x48xf32> to vector<48x48xf32>
    %c0_64 = arith.constant 0 : index
    %c1_65 = arith.constant 1 : index
    %c0_66 = arith.constant 0 : index
    %c0_67 = arith.constant 0 : index
    %47 = vector.load %arg3[%c0_64, %c1_65, %c0_66, %c0_67] : memref<2x3x48x48xf32, #tpu.memory_space<vmem>>, vector<1x1x48x48xf32>
    %48 = vector.shape_cast %47 : vector<1x1x48x48xf32> to vector<48x48xf32>
    %c0_68 = arith.constant 0 : index
    %c2_69 = arith.constant 2 : index
    %c0_70 = arith.constant 0 : index
    %c0_71 = arith.constant 0 : index
    %49 = vector.load %arg3[%c0_68, %c2_69, %c0_70, %c0_71] : memref<2x3x48x48xf32, #tpu.memory_space<vmem>>, vector<1x1x48x48xf32>
    %50 = vector.shape_cast %49 : vector<1x1x48x48xf32> to vector<48x48xf32>
    %cst_72 = arith.constant dense<0.000000e+00> : vector<64x48xf32>
    %51 = tpu.matmul %44, %46, %cst_72 {dimension_numbers = #tpu.dot_dimension_numbers<[1], [0], [0], [1], [0, 0, 1, 1], [], []>} : vector<64x48xf32>, vector<48x48xf32>, vector<64x48xf32> -> vector<64x48xf32>
    %c1_73 = arith.constant 1 : index
    %c0_74 = arith.constant 0 : index
    %c0_75 = arith.constant 0 : index
    %c0_76 = arith.constant 0 : index
    %52 = vector.load %arg5[%c1_73, %c0_74, %c0_75, %c0_76] : memref<3x3x1x48xf32, #tpu.memory_space<vmem>>, vector<1x1x1x48xf32>
    %53 = vector.shape_cast %52 : vector<1x1x1x48xf32> to vector<1x48xf32>
    %54 = vector.broadcast %53 : vector<1x48xf32> to vector<64x48xf32>
    %55 = arith.addf %51, %54 : vector<64x48xf32>
    %c0_77 = arith.constant 0 : index
    %c0_78 = arith.constant 0 : index
    %56 = vector.load %arg9[%c0_77, %c0_78] : memref<64x48xf32, #tpu.memory_space<vmem>>, vector<64x48xf32>
    tpu.vector_store %arg9[%c0_77, %c0_78], %55 {strides = array<i32>} : memref<64x48xf32, #tpu.memory_space<vmem>>, vector<64x48xf32>,
    %cst_79 = arith.constant dense<0.000000e+00> : vector<64x48xf32>
    %57 = tpu.matmul %44, %48, %cst_79 {dimension_numbers = #tpu.dot_dimension_numbers<[1], [0], [0], [1], [0, 0, 1, 1], [], []>} : vector<64x48xf32>, vector<48x48xf32>, vector<64x48xf32> -> vector<64x48xf32>
    %c1_80 = arith.constant 1 : index
    %c1_81 = arith.constant 1 : index
    %c0_82 = arith.constant 0 : index
    %c0_83 = arith.constant 0 : index
    %58 = vector.load %arg5[%c1_80, %c1_81, %c0_82, %c0_83] : memref<3x3x1x48xf32, #tpu.memory_space<vmem>>, vector<1x1x1x48xf32>
    %59 = vector.shape_cast %58 : vector<1x1x1x48xf32> to vector<1x48xf32>
    %60 = vector.broadcast %59 : vector<1x48xf32> to vector<64x48xf32>
    %61 = arith.addf %57, %60 : vector<64x48xf32>
    %c0_84 = arith.constant 0 : index
    %c0_85 = arith.constant 0 : index
    %62 = vector.load %arg10[%c0_84, %c0_85] : memref<64x48xf32, #tpu.memory_space<vmem>>, vector<64x48xf32>
    tpu.vector_store %arg10[%c0_84, %c0_85], %61 {strides = array<i32>} : memref<64x48xf32, #tpu.memory_space<vmem>>, vector<64x48xf32>,
    %cst_86 = arith.constant dense<0.000000e+00> : vector<64x48xf32>
    %63 = tpu.matmul %44, %50, %cst_86 {dimension_numbers = #tpu.dot_dimension_numbers<[1], [0], [0], [1], [0, 0, 1, 1], [], []>} : vector<64x48xf32>, vector<48x48xf32>, vector<64x48xf32> -> vector<64x48xf32>
    %c1_87 = arith.constant 1 : index
    %c2_88 = arith.constant 2 : index
    %c0_89 = arith.constant 0 : index
    %c0_90 = arith.constant 0 : index
    %64 = vector.load %arg5[%c1_87, %c2_88, %c0_89, %c0_90] : memref<3x3x1x48xf32, #tpu.memory_space<vmem>>, vector<1x1x1x48xf32>
    %65 = vector.shape_cast %64 : vector<1x1x1x48xf32> to vector<1x48xf32>
    %66 = vector.broadcast %65 : vector<1x48xf32> to vector<64x48xf32>
    %67 = arith.addf %63, %66 : vector<64x48xf32>
    %c0_91 = arith.constant 0 : index
    %c0_92 = arith.constant 0 : index
    %68 = vector.load %arg11[%c0_91, %c0_92] : memref<64x48xf32, #tpu.memory_space<vmem>>, vector<64x48xf32>
    tpu.vector_store %arg11[%c0_91, %c0_92], %67 {strides = array<i32>} : memref<64x48xf32, #tpu.memory_space<vmem>>, vector<64x48xf32>,
    %c1_93 = arith.constant 1 : index
    %c0_94 = arith.constant 0 : index
    %c0_95 = arith.constant 0 : index
    %c0_96 = arith.constant 0 : index
    %69 = vector.load %arg4[%c1_93, %c0_94, %c0_95, %c0_96] : memref<3x3x48x48xf32, #tpu.memory_space<vmem>>, vector<1x1x48x48xf32>
    %70 = vector.shape_cast %69 : vector<1x1x48x48xf32> to vector<48x48xf32>
    %c1_97 = arith.constant 1 : index
    %c1_98 = arith.constant 1 : index
    %c0_99 = arith.constant 0 : index
    %c0_100 = arith.constant 0 : index
    %71 = vector.load %arg4[%c1_97, %c1_98, %c0_99, %c0_100] : memref<3x3x48x48xf32, #tpu.memory_space<vmem>>, vector<1x1x48x48xf32>
    %72 = vector.shape_cast %71 : vector<1x1x48x48xf32> to vector<48x48xf32>
    %c1_101 = arith.constant 1 : index
    %c2_102 = arith.constant 2 : index
    %c0_103 = arith.constant 0 : index
    %c0_104 = arith.constant 0 : index
    %73 = vector.load %arg4[%c1_101, %c2_102, %c0_103, %c0_104] : memref<3x3x48x48xf32, #tpu.memory_space<vmem>>, vector<1x1x48x48xf32>
    %74 = vector.shape_cast %73 : vector<1x1x48x48xf32> to vector<48x48xf32>
    %c1_105 = arith.constant 1 : index
    %c0_106 = arith.constant 0 : index
    %c0_107 = arith.constant 0 : index
    %c0_108 = arith.constant 0 : index
    %75 = vector.load %arg6[%c1_105, %c0_106, %c0_107, %c0_108] : memref<3x3x1x48xf32, #tpu.memory_space<vmem>>, vector<1x1x1x48xf32>
    %76 = vector.shape_cast %75 : vector<1x1x1x48xf32> to vector<1x48xf32>
    %c1_109 = arith.constant 1 : index
    %c1_110 = arith.constant 1 : index
    %c0_111 = arith.constant 0 : index
    %c0_112 = arith.constant 0 : index
    %77 = vector.load %arg6[%c1_109, %c1_110, %c0_111, %c0_112] : memref<3x3x1x48xf32, #tpu.memory_space<vmem>>, vector<1x1x1x48xf32>
    %78 = vector.shape_cast %77 : vector<1x1x1x48xf32> to vector<1x48xf32>
    %c1_113 = arith.constant 1 : index
    %c2_114 = arith.constant 2 : index
    %c0_115 = arith.constant 0 : index
    %c0_116 = arith.constant 0 : index
    %79 = vector.load %arg6[%c1_113, %c2_114, %c0_115, %c0_116] : memref<3x3x1x48xf32, #tpu.memory_space<vmem>>, vector<1x1x1x48xf32>
    %80 = vector.shape_cast %79 : vector<1x1x1x48xf32> to vector<1x48xf32>
    %cst_117 = arith.constant 0.000000e+00 : f32
    %81 = vector.broadcast %cst_117 : f32 to vector<8x48xf32>
    %c0_i32_118 = arith.constant 0 : i32
    %c8_i32_119 = arith.constant 8 : i32
    %82 = arith.addi %c0_i32_118, %c8_i32_119 : i32
    %c1_i32_120 = arith.constant 1 : i32
    %83 = scf.for %arg12 = %c0_i32_118 to %82 step %c1_i32_120 iter_args(%arg13 = %81) -> (vector<8x48xf32>)  : i32 {
      %c8_i32_192 = arith.constant 8 : i32
      %130 = arith.muli %arg12, %c8_i32_192 : i32
      %131 = tpu.assume_multiple %130, 8 : i32
      %cst_193 = arith.constant dense<0.000000e+00> : vector<8x48xf32>
      %132 = tpu.matmul %arg13, %70, %cst_193 {dimension_numbers = #tpu.dot_dimension_numbers<[1], [0], [0], [1], [0, 0, 1, 1], [], []>} : vector<8x48xf32>, vector<48x48xf32>, vector<8x48xf32> -> vector<8x48xf32>
      %133 = vector.broadcast %76 : vector<1x48xf32> to vector<8x48xf32>
      %134 = arith.addf %132, %133 : vector<8x48xf32>
      %cst_194 = arith.constant dense<0.000000e+00> : vector<8x48xf32>
      %135 = tpu.matmul %arg13, %72, %cst_194 {dimension_numbers = #tpu.dot_dimension_numbers<[1], [0], [0], [1], [0, 0, 1, 1], [], []>} : vector<8x48xf32>, vector<48x48xf32>, vector<8x48xf32> -> vector<8x48xf32>
      %136 = vector.broadcast %78 : vector<1x48xf32> to vector<8x48xf32>
      %137 = arith.addf %135, %136 : vector<8x48xf32>
      %cst_195 = arith.constant dense<0.000000e+00> : vector<8x48xf32>
      %138 = tpu.matmul %arg13, %74, %cst_195 {dimension_numbers = #tpu.dot_dimension_numbers<[1], [0], [0], [1], [0, 0, 1, 1], [], []>} : vector<8x48xf32>, vector<48x48xf32>, vector<8x48xf32> -> vector<8x48xf32>
      %139 = vector.broadcast %80 : vector<1x48xf32> to vector<8x48xf32>
      %140 = arith.addf %138, %139 : vector<8x48xf32>
      %141 = arith.index_cast %131 : i32 to index
      %c0_196 = arith.constant 0 : index
      %142 = vector.load %arg9[%141, %c0_196] : memref<64x48xf32, #tpu.memory_space<vmem>>, vector<8x48xf32>
      %143 = arith.addf %142, %134 : vector<8x48xf32>
      %144 = arith.negf %143 : vector<8x48xf32>
      %145 = math.exp %144 : vector<8x48xf32>
      %cst_197 = arith.constant 1.000000e+00 : f32
      %146 = vector.broadcast %cst_197 : f32 to vector<8x48xf32>
      %147 = arith.addf %146, %145 : vector<8x48xf32>
      %148 = arith.divf %146, %147 : vector<8x48xf32>
      %149 = arith.index_cast %131 : i32 to index
      %c0_198 = arith.constant 0 : index
      %150 = vector.load %arg10[%149, %c0_198] : memref<64x48xf32, #tpu.memory_space<vmem>>, vector<8x48xf32>
      %151 = arith.addf %150, %137 : vector<8x48xf32>
      %152 = arith.negf %151 : vector<8x48xf32>
      %153 = math.exp %152 : vector<8x48xf32>
      %cst_199 = arith.constant 1.000000e+00 : f32
      %154 = vector.broadcast %cst_199 : f32 to vector<8x48xf32>
      %155 = arith.addf %154, %153 : vector<8x48xf32>
      %156 = arith.divf %154, %155 : vector<8x48xf32>
      %157 = arith.index_cast %131 : i32 to index
      %c0_200 = arith.constant 0 : index
      %158 = vector.load %arg11[%157, %c0_200] : memref<64x48xf32, #tpu.memory_space<vmem>>, vector<8x48xf32>
      %159 = arith.mulf %148, %140 : vector<8x48xf32>
      %160 = arith.addf %158, %159 : vector<8x48xf32>
      %161 = math.tanh %160 : vector<8x48xf32>
      %cst_201 = arith.constant 1.000000e+00 : f32
      %162 = vector.broadcast %cst_201 : f32 to vector<8x48xf32>
      %163 = arith.subf %162, %156 : vector<8x48xf32>
      %164 = arith.mulf %163, %161 : vector<8x48xf32>
      %165 = arith.mulf %156, %arg13 : vector<8x48xf32>
      %166 = arith.addf %164, %165 : vector<8x48xf32>
      %167 = arith.index_cast %131 : i32 to index
      %c0_202 = arith.constant 0 : index
      %168 = vector.load %arg8[%167, %c0_202] : memref<64x48xf32, #tpu.memory_space<vmem>>, vector<8x48xf32>
      tpu.vector_store %arg8[%167, %c0_202], %166 {strides = array<i32>} : memref<64x48xf32, #tpu.memory_space<vmem>>, vector<8x48xf32>,
      scf.yield %166 : vector<8x48xf32>
    }
    %c8_i32_121 = arith.constant 8 : i32
    %c1_122 = arith.constant 1 : index
    %c0_123 = arith.constant 0 : index
    %c0_124 = arith.constant 0 : index
    %84 = vector.load %arg7[%c1_122, %c0_123, %c0_124] : memref<3x8x48xf32, #tpu.memory_space<vmem>>, vector<1x8x48xf32>
    %85 = vector.shape_cast %84 : vector<1x8x48xf32> to vector<8x48xf32>
    %86 = vector.shape_cast %83 : vector<8x48xf32> to vector<1x8x48xf32>
    tpu.vector_store %arg7[%c1_122, %c0_123, %c0_124], %86 {strides = array<i32>} : memref<3x8x48xf32, #tpu.memory_space<vmem>>, vector<1x8x48xf32>,
    %c0_125 = arith.constant 0 : index
    %c0_126 = arith.constant 0 : index
    %87 = vector.load %arg8[%c0_125, %c0_126] : memref<64x48xf32, #tpu.memory_space<vmem>>, vector<64x48xf32>
    %c1_127 = arith.constant 1 : index
    %c0_128 = arith.constant 0 : index
    %c0_129 = arith.constant 0 : index
    %c0_130 = arith.constant 0 : index
    %88 = vector.load %arg3[%c1_127, %c0_128, %c0_129, %c0_130] : memref<2x3x48x48xf32, #tpu.memory_space<vmem>>, vector<1x1x48x48xf32>
    %89 = vector.shape_cast %88 : vector<1x1x48x48xf32> to vector<48x48xf32>
    %c1_131 = arith.constant 1 : index
    %c1_132 = arith.constant 1 : index
    %c0_133 = arith.constant 0 : index
    %c0_134 = arith.constant 0 : index
    %90 = vector.load %arg3[%c1_131, %c1_132, %c0_133, %c0_134] : memref<2x3x48x48xf32, #tpu.memory_space<vmem>>, vector<1x1x48x48xf32>
    %91 = vector.shape_cast %90 : vector<1x1x48x48xf32> to vector<48x48xf32>
    %c1_135 = arith.constant 1 : index
    %c2_136 = arith.constant 2 : index
    %c0_137 = arith.constant 0 : index
    %c0_138 = arith.constant 0 : index
    %92 = vector.load %arg3[%c1_135, %c2_136, %c0_137, %c0_138] : memref<2x3x48x48xf32, #tpu.memory_space<vmem>>, vector<1x1x48x48xf32>
    %93 = vector.shape_cast %92 : vector<1x1x48x48xf32> to vector<48x48xf32>
    %cst_139 = arith.constant dense<0.000000e+00> : vector<64x48xf32>
    %94 = tpu.matmul %87, %89, %cst_139 {dimension_numbers = #tpu.dot_dimension_numbers<[1], [0], [0], [1], [0, 0, 1, 1], [], []>} : vector<64x48xf32>, vector<48x48xf32>, vector<64x48xf32> -> vector<64x48xf32>
    %c2_140 = arith.constant 2 : index
    %c0_141 = arith.constant 0 : index
    %c0_142 = arith.constant 0 : index
    %c0_143 = arith.constant 0 : index
    %95 = vector.load %arg5[%c2_140, %c0_141, %c0_142, %c0_143] : memref<3x3x1x48xf32, #tpu.memory_space<vmem>>, vector<1x1x1x48xf32>
    %96 = vector.shape_cast %95 : vector<1x1x1x48xf32> to vector<1x48xf32>
    %97 = vector.broadcast %96 : vector<1x48xf32> to vector<64x48xf32>
    %98 = arith.addf %94, %97 : vector<64x48xf32>
    %c0_144 = arith.constant 0 : index
    %c0_145 = arith.constant 0 : index
    %99 = vector.load %arg9[%c0_144, %c0_145] : memref<64x48xf32, #tpu.memory_space<vmem>>, vector<64x48xf32>
    tpu.vector_store %arg9[%c0_144, %c0_145], %98 {strides = array<i32>} : memref<64x48xf32, #tpu.memory_space<vmem>>, vector<64x48xf32>,
    %cst_146 = arith.constant dense<0.000000e+00> : vector<64x48xf32>
    %100 = tpu.matmul %87, %91, %cst_146 {dimension_numbers = #tpu.dot_dimension_numbers<[1], [0], [0], [1], [0, 0, 1, 1], [], []>} : vector<64x48xf32>, vector<48x48xf32>, vector<64x48xf32> -> vector<64x48xf32>
    %c2_147 = arith.constant 2 : index
    %c1_148 = arith.constant 1 : index
    %c0_149 = arith.constant 0 : index
    %c0_150 = arith.constant 0 : index
    %101 = vector.load %arg5[%c2_147, %c1_148, %c0_149, %c0_150] : memref<3x3x1x48xf32, #tpu.memory_space<vmem>>, vector<1x1x1x48xf32>
    %102 = vector.shape_cast %101 : vector<1x1x1x48xf32> to vector<1x48xf32>
    %103 = vector.broadcast %102 : vector<1x48xf32> to vector<64x48xf32>
    %104 = arith.addf %100, %103 : vector<64x48xf32>
    %c0_151 = arith.constant 0 : index
    %c0_152 = arith.constant 0 : index
    %105 = vector.load %arg10[%c0_151, %c0_152] : memref<64x48xf32, #tpu.memory_space<vmem>>, vector<64x48xf32>
    tpu.vector_store %arg10[%c0_151, %c0_152], %104 {strides = array<i32>} : memref<64x48xf32, #tpu.memory_space<vmem>>, vector<64x48xf32>,
    %cst_153 = arith.constant dense<0.000000e+00> : vector<64x48xf32>
    %106 = tpu.matmul %87, %93, %cst_153 {dimension_numbers = #tpu.dot_dimension_numbers<[1], [0], [0], [1], [0, 0, 1, 1], [], []>} : vector<64x48xf32>, vector<48x48xf32>, vector<64x48xf32> -> vector<64x48xf32>
    %c2_154 = arith.constant 2 : index
    %c2_155 = arith.constant 2 : index
    %c0_156 = arith.constant 0 : index
    %c0_157 = arith.constant 0 : index
    %107 = vector.load %arg5[%c2_154, %c2_155, %c0_156, %c0_157] : memref<3x3x1x48xf32, #tpu.memory_space<vmem>>, vector<1x1x1x48xf32>
    %108 = vector.shape_cast %107 : vector<1x1x1x48xf32> to vector<1x48xf32>
    %109 = vector.broadcast %108 : vector<1x48xf32> to vector<64x48xf32>
    %110 = arith.addf %106, %109 : vector<64x48xf32>
    %c0_158 = arith.constant 0 : index
    %c0_159 = arith.constant 0 : index
    %111 = vector.load %arg11[%c0_158, %c0_159] : memref<64x48xf32, #tpu.memory_space<vmem>>, vector<64x48xf32>
    tpu.vector_store %arg11[%c0_158, %c0_159], %110 {strides = array<i32>} : memref<64x48xf32, #tpu.memory_space<vmem>>, vector<64x48xf32>,
    %c2_160 = arith.constant 2 : index
    %c0_161 = arith.constant 0 : index
    %c0_162 = arith.constant 0 : index
    %c0_163 = arith.constant 0 : index
    %112 = vector.load %arg4[%c2_160, %c0_161, %c0_162, %c0_163] : memref<3x3x48x48xf32, #tpu.memory_space<vmem>>, vector<1x1x48x48xf32>
    %113 = vector.shape_cast %112 : vector<1x1x48x48xf32> to vector<48x48xf32>
    %c2_164 = arith.constant 2 : index
    %c1_165 = arith.constant 1 : index
    %c0_166 = arith.constant 0 : index
    %c0_167 = arith.constant 0 : index
    %114 = vector.load %arg4[%c2_164, %c1_165, %c0_166, %c0_167] : memref<3x3x48x48xf32, #tpu.memory_space<vmem>>, vector<1x1x48x48xf32>
    %115 = vector.shape_cast %114 : vector<1x1x48x48xf32> to vector<48x48xf32>
    %c2_168 = arith.constant 2 : index
    %c2_169 = arith.constant 2 : index
    %c0_170 = arith.constant 0 : index
    %c0_171 = arith.constant 0 : index
    %116 = vector.load %arg4[%c2_168, %c2_169, %c0_170, %c0_171] : memref<3x3x48x48xf32, #tpu.memory_space<vmem>>, vector<1x1x48x48xf32>
    %117 = vector.shape_cast %116 : vector<1x1x48x48xf32> to vector<48x48xf32>
    %c2_172 = arith.constant 2 : index
    %c0_173 = arith.constant 0 : index
    %c0_174 = arith.constant 0 : index
    %c0_175 = arith.constant 0 : index
    %118 = vector.load %arg6[%c2_172, %c0_173, %c0_174, %c0_175] : memref<3x3x1x48xf32, #tpu.memory_space<vmem>>, vector<1x1x1x48xf32>
    %119 = vector.shape_cast %118 : vector<1x1x1x48xf32> to vector<1x48xf32>
    %c2_176 = arith.constant 2 : index
    %c1_177 = arith.constant 1 : index
    %c0_178 = arith.constant 0 : index
    %c0_179 = arith.constant 0 : index
    %120 = vector.load %arg6[%c2_176, %c1_177, %c0_178, %c0_179] : memref<3x3x1x48xf32, #tpu.memory_space<vmem>>, vector<1x1x1x48xf32>
    %121 = vector.shape_cast %120 : vector<1x1x1x48xf32> to vector<1x48xf32>
    %c2_180 = arith.constant 2 : index
    %c2_181 = arith.constant 2 : index
    %c0_182 = arith.constant 0 : index
    %c0_183 = arith.constant 0 : index
    %122 = vector.load %arg6[%c2_180, %c2_181, %c0_182, %c0_183] : memref<3x3x1x48xf32, #tpu.memory_space<vmem>>, vector<1x1x1x48xf32>
    %123 = vector.shape_cast %122 : vector<1x1x1x48xf32> to vector<1x48xf32>
    %cst_184 = arith.constant 0.000000e+00 : f32
    %124 = vector.broadcast %cst_184 : f32 to vector<8x48xf32>
    %c0_i32_185 = arith.constant 0 : i32
    %c8_i32_186 = arith.constant 8 : i32
    %125 = arith.addi %c0_i32_185, %c8_i32_186 : i32
    %c1_i32_187 = arith.constant 1 : i32
    %126 = scf.for %arg12 = %c0_i32_185 to %125 step %c1_i32_187 iter_args(%arg13 = %124) -> (vector<8x48xf32>)  : i32 {
      %c8_i32_192 = arith.constant 8 : i32
      %130 = arith.muli %arg12, %c8_i32_192 : i32
      %131 = tpu.assume_multiple %130, 8 : i32
      %cst_193 = arith.constant dense<0.000000e+00> : vector<8x48xf32>
      %132 = tpu.matmul %arg13, %113, %cst_193 {dimension_numbers = #tpu.dot_dimension_numbers<[1], [0], [0], [1], [0, 0, 1, 1], [], []>} : vector<8x48xf32>, vector<48x48xf32>, vector<8x48xf32> -> vector<8x48xf32>
      %133 = vector.broadcast %119 : vector<1x48xf32> to vector<8x48xf32>
      %134 = arith.addf %132, %133 : vector<8x48xf32>
      %cst_194 = arith.constant dense<0.000000e+00> : vector<8x48xf32>
      %135 = tpu.matmul %arg13, %115, %cst_194 {dimension_numbers = #tpu.dot_dimension_numbers<[1], [0], [0], [1], [0, 0, 1, 1], [], []>} : vector<8x48xf32>, vector<48x48xf32>, vector<8x48xf32> -> vector<8x48xf32>
      %136 = vector.broadcast %121 : vector<1x48xf32> to vector<8x48xf32>
      %137 = arith.addf %135, %136 : vector<8x48xf32>
      %cst_195 = arith.constant dense<0.000000e+00> : vector<8x48xf32>
      %138 = tpu.matmul %arg13, %117, %cst_195 {dimension_numbers = #tpu.dot_dimension_numbers<[1], [0], [0], [1], [0, 0, 1, 1], [], []>} : vector<8x48xf32>, vector<48x48xf32>, vector<8x48xf32> -> vector<8x48xf32>
      %139 = vector.broadcast %123 : vector<1x48xf32> to vector<8x48xf32>
      %140 = arith.addf %138, %139 : vector<8x48xf32>
      %141 = arith.index_cast %131 : i32 to index
      %c0_196 = arith.constant 0 : index
      %142 = vector.load %arg9[%141, %c0_196] : memref<64x48xf32, #tpu.memory_space<vmem>>, vector<8x48xf32>
      %143 = arith.addf %142, %134 : vector<8x48xf32>
      %144 = arith.negf %143 : vector<8x48xf32>
      %145 = math.exp %144 : vector<8x48xf32>
      %cst_197 = arith.constant 1.000000e+00 : f32
      %146 = vector.broadcast %cst_197 : f32 to vector<8x48xf32>
      %147 = arith.addf %146, %145 : vector<8x48xf32>
      %148 = arith.divf %146, %147 : vector<8x48xf32>
      %149 = arith.index_cast %131 : i32 to index
      %c0_198 = arith.constant 0 : index
      %150 = vector.load %arg10[%149, %c0_198] : memref<64x48xf32, #tpu.memory_space<vmem>>, vector<8x48xf32>
      %151 = arith.addf %150, %137 : vector<8x48xf32>
      %152 = arith.negf %151 : vector<8x48xf32>
      %153 = math.exp %152 : vector<8x48xf32>
      %cst_199 = arith.constant 1.000000e+00 : f32
      %154 = vector.broadcast %cst_199 : f32 to vector<8x48xf32>
      %155 = arith.addf %154, %153 : vector<8x48xf32>
      %156 = arith.divf %154, %155 : vector<8x48xf32>
      %157 = arith.index_cast %131 : i32 to index
      %c0_200 = arith.constant 0 : index
      %158 = vector.load %arg11[%157, %c0_200] : memref<64x48xf32, #tpu.memory_space<vmem>>, vector<8x48xf32>
      %159 = arith.mulf %148, %140 : vector<8x48xf32>
      %160 = arith.addf %158, %159 : vector<8x48xf32>
      %161 = math.tanh %160 : vector<8x48xf32>
      %cst_201 = arith.constant 1.000000e+00 : f32
      %162 = vector.broadcast %cst_201 : f32 to vector<8x48xf32>
      %163 = arith.subf %162, %156 : vector<8x48xf32>
      %164 = arith.mulf %163, %161 : vector<8x48xf32>
      %165 = arith.mulf %156, %arg13 : vector<8x48xf32>
      %166 = arith.addf %164, %165 : vector<8x48xf32>
      %167 = arith.index_cast %131 : i32 to index
      %c0_202 = arith.constant 0 : index
      %168 = vector.load %arg8[%167, %c0_202] : memref<64x48xf32, #tpu.memory_space<vmem>>, vector<8x48xf32>
      tpu.vector_store %arg8[%167, %c0_202], %166 {strides = array<i32>} : memref<64x48xf32, #tpu.memory_space<vmem>>, vector<8x48xf32>,
      scf.yield %166 : vector<8x48xf32>
    }
    %c8_i32_188 = arith.constant 8 : i32
    %c2_189 = arith.constant 2 : index
    %c0_190 = arith.constant 0 : index
    %c0_191 = arith.constant 0 : index
    %127 = vector.load %arg7[%c2_189, %c0_190, %c0_191] : memref<3x8x48xf32, #tpu.memory_space<vmem>>, vector<1x8x48xf32>
    %128 = vector.shape_cast %127 : vector<1x8x48xf32> to vector<8x48xf32>
    %129 = vector.shape_cast %126 : vector<8x48xf32> to vector<1x8x48xf32>
    tpu.vector_store %arg7[%c2_189, %c0_190, %c0_191], %129 {strides = array<i32>} : memref<3x8x48xf32, #tpu.memory_space<vmem>>, vector<1x8x48xf32>,
    return
  }
  func.func @transform_0(%arg0: i32) -> (i32, i32, i32) {
    %c0_i32 = arith.constant 0 : i32
    %c0_i32_0 = arith.constant 0 : i32
    %c0_i32_1 = arith.constant 0 : i32
    return %c0_i32, %arg0, %c0_i32_0 : i32, i32, i32
  }
  func.func @transform_1(%arg0: i32) -> (i32, i32, i32) {
    %c0_i32 = arith.constant 0 : i32
    %c0_i32_0 = arith.constant 0 : i32
    %c0_i32_1 = arith.constant 0 : i32
    %c0_i32_2 = arith.constant 0 : i32
    return %c0_i32, %c0_i32_0, %c0_i32_1 : i32, i32, i32
  }
  func.func @transform_2(%arg0: i32) -> (i32, i32, i32, i32) {
    %c0_i32 = arith.constant 0 : i32
    %c0_i32_0 = arith.constant 0 : i32
    %c0_i32_1 = arith.constant 0 : i32
    %c0_i32_2 = arith.constant 0 : i32
    %c0_i32_3 = arith.constant 0 : i32
    return %c0_i32, %c0_i32_0, %c0_i32_1, %c0_i32_2 : i32, i32, i32, i32
  }
  func.func @transform_3(%arg0: i32) -> (i32, i32, i32, i32) {
    %c0_i32 = arith.constant 0 : i32
    %c0_i32_0 = arith.constant 0 : i32
    %c0_i32_1 = arith.constant 0 : i32
    %c0_i32_2 = arith.constant 0 : i32
    %c0_i32_3 = arith.constant 0 : i32
    return %c0_i32, %c0_i32_0, %c0_i32_1, %c0_i32_2 : i32, i32, i32, i32
  }
  func.func @transform_4(%arg0: i32) -> (i32, i32, i32, i32) {
    %c0_i32 = arith.constant 0 : i32
    %c0_i32_0 = arith.constant 0 : i32
    %c0_i32_1 = arith.constant 0 : i32
    %c0_i32_2 = arith.constant 0 : i32
    %c0_i32_3 = arith.constant 0 : i32
    return %c0_i32, %c0_i32_0, %c0_i32_1, %c0_i32_2 : i32, i32, i32, i32
  }
  func.func @transform_5(%arg0: i32) -> (i32, i32, i32, i32) {
    %c0_i32 = arith.constant 0 : i32
    %c0_i32_0 = arith.constant 0 : i32
    %c0_i32_1 = arith.constant 0 : i32
    %c0_i32_2 = arith.constant 0 : i32
    %c0_i32_3 = arith.constant 0 : i32
    return %c0_i32, %c0_i32_0, %c0_i32_1, %c0_i32_2 : i32, i32, i32, i32
  }
  func.func @transform_6(%arg0: i32) -> (i32, i32, i32) {
    %c0_i32 = arith.constant 0 : i32
    %c0_i32_0 = arith.constant 0 : i32
    %c0_i32_1 = arith.constant 0 : i32
    return %c0_i32, %arg0, %c0_i32_0 : i32, i32, i32
  }
}

module attributes {stable_mosaic.version = 11 : i64} {
  func.func @sage_layer1_kernel(%arg0: i32, %arg1: memref<8x8xf32, #tpu.memory_space<vmem>>, %arg2: memref<8x48xf32, #tpu.memory_space<vmem>>, %arg3: memref<8x48xf32, #tpu.memory_space<vmem>>, %arg4: memref<8x16xf32, #tpu.memory_space<vmem>>, %arg5: memref<8x16xf32, #tpu.memory_space<vmem>>, %arg6: memref<4x1x16xf32, #tpu.memory_space<vmem>>, %arg7: memref<4x16x1xf32, #tpu.memory_space<vmem>>, %arg8: memref<4x1x1xf32, #tpu.memory_space<vmem>>, %arg9: memref<4x48x64xf32, #tpu.memory_space<vmem>>, %arg10: memref<48x64xf32, #tpu.memory_space<vmem>>, %arg11: memref<8x64xf32, #tpu.memory_space<vmem>>) attributes {dimension_semantics = [#tpu.dimension_semantics<parallel>], iteration_bounds = array<i64: 1>, scalar_prefetch = 0 : i64, scratch_operands = 0 : i64, tpu.core_type = #tpu.core_type<tc>, window_params = [{transform_indices = @transform_0, window_bounds = array<i64: 8, 8>}, {pipeline_mode = #tpu.pipeline_mode<synchronous>, transform_indices = @transform_1, window_bounds = array<i64: 8, 48>}, {transform_indices = @transform_2, window_bounds = array<i64: 8, 48>}, {pipeline_mode = #tpu.pipeline_mode<synchronous>, transform_indices = @transform_3, window_bounds = array<i64: 8, 16>}, {transform_indices = @transform_4, window_bounds = array<i64: 8, 16>}, {pipeline_mode = #tpu.pipeline_mode<synchronous>, transform_indices = @transform_5, window_bounds = array<i64: 4, 1, 16>}, {pipeline_mode = #tpu.pipeline_mode<synchronous>, transform_indices = @transform_6, window_bounds = array<i64: 4, 16, 1>}, {pipeline_mode = #tpu.pipeline_mode<synchronous>, transform_indices = @transform_7, window_bounds = array<i64: 4, 1, 1>}, {pipeline_mode = #tpu.pipeline_mode<synchronous>, transform_indices = @transform_8, window_bounds = array<i64: 4, 48, 64>}, {pipeline_mode = #tpu.pipeline_mode<synchronous>, transform_indices = @transform_9, window_bounds = array<i64: 48, 64>}, {transform_indices = @transform_10, window_bounds = array<i64: 8, 64>}]} {
    %c0 = arith.constant 0 : index
    %c0_0 = arith.constant 0 : index
    %0 = vector.load %arg1[%c0, %c0_0] : memref<8x8xf32, #tpu.memory_space<vmem>>, vector<8x8xf32>
    %c0_1 = arith.constant 0 : index
    %c0_2 = arith.constant 0 : index
    %1 = vector.load %arg2[%c0_1, %c0_2] : memref<8x48xf32, #tpu.memory_space<vmem>>, vector<8x48xf32>
    %c0_3 = arith.constant 0 : index
    %c0_4 = arith.constant 0 : index
    %2 = vector.load %arg3[%c0_3, %c0_4] : memref<8x48xf32, #tpu.memory_space<vmem>>, vector<8x48xf32>
    %c0_5 = arith.constant 0 : index
    %c0_6 = arith.constant 0 : index
    %3 = vector.load %arg4[%c0_5, %c0_6] : memref<8x16xf32, #tpu.memory_space<vmem>>, vector<8x16xf32>
    %c0_7 = arith.constant 0 : index
    %c0_8 = arith.constant 0 : index
    %4 = vector.load %arg5[%c0_7, %c0_8] : memref<8x16xf32, #tpu.memory_space<vmem>>, vector<8x16xf32>
    %c0_9 = arith.constant 0 : index
    %c0_10 = arith.constant 0 : index
    %5 = vector.load %arg10[%c0_9, %c0_10] : memref<48x64xf32, #tpu.memory_space<vmem>>, vector<48x64xf32>
    %cst = arith.constant dense<0.000000e+00> : vector<8x64xf32>
    %6 = tpu.matmul %2, %5, %cst {dimension_numbers = #tpu.dot_dimension_numbers<[1], [0], [0], [1], [0, 0, 1, 1], [], []>} : vector<8x48xf32>, vector<48x64xf32>, vector<8x64xf32> -> vector<8x64xf32>
    %c0_11 = arith.constant 0 : index
    %c0_12 = arith.constant 0 : index
    %c0_13 = arith.constant 0 : index
    %7 = vector.load %arg7[%c0_11, %c0_12, %c0_13] : memref<4x16x1xf32, #tpu.memory_space<vmem>>, vector<1x16x1xf32>
    %8 = vector.shape_cast %7 : vector<1x16x1xf32> to vector<16x1xf32>
    %cst_14 = arith.constant dense<0.000000e+00> : vector<8x1xf32>
    %9 = tpu.matmul %4, %8, %cst_14 {dimension_numbers = #tpu.dot_dimension_numbers<[1], [0], [0], [1], [0, 0, 1, 1], [], []>} : vector<8x16xf32>, vector<16x1xf32>, vector<8x1xf32> -> vector<8x1xf32>
    %c0_15 = arith.constant 0 : index
    %c0_16 = arith.constant 0 : index
    %c0_17 = arith.constant 0 : index
    %10 = vector.load %arg6[%c0_15, %c0_16, %c0_17] : memref<4x1x16xf32, #tpu.memory_space<vmem>>, vector<1x1x16xf32>
    %11 = vector.shape_cast %10 : vector<1x1x16xf32> to vector<1x16xf32>
    %cst_18 = arith.constant dense<0.000000e+00> : vector<1x8xf32>
    %12 = tpu.matmul %11, %3, %cst_18 {dimension_numbers = #tpu.dot_dimension_numbers<[1], [1], [0], [0], [0, 0, 1, 0], [], []>} : vector<1x16xf32>, vector<8x16xf32>, vector<1x8xf32> -> vector<1x8xf32>
    %13 = vector.broadcast %9 : vector<8x1xf32> to vector<8x8xf32>
    %14 = vector.broadcast %12 : vector<1x8xf32> to vector<8x8xf32>
    %15 = arith.addf %13, %14 : vector<8x8xf32>
    %c0_19 = arith.constant 0 : index
    %c0_20 = arith.constant 0 : index
    %c0_21 = arith.constant 0 : index
    %16 = vector.load %arg8[%c0_19, %c0_20, %c0_21] : memref<4x1x1xf32, #tpu.memory_space<vmem>>, vector<1x1x1xf32>
    %17 = vector.shape_cast %16 : vector<1x1x1xf32> to vector<1x1xf32>
    %18 = vector.broadcast %17 : vector<1x1xf32> to vector<8x8xf32>
    %19 = arith.addf %15, %18 : vector<8x8xf32>
    %20 = arith.negf %19 : vector<8x8xf32>
    %21 = math.exp %20 : vector<8x8xf32>
    %cst_22 = arith.constant 1.000000e+00 : f32
    %22 = vector.broadcast %cst_22 : f32 to vector<8x8xf32>
    %23 = arith.addf %22, %21 : vector<8x8xf32>
    %24 = arith.divf %22, %23 : vector<8x8xf32>
    %25 = arith.mulf %24, %0 : vector<8x8xf32>
    %cst_23 = arith.constant dense<0.000000e+00> : vector<8x48xf32>
    %26 = tpu.matmul %25, %1, %cst_23 {dimension_numbers = #tpu.dot_dimension_numbers<[1], [0], [0], [1], [0, 0, 1, 1], [], []>} : vector<8x8xf32>, vector<8x48xf32>, vector<8x48xf32> -> vector<8x48xf32>
    %c0_24 = arith.constant 0 : index
    %c0_25 = arith.constant 0 : index
    %c0_26 = arith.constant 0 : index
    %27 = vector.load %arg9[%c0_24, %c0_25, %c0_26] : memref<4x48x64xf32, #tpu.memory_space<vmem>>, vector<1x48x64xf32>
    %28 = vector.shape_cast %27 : vector<1x48x64xf32> to vector<48x64xf32>
    %cst_27 = arith.constant dense<0.000000e+00> : vector<8x64xf32>
    %29 = tpu.matmul %26, %28, %cst_27 {dimension_numbers = #tpu.dot_dimension_numbers<[1], [0], [0], [1], [0, 0, 1, 1], [], []>} : vector<8x48xf32>, vector<48x64xf32>, vector<8x64xf32> -> vector<8x64xf32>
    %30 = arith.addf %6, %29 : vector<8x64xf32>
    %c1 = arith.constant 1 : index
    %c0_28 = arith.constant 0 : index
    %c0_29 = arith.constant 0 : index
    %31 = vector.load %arg7[%c1, %c0_28, %c0_29] : memref<4x16x1xf32, #tpu.memory_space<vmem>>, vector<1x16x1xf32>
    %32 = vector.shape_cast %31 : vector<1x16x1xf32> to vector<16x1xf32>
    %cst_30 = arith.constant dense<0.000000e+00> : vector<8x1xf32>
    %33 = tpu.matmul %4, %32, %cst_30 {dimension_numbers = #tpu.dot_dimension_numbers<[1], [0], [0], [1], [0, 0, 1, 1], [], []>} : vector<8x16xf32>, vector<16x1xf32>, vector<8x1xf32> -> vector<8x1xf32>
    %c1_31 = arith.constant 1 : index
    %c0_32 = arith.constant 0 : index
    %c0_33 = arith.constant 0 : index
    %34 = vector.load %arg6[%c1_31, %c0_32, %c0_33] : memref<4x1x16xf32, #tpu.memory_space<vmem>>, vector<1x1x16xf32>
    %35 = vector.shape_cast %34 : vector<1x1x16xf32> to vector<1x16xf32>
    %cst_34 = arith.constant dense<0.000000e+00> : vector<1x8xf32>
    %36 = tpu.matmul %35, %3, %cst_34 {dimension_numbers = #tpu.dot_dimension_numbers<[1], [1], [0], [0], [0, 0, 1, 0], [], []>} : vector<1x16xf32>, vector<8x16xf32>, vector<1x8xf32> -> vector<1x8xf32>
    %37 = vector.broadcast %33 : vector<8x1xf32> to vector<8x8xf32>
    %38 = vector.broadcast %36 : vector<1x8xf32> to vector<8x8xf32>
    %39 = arith.addf %37, %38 : vector<8x8xf32>
    %c1_35 = arith.constant 1 : index
    %c0_36 = arith.constant 0 : index
    %c0_37 = arith.constant 0 : index
    %40 = vector.load %arg8[%c1_35, %c0_36, %c0_37] : memref<4x1x1xf32, #tpu.memory_space<vmem>>, vector<1x1x1xf32>
    %41 = vector.shape_cast %40 : vector<1x1x1xf32> to vector<1x1xf32>
    %42 = vector.broadcast %41 : vector<1x1xf32> to vector<8x8xf32>
    %43 = arith.addf %39, %42 : vector<8x8xf32>
    %44 = arith.negf %43 : vector<8x8xf32>
    %45 = math.exp %44 : vector<8x8xf32>
    %cst_38 = arith.constant 1.000000e+00 : f32
    %46 = vector.broadcast %cst_38 : f32 to vector<8x8xf32>
    %47 = arith.addf %46, %45 : vector<8x8xf32>
    %48 = arith.divf %46, %47 : vector<8x8xf32>
    %49 = arith.mulf %48, %0 : vector<8x8xf32>
    %cst_39 = arith.constant dense<0.000000e+00> : vector<8x48xf32>
    %50 = tpu.matmul %49, %1, %cst_39 {dimension_numbers = #tpu.dot_dimension_numbers<[1], [0], [0], [1], [0, 0, 1, 1], [], []>} : vector<8x8xf32>, vector<8x48xf32>, vector<8x48xf32> -> vector<8x48xf32>
    %c1_40 = arith.constant 1 : index
    %c0_41 = arith.constant 0 : index
    %c0_42 = arith.constant 0 : index
    %51 = vector.load %arg9[%c1_40, %c0_41, %c0_42] : memref<4x48x64xf32, #tpu.memory_space<vmem>>, vector<1x48x64xf32>
    %52 = vector.shape_cast %51 : vector<1x48x64xf32> to vector<48x64xf32>
    %cst_43 = arith.constant dense<0.000000e+00> : vector<8x64xf32>
    %53 = tpu.matmul %50, %52, %cst_43 {dimension_numbers = #tpu.dot_dimension_numbers<[1], [0], [0], [1], [0, 0, 1, 1], [], []>} : vector<8x48xf32>, vector<48x64xf32>, vector<8x64xf32> -> vector<8x64xf32>
    %54 = arith.addf %30, %53 : vector<8x64xf32>
    %c2 = arith.constant 2 : index
    %c0_44 = arith.constant 0 : index
    %c0_45 = arith.constant 0 : index
    %55 = vector.load %arg7[%c2, %c0_44, %c0_45] : memref<4x16x1xf32, #tpu.memory_space<vmem>>, vector<1x16x1xf32>
    %56 = vector.shape_cast %55 : vector<1x16x1xf32> to vector<16x1xf32>
    %cst_46 = arith.constant dense<0.000000e+00> : vector<8x1xf32>
    %57 = tpu.matmul %4, %56, %cst_46 {dimension_numbers = #tpu.dot_dimension_numbers<[1], [0], [0], [1], [0, 0, 1, 1], [], []>} : vector<8x16xf32>, vector<16x1xf32>, vector<8x1xf32> -> vector<8x1xf32>
    %c2_47 = arith.constant 2 : index
    %c0_48 = arith.constant 0 : index
    %c0_49 = arith.constant 0 : index
    %58 = vector.load %arg6[%c2_47, %c0_48, %c0_49] : memref<4x1x16xf32, #tpu.memory_space<vmem>>, vector<1x1x16xf32>
    %59 = vector.shape_cast %58 : vector<1x1x16xf32> to vector<1x16xf32>
    %cst_50 = arith.constant dense<0.000000e+00> : vector<1x8xf32>
    %60 = tpu.matmul %59, %3, %cst_50 {dimension_numbers = #tpu.dot_dimension_numbers<[1], [1], [0], [0], [0, 0, 1, 0], [], []>} : vector<1x16xf32>, vector<8x16xf32>, vector<1x8xf32> -> vector<1x8xf32>
    %61 = vector.broadcast %57 : vector<8x1xf32> to vector<8x8xf32>
    %62 = vector.broadcast %60 : vector<1x8xf32> to vector<8x8xf32>
    %63 = arith.addf %61, %62 : vector<8x8xf32>
    %c2_51 = arith.constant 2 : index
    %c0_52 = arith.constant 0 : index
    %c0_53 = arith.constant 0 : index
    %64 = vector.load %arg8[%c2_51, %c0_52, %c0_53] : memref<4x1x1xf32, #tpu.memory_space<vmem>>, vector<1x1x1xf32>
    %65 = vector.shape_cast %64 : vector<1x1x1xf32> to vector<1x1xf32>
    %66 = vector.broadcast %65 : vector<1x1xf32> to vector<8x8xf32>
    %67 = arith.addf %63, %66 : vector<8x8xf32>
    %68 = arith.negf %67 : vector<8x8xf32>
    %69 = math.exp %68 : vector<8x8xf32>
    %cst_54 = arith.constant 1.000000e+00 : f32
    %70 = vector.broadcast %cst_54 : f32 to vector<8x8xf32>
    %71 = arith.addf %70, %69 : vector<8x8xf32>
    %72 = arith.divf %70, %71 : vector<8x8xf32>
    %73 = arith.mulf %72, %0 : vector<8x8xf32>
    %cst_55 = arith.constant dense<0.000000e+00> : vector<8x48xf32>
    %74 = tpu.matmul %73, %1, %cst_55 {dimension_numbers = #tpu.dot_dimension_numbers<[1], [0], [0], [1], [0, 0, 1, 1], [], []>} : vector<8x8xf32>, vector<8x48xf32>, vector<8x48xf32> -> vector<8x48xf32>
    %c2_56 = arith.constant 2 : index
    %c0_57 = arith.constant 0 : index
    %c0_58 = arith.constant 0 : index
    %75 = vector.load %arg9[%c2_56, %c0_57, %c0_58] : memref<4x48x64xf32, #tpu.memory_space<vmem>>, vector<1x48x64xf32>
    %76 = vector.shape_cast %75 : vector<1x48x64xf32> to vector<48x64xf32>
    %cst_59 = arith.constant dense<0.000000e+00> : vector<8x64xf32>
    %77 = tpu.matmul %74, %76, %cst_59 {dimension_numbers = #tpu.dot_dimension_numbers<[1], [0], [0], [1], [0, 0, 1, 1], [], []>} : vector<8x48xf32>, vector<48x64xf32>, vector<8x64xf32> -> vector<8x64xf32>
    %78 = arith.addf %54, %77 : vector<8x64xf32>
    %c3 = arith.constant 3 : index
    %c0_60 = arith.constant 0 : index
    %c0_61 = arith.constant 0 : index
    %79 = vector.load %arg7[%c3, %c0_60, %c0_61] : memref<4x16x1xf32, #tpu.memory_space<vmem>>, vector<1x16x1xf32>
    %80 = vector.shape_cast %79 : vector<1x16x1xf32> to vector<16x1xf32>
    %cst_62 = arith.constant dense<0.000000e+00> : vector<8x1xf32>
    %81 = tpu.matmul %4, %80, %cst_62 {dimension_numbers = #tpu.dot_dimension_numbers<[1], [0], [0], [1], [0, 0, 1, 1], [], []>} : vector<8x16xf32>, vector<16x1xf32>, vector<8x1xf32> -> vector<8x1xf32>
    %c3_63 = arith.constant 3 : index
    %c0_64 = arith.constant 0 : index
    %c0_65 = arith.constant 0 : index
    %82 = vector.load %arg6[%c3_63, %c0_64, %c0_65] : memref<4x1x16xf32, #tpu.memory_space<vmem>>, vector<1x1x16xf32>
    %83 = vector.shape_cast %82 : vector<1x1x16xf32> to vector<1x16xf32>
    %cst_66 = arith.constant dense<0.000000e+00> : vector<1x8xf32>
    %84 = tpu.matmul %83, %3, %cst_66 {dimension_numbers = #tpu.dot_dimension_numbers<[1], [1], [0], [0], [0, 0, 1, 0], [], []>} : vector<1x16xf32>, vector<8x16xf32>, vector<1x8xf32> -> vector<1x8xf32>
    %85 = vector.broadcast %81 : vector<8x1xf32> to vector<8x8xf32>
    %86 = vector.broadcast %84 : vector<1x8xf32> to vector<8x8xf32>
    %87 = arith.addf %85, %86 : vector<8x8xf32>
    %c3_67 = arith.constant 3 : index
    %c0_68 = arith.constant 0 : index
    %c0_69 = arith.constant 0 : index
    %88 = vector.load %arg8[%c3_67, %c0_68, %c0_69] : memref<4x1x1xf32, #tpu.memory_space<vmem>>, vector<1x1x1xf32>
    %89 = vector.shape_cast %88 : vector<1x1x1xf32> to vector<1x1xf32>
    %90 = vector.broadcast %89 : vector<1x1xf32> to vector<8x8xf32>
    %91 = arith.addf %87, %90 : vector<8x8xf32>
    %92 = arith.negf %91 : vector<8x8xf32>
    %93 = math.exp %92 : vector<8x8xf32>
    %cst_70 = arith.constant 1.000000e+00 : f32
    %94 = vector.broadcast %cst_70 : f32 to vector<8x8xf32>
    %95 = arith.addf %94, %93 : vector<8x8xf32>
    %96 = arith.divf %94, %95 : vector<8x8xf32>
    %97 = arith.mulf %96, %0 : vector<8x8xf32>
    %cst_71 = arith.constant dense<0.000000e+00> : vector<8x48xf32>
    %98 = tpu.matmul %97, %1, %cst_71 {dimension_numbers = #tpu.dot_dimension_numbers<[1], [0], [0], [1], [0, 0, 1, 1], [], []>} : vector<8x8xf32>, vector<8x48xf32>, vector<8x48xf32> -> vector<8x48xf32>
    %c3_72 = arith.constant 3 : index
    %c0_73 = arith.constant 0 : index
    %c0_74 = arith.constant 0 : index
    %99 = vector.load %arg9[%c3_72, %c0_73, %c0_74] : memref<4x48x64xf32, #tpu.memory_space<vmem>>, vector<1x48x64xf32>
    %100 = vector.shape_cast %99 : vector<1x48x64xf32> to vector<48x64xf32>
    %cst_75 = arith.constant dense<0.000000e+00> : vector<8x64xf32>
    %101 = tpu.matmul %98, %100, %cst_75 {dimension_numbers = #tpu.dot_dimension_numbers<[1], [0], [0], [1], [0, 0, 1, 1], [], []>} : vector<8x48xf32>, vector<48x64xf32>, vector<8x64xf32> -> vector<8x64xf32>
    %102 = arith.addf %78, %101 : vector<8x64xf32>
    %cst_76 = arith.constant 0.000000e+00 : f32
    %103 = vector.broadcast %cst_76 : f32 to vector<8x64xf32>
    %104 = arith.cmpf ogt, %102, %103 : vector<8x64xf32>
    %cst_77 = arith.constant 0.000000e+00 : f32
    %105 = vector.broadcast %cst_77 : f32 to vector<8x64xf32>
    %106 = arith.minimumf %102, %105 : vector<8x64xf32>
    %107 = math.exp %106 : vector<8x64xf32>
    %cst_78 = arith.constant 1.000000e+00 : f32
    %108 = vector.broadcast %cst_78 : f32 to vector<8x64xf32>
    %109 = arith.subf %107, %108 : vector<8x64xf32>
    %110 = arith.select %104, %102, %109 : vector<8x64xi1>, vector<8x64xf32>
    %c0_79 = arith.constant 0 : index
    %c0_80 = arith.constant 0 : index
    %111 = vector.load %arg11[%c0_79, %c0_80] : memref<8x64xf32, #tpu.memory_space<vmem>>, vector<8x64xf32>
    tpu.vector_store %arg11[%c0_79, %c0_80], %110 {strides = array<i32>} : memref<8x64xf32, #tpu.memory_space<vmem>>, vector<8x64xf32>,
    return
  }
  func.func @transform_0(%arg0: i32) -> (i32, i32) {
    %c0_i32 = arith.constant 0 : i32
    %c0_i32_0 = arith.constant 0 : i32
    return %arg0, %c0_i32 : i32, i32
  }
  func.func @transform_1(%arg0: i32) -> (i32, i32) {
    %c0_i32 = arith.constant 0 : i32
    %c0_i32_0 = arith.constant 0 : i32
    %c0_i32_1 = arith.constant 0 : i32
    return %c0_i32, %c0_i32_0 : i32, i32
  }
  func.func @transform_2(%arg0: i32) -> (i32, i32) {
    %c0_i32 = arith.constant 0 : i32
    %c0_i32_0 = arith.constant 0 : i32
    return %arg0, %c0_i32 : i32, i32
  }
  func.func @transform_3(%arg0: i32) -> (i32, i32) {
    %c0_i32 = arith.constant 0 : i32
    %c0_i32_0 = arith.constant 0 : i32
    %c0_i32_1 = arith.constant 0 : i32
    return %c0_i32, %c0_i32_0 : i32, i32
  }
  func.func @transform_4(%arg0: i32) -> (i32, i32) {
    %c0_i32 = arith.constant 0 : i32
    %c0_i32_0 = arith.constant 0 : i32
    return %arg0, %c0_i32 : i32, i32
  }
  func.func @transform_5(%arg0: i32) -> (i32, i32, i32) {
    %c0_i32 = arith.constant 0 : i32
    %c0_i32_0 = arith.constant 0 : i32
    %c0_i32_1 = arith.constant 0 : i32
    %c0_i32_2 = arith.constant 0 : i32
    return %c0_i32, %c0_i32_0, %c0_i32_1 : i32, i32, i32
  }
  func.func @transform_6(%arg0: i32) -> (i32, i32, i32) {
    %c0_i32 = arith.constant 0 : i32
    %c0_i32_0 = arith.constant 0 : i32
    %c0_i32_1 = arith.constant 0 : i32
    %c0_i32_2 = arith.constant 0 : i32
    return %c0_i32, %c0_i32_0, %c0_i32_1 : i32, i32, i32
  }
  func.func @transform_7(%arg0: i32) -> (i32, i32, i32) {
    %c0_i32 = arith.constant 0 : i32
    %c0_i32_0 = arith.constant 0 : i32
    %c0_i32_1 = arith.constant 0 : i32
    %c0_i32_2 = arith.constant 0 : i32
    return %c0_i32, %c0_i32_0, %c0_i32_1 : i32, i32, i32
  }
  func.func @transform_8(%arg0: i32) -> (i32, i32, i32) {
    %c0_i32 = arith.constant 0 : i32
    %c0_i32_0 = arith.constant 0 : i32
    %c0_i32_1 = arith.constant 0 : i32
    %c0_i32_2 = arith.constant 0 : i32
    return %c0_i32, %c0_i32_0, %c0_i32_1 : i32, i32, i32
  }
  func.func @transform_9(%arg0: i32) -> (i32, i32) {
    %c0_i32 = arith.constant 0 : i32
    %c0_i32_0 = arith.constant 0 : i32
    %c0_i32_1 = arith.constant 0 : i32
    return %c0_i32, %c0_i32_0 : i32, i32
  }
  func.func @transform_10(%arg0: i32) -> (i32, i32) {
    %c0_i32 = arith.constant 0 : i32
    %c0_i32_0 = arith.constant 0 : i32
    return %arg0, %c0_i32 : i32, i32
  }
}

module attributes {stable_mosaic.version = 11 : i64} {
  func.func @predictor_kernel(%arg0: memref<4x64xf32, #tpu.memory_space<vmem>>, %arg1: memref<4x64xf32, #tpu.memory_space<vmem>>, %arg2: memref<4x16xf32, #tpu.memory_space<vmem>>, %arg3: memref<4x16xf32, #tpu.memory_space<vmem>>, %arg4: memref<64x256xf32, #tpu.memory_space<vmem>>, %arg5: memref<64x256xf32, #tpu.memory_space<vmem>>, %arg6: memref<16x256xf32, #tpu.memory_space<vmem>>, %arg7: memref<16x256xf32, #tpu.memory_space<vmem>>, %arg8: memref<1x256xf32, #tpu.memory_space<vmem>>, %arg9: memref<256x1xf32, #tpu.memory_space<vmem>>, %arg10: memref<1x1xf32, #tpu.memory_space<vmem>>, %arg11: memref<4x1xf32, #tpu.memory_space<vmem>>) attributes {dimension_semantics = [], scalar_prefetch = 0 : i64, scratch_operands = 0 : i64, tpu.core_type = #tpu.core_type<tc>} {
    %c0 = arith.constant 0 : index
    %c0_0 = arith.constant 0 : index
    %0 = vector.load %arg0[%c0, %c0_0] : memref<4x64xf32, #tpu.memory_space<vmem>>, vector<4x64xf32>
    %c0_1 = arith.constant 0 : index
    %c0_2 = arith.constant 0 : index
    %1 = vector.load %arg4[%c0_1, %c0_2] : memref<64x256xf32, #tpu.memory_space<vmem>>, vector<64x256xf32>
    %cst = arith.constant dense<0.000000e+00> : vector<4x256xf32>
    %2 = tpu.matmul %0, %1, %cst {dimension_numbers = #tpu.dot_dimension_numbers<[1], [0], [0], [1], [0, 0, 1, 1], [], []>} : vector<4x64xf32>, vector<64x256xf32>, vector<4x256xf32> -> vector<4x256xf32>
    %c0_3 = arith.constant 0 : index
    %c0_4 = arith.constant 0 : index
    %3 = vector.load %arg1[%c0_3, %c0_4] : memref<4x64xf32, #tpu.memory_space<vmem>>, vector<4x64xf32>
    %c0_5 = arith.constant 0 : index
    %c0_6 = arith.constant 0 : index
    %4 = vector.load %arg5[%c0_5, %c0_6] : memref<64x256xf32, #tpu.memory_space<vmem>>, vector<64x256xf32>
    %cst_7 = arith.constant dense<0.000000e+00> : vector<4x256xf32>
    %5 = tpu.matmul %3, %4, %cst_7 {dimension_numbers = #tpu.dot_dimension_numbers<[1], [0], [0], [1], [0, 0, 1, 1], [], []>} : vector<4x64xf32>, vector<64x256xf32>, vector<4x256xf32> -> vector<4x256xf32>
    %6 = arith.addf %2, %5 : vector<4x256xf32>
    %c0_8 = arith.constant 0 : index
    %c0_9 = arith.constant 0 : index
    %7 = vector.load %arg2[%c0_8, %c0_9] : memref<4x16xf32, #tpu.memory_space<vmem>>, vector<4x16xf32>
    %c0_10 = arith.constant 0 : index
    %c0_11 = arith.constant 0 : index
    %8 = vector.load %arg6[%c0_10, %c0_11] : memref<16x256xf32, #tpu.memory_space<vmem>>, vector<16x256xf32>
    %cst_12 = arith.constant dense<0.000000e+00> : vector<4x256xf32>
    %9 = tpu.matmul %7, %8, %cst_12 {dimension_numbers = #tpu.dot_dimension_numbers<[1], [0], [0], [1], [0, 0, 1, 1], [], []>} : vector<4x16xf32>, vector<16x256xf32>, vector<4x256xf32> -> vector<4x256xf32>
    %10 = arith.addf %6, %9 : vector<4x256xf32>
    %c0_13 = arith.constant 0 : index
    %c0_14 = arith.constant 0 : index
    %11 = vector.load %arg3[%c0_13, %c0_14] : memref<4x16xf32, #tpu.memory_space<vmem>>, vector<4x16xf32>
    %c0_15 = arith.constant 0 : index
    %c0_16 = arith.constant 0 : index
    %12 = vector.load %arg7[%c0_15, %c0_16] : memref<16x256xf32, #tpu.memory_space<vmem>>, vector<16x256xf32>
    %cst_17 = arith.constant dense<0.000000e+00> : vector<4x256xf32>
    %13 = tpu.matmul %11, %12, %cst_17 {dimension_numbers = #tpu.dot_dimension_numbers<[1], [0], [0], [1], [0, 0, 1, 1], [], []>} : vector<4x16xf32>, vector<16x256xf32>, vector<4x256xf32> -> vector<4x256xf32>
    %14 = arith.addf %10, %13 : vector<4x256xf32>
    %c0_18 = arith.constant 0 : index
    %c0_19 = arith.constant 0 : index
    %15 = vector.load %arg8[%c0_18, %c0_19] : memref<1x256xf32, #tpu.memory_space<vmem>>, vector<1x256xf32>
    %16 = vector.broadcast %15 : vector<1x256xf32> to vector<4x256xf32>
    %17 = arith.addf %14, %16 : vector<4x256xf32>
    %cst_20 = arith.constant 0.000000e+00 : f32
    %18 = vector.broadcast %cst_20 : f32 to vector<4x256xf32>
    %19 = arith.maximumf %17, %18 : vector<4x256xf32>
    %c0_21 = arith.constant 0 : index
    %c0_22 = arith.constant 0 : index
    %20 = vector.load %arg9[%c0_21, %c0_22] : memref<256x1xf32, #tpu.memory_space<vmem>>, vector<256x1xf32>
    %cst_23 = arith.constant dense<0.000000e+00> : vector<4x1xf32>
    %21 = tpu.matmul %19, %20, %cst_23 {dimension_numbers = #tpu.dot_dimension_numbers<[1], [0], [0], [1], [0, 0, 1, 1], [], []>} : vector<4x256xf32>, vector<256x1xf32>, vector<4x1xf32> -> vector<4x1xf32>
    %c0_24 = arith.constant 0 : index
    %c0_25 = arith.constant 0 : index
    %22 = vector.load %arg10[%c0_24, %c0_25] : memref<1x1xf32, #tpu.memory_space<vmem>>, vector<1x1xf32>
    %23 = vector.broadcast %22 : vector<1x1xf32> to vector<4x1xf32>
    %24 = arith.addf %21, %23 : vector<4x1xf32>
    %25 = arith.negf %24 : vector<4x1xf32>
    %26 = math.exp %25 : vector<4x1xf32>
    %cst_26 = arith.constant 1.000000e+00 : f32
    %27 = vector.broadcast %cst_26 : f32 to vector<4x1xf32>
    %28 = arith.addf %27, %26 : vector<4x1xf32>
    %29 = arith.divf %27, %28 : vector<4x1xf32>
    %c0_27 = arith.constant 0 : index
    %c0_28 = arith.constant 0 : index
    %30 = vector.load %arg11[%c0_27, %c0_28] : memref<4x1xf32, #tpu.memory_space<vmem>>, vector<4x1xf32>
    tpu.vector_store %arg11[%c0_27, %c0_28], %29 {strides = array<i32>} : memref<4x1xf32, #tpu.memory_space<vmem>>, vector<4x1xf32>,
    return
  }
}

</mosaic_0001>

<bundles_post_ra>
// kernel: pass_model_forward.7
= control target key start
LH: loop header
LB: loop body
LE: loop exit
PB: predicated region body
PF: predicated region fallthrough
CT: control target
= control target key end

     0   :  { %v569_v3 = vmov 0.0   ;;  %vm228_vm0 = vcmask 130048   ;;  %vm74_vm1 = vcmask 523264   ;;  %vm517_vm2 = vcmask 3072   ;;  %s875_s5 = inlined_call_operand.vmem [shape: f32[64,256], index: 5, kind: input, shape index: {}]   ;;  %s876_s6 = inlined_call_operand.vmem [shape: f32[16,256], index: 6, kind: input, shape index: {}]   ;;  %s877_s2 = inlined_call_operand.vmem [shape: f32[4,16], index: 2, kind: input, shape index: {}]   ;;  %s878_s1 = inlined_call_operand.vmem [shape: f32[4,64], index: 1, kind: input, shape index: {}]   ;;  %s879_s4 = inlined_call_operand.vmem [shape: f32[64,256], index: 4, kind: input, shape index: {}]   ;;  %s880_s9 = inlined_call_operand.vmem [shape: f32[256,1], index: 9, kind: input, shape index: {}]   ;;  %s881_s0 = inlined_call_operand.vmem [shape: f32[4,64], index: 0, kind: input, shape index: {}]   ;;  %s882_s7 = inlined_call_operand.vmem [shape: f32[16,256], index: 7, kind: input, shape index: {}]   ;;  %s883_s3 = inlined_call_operand.vmem [shape: f32[4,16], index: 3, kind: input, shape index: {}]   ;;  %s884_s8 = inlined_call_operand.vmem [shape: f32[1,256], index: 8, kind: input, shape index: {}]   ;;  %s885_s10 = inlined_call_operand.<no memory space> [shape: f32[1,1], index: 10, kind: input, shape index: {}]   ;;  %s886_s11 = inlined_call_operand.vmem [shape: f32[4,1], index: 11, kind: output, shape index: {}]  }
   0x1   :  { %v73_v0 = vld [vmem:[%s875_s5 + $0x78] sm:$0xff]  ;;  %v72_v1 = vld [vmem:[%s875_s5 + $0x70] sm:$0xff]  ;;  %v71_v2 = vld [vmem:[%s875_s5 + $0x68] sm:$0xff]  ;;  %142 = vmatprep.mubr.f32.mxu1 %v569_v3  ;;  %296 = vmatprep.mubr.f32.mxu0 %v569_v3 }
   0x2   :  { %94 = vmatprep.subr.mxu1 %v73_v0  ;;  %v70_v4 = vld [vmem:[%s875_s5 + $0x60] sm:$0xff]  ;;  %v69_v5 = vld [vmem:[%s875_s5 + $0x58] sm:$0xff]  ;;  %v68_v6 = vld [vmem:[%s875_s5 + $0x50] sm:$0xff] }
   0x3   :  { %95 = vmatpush1.msra.mxu1 %v72_v1  ;;  %v67_v7 = vld [vmem:[%s875_s5 + $0x48] sm:$0xff]  ;;  %v66_v8 = vld [vmem:[%s875_s5 + $0x40] sm:$0xff]  ;;  %v65_v9 = vld [vmem:[%s875_s5 + $0x38] sm:$0xff] }
   0x4   :  { %96 = vmatprep.subr.mxu1 %v71_v2  ;;  %v64_v10 = vld [vmem:[%s875_s5 + $0x30] sm:$0xff]  ;;  %v63_v11 = vld [vmem:[%s875_s5 + $0x28] sm:$0xff]  ;;  %v62_v12 = vld [vmem:[%s875_s5 + $0x20] sm:$0xff] }
   0x5   :  { %97 = vmatpush1.msra.mxu1 %v70_v4  ;;  %v61_v13 = vld [vmem:[%s875_s5 + $0x18] sm:$0xff]  ;;  %v60_v15 = vld [vmem:[%s875_s5 + $0x10] sm:$0xff]  ;;  %v225_v17 = vld [vmem:[%s876_s6 + $0x8] sm:$0xff] }
   0x6   :  { %98 = vmatprep.subr.mxu1 %v69_v5  ;;  %v227_v14 = vld [vmem:[%s876_s6 + $0x18] sm:$0xff]  ;;  %v226_v16 = vld [vmem:[%s876_s6 + $0x10] sm:$0xff]  ;;  %v59_v18 = vld [vmem:[%s875_s5 + $0x8] sm:$0xff] }
   0x7   :  { %99 = vmatpush1.msra.mxu1 %v68_v6  ;;  %260 = vmatprep.subr.mxu0 %v227_v14  ;;  %v224_v19 = vld [vmem:[%s876_s6] sm:$0xff]  ;;  %v56_v23 = vld [vmem:[%s879_s4 + $0x78] sm:$0xff]  ;;  %v55_v25 = vld [vmem:[%s879_s4 + $0x70] sm:$0xff] }
   0x8   :  { %100 = vmatprep.subr.mxu1 %v67_v7  ;;  %261 = vmatpush1.msra.mxu0 %v226_v16  ;;  %v58_v20 = vld [vmem:[%s875_s5] sm:$0xff]  ;;  %v433_v24 = vld [vmem:[%s880_s9 + $0xf8] sm:$0xff]  ;;  %v54_v26 = vld [vmem:[%s879_s4 + $0x68] sm:$0xff] }
   0x9   :  { %101 = vmatpush1.msra.mxu1 %v66_v8  ;;  %262 = vmatprep.subr.mxu0 %v225_v17  ;;  %v223_v21 = vld [vmem:[%s877_s2] sm:$0xf]  ;;  %v417_v27 = vld [vmem:[%s880_s9 + $0x78] sm:$0xff]  ;;  %v51_v30 = vld [vmem:[%s879_s4 + $0x50] sm:$0xff] }
   0xa   :  { %102 = vmatprep.subr.mxu1 %v65_v9  ;;  %v57_v22 = vld [vmem:[%s878_s1] sm:$0xf]  ;;  %263 = vmatpush1.msra.mxu0 %v224_v19  ;;  %v52_v29 = vld [vmem:[%s879_s4 + $0x58] sm:$0xff]  ;;  %v50_v31 = vld [vmem:[%s879_s4 + $0x48] sm:$0xff] }
   0xb   :  { %103 = vmatpush1.msra.mxu1 %v64_v10  ;;  %525 = vmatmul.mubr.msk.f32.vlgmr.msra.gmra.mxu0 %vm228_vm0, %v223_v21  ;;  %v53_v28 = vld [vmem:[%s879_s4 + $0x60] sm:$0xff]  ;;  %v48_v33 = vld [vmem:[%s879_s4 + $0x38] sm:$0xff]  ;;  %v47_v34 = vld [vmem:[%s879_s4 + $0x30] sm:$0xff] }
   0xc   :  { %104 = vmatprep.subr.mxu1 %v63_v11  ;;  %529 = vmatprep.subr.mxu0 %v433_v24  ;;  %v49_v32 = vld [vmem:[%s879_s4 + $0x40] sm:$0xff]  ;;  %v46_v35 = vld [vmem:[%s879_s4 + $0x28] sm:$0xff]  ;;  %v44_v37 = vld [vmem:[%s879_s4 + $0x18] sm:$0xff] }
   0xd   :  { %105 = vmatpush1.msra.mxu1 %v62_v12  ;;  %530 = vmatpush3.msra.mxu0 %v417_v27  ;;  %v45_v36 = vld [vmem:[%s879_s4 + $0x20] sm:$0xff]  ;;  %v43_v38 = vld [vmem:[%s879_s4 + $0x10] sm:$0xff]  ;;  %v42_v39 = vld [vmem:[%s879_s4 + $0x8] sm:$0xff] }
   0xe   :  { %106 = vmatprep.subr.mxu1 %v61_v13  ;;  %v41_v40 = vld [vmem:[%s879_s4] sm:$0xff]  ;;  %v309_v42 = vld [vmem:[%s882_s7 + $0x18] sm:$0xff]  ;;  %v308_v43 = vld [vmem:[%s882_s7 + $0x10] sm:$0xff]  ;;  %v388_v13 = vlaneseq }
   0xf   :  { %107 = vmatpush1.msra.mxu1 %v60_v15  ;;  %v40_v41 = vld [vmem:[%s881_s0] sm:$0xf]  ;;  %v307_v44 = vld [vmem:[%s882_s7 + $0x8] sm:$0xff]  ;;  %v432_v47 = vld [vmem:[%s880_s9 + $0xf0] sm:$0xff] }
  0x10   :  { %108 = vmatprep.subr.mxu1 %v59_v18  ;;  %v306_v45 = vld [vmem:[%s882_s7] sm:$0xff]  ;;  %531 = vmatprep.subr.mxu0 %v432_v47  ;;  %v416_v48 = vld [vmem:[%s880_s9 + $0x70] sm:$0xff]  ;;  %v431_v49 = vld [vmem:[%s880_s9 + $0xe8] sm:$0xff]  ;;  %v389_v15 = vshrl.u32 %v388_v13, 7 }
  0x11   :  { %109 = vmatpush1.msra.mxu1 %v58_v20  ;;  %v305_v46 = vld [vmem:[%s883_s3] sm:$0xf]  ;;  %532 = vmatpush3.msra.mxu0 %v416_v48  ;;  %v415_v50 = vld [vmem:[%s880_s9 + $0x68] sm:$0xff]  ;;  %v429_v53 = vld [vmem:[%s880_s9 + $0xd8] sm:$0xff] }
  0x12   :  { %523 = vmatmul.mubr.msk.f32.vlgmr.msra.gmra.mxu1 %vm74_vm1, %v57_v22  ;;  %168 = vmatprep.subr.mxu1 %v56_v23  ;;  %v430_v51 = vld [vmem:[%s880_s9 + $0xe0] sm:$0xff]  ;;  %v413_v54 = vld [vmem:[%s880_s9 + $0x58] sm:$0xff]  ;;  %v428_v55 = vld [vmem:[%s880_s9 + $0xd0] sm:$0xff]  ;;  %v390_v19 = vsub.s32 0, %v389_v15  ;;  %v394_v22 = vsub.s32 1, %v389_v15 }
  0x13   :  { %169 = vmatpush1.msra.mxu1 %v55_v25  ;;  %216 = vmatprep.mubr.f32.mxu1 %v569_v3  ;;  %v414_v52 = vld [vmem:[%s880_s9 + $0x60] sm:$0xff]  ;;  %v412_v56 = vld [vmem:[%s880_s9 + $0x50] sm:$0xff]  ;;  %v427_v57 = vld [vmem:[%s880_s9 + $0xc8] sm:$0xff] }
  0x14   :  { %170 = vmatprep.subr.mxu1 %v54_v26  ;;  %533 = vmatprep.subr.mxu0 %v431_v49  ;;  %v411_v58 = vld [vmem:[%s880_s9 + $0x48] sm:$0xff]  ;;  %v426_v59 = vld [vmem:[%s880_s9 + $0xc0] sm:$0xff]  ;;  %v425_v61 = vld [vmem:[%s880_s9 + $0xb8] sm:$0xff] }
  0x15   :  { %171 = vmatpush1.msra.mxu1 %v53_v28  ;;  %534 = vmatpush3.msra.mxu0 %v415_v50  ;;  %v410_v60 = vld [vmem:[%s880_s9 + $0x40] sm:$0xff]  ;;  %v409_v62 = vld [vmem:[%s880_s9 + $0x38] sm:$0xff]  ;;  %v424_v63 = vld [vmem:[%s880_s9 + $0xb0] sm:$0xff] }
  0x16   :  { %172 = vmatprep.subr.mxu1 %v52_v29  ;;  %535 = vmatprep.subr.mxu0 %v430_v51  ;;  %v408_v0 = vld [vmem:[%s880_s9 + $0x30] sm:$0xff]  ;;  %v423_v1 = vld [vmem:[%s880_s9 + $0xa8] sm:$0xff]  ;;  %v406_v4 = vld [vmem:[%s880_s9 + $0x20] sm:$0xff] }
  0x17   :  { %173 = vmatpush1.msra.mxu1 %v51_v30  ;;  %536 = vmatpush3.msra.mxu0 %v414_v52  ;;  %v407_v2 = vld [vmem:[%s880_s9 + $0x28] sm:$0xff]  ;;  %v421_v5 = vld [vmem:[%s880_s9 + $0x98] sm:$0xff]  ;;  %v420_v7 = vld [vmem:[%s880_s9 + $0x90] sm:$0xff] }
  0x18   :  { %174 = vmatprep.subr.mxu1 %v50_v31  ;;  %537 = vmatprep.subr.mxu0 %v429_v53  ;;  %v405_v6 = vld [vmem:[%s880_s9 + $0x18] sm:$0xff]  ;;  %v404_v8 = vld [vmem:[%s880_s9 + $0x10] sm:$0xff]  ;;  %v419_v9 = vld [vmem:[%s880_s9 + $0x88] sm:$0xff] }
  0x19   :  { %175 = vmatpush1.msra.mxu1 %v49_v32  ;;  %538 = vmatpush3.msra.mxu0 %v413_v54  ;;  %v403_v10 = vld [vmem:[%s880_s9 + $0x8] sm:$0xff]  ;;  %v418_v11 = vld [vmem:[%s880_s9 + $0x80] sm:$0xff] }
  0x1a   :  { %176 = vmatprep.subr.mxu1 %v48_v33  ;;  %539 = vmatprep.subr.mxu0 %v428_v55  ;;  %v402_v12 = vld [vmem:[%s880_s9] sm:$0xff] }
  0x1b   :  { %177 = vmatpush1.msra.mxu1 %v47_v34  ;;  %540 = vmatpush3.msra.mxu0 %v412_v56  ;;  %v386_v21 = vld [vmem:[%s884_s8] sm:$0x3] }
  0x1c   :  { %178 = vmatprep.subr.mxu1 %v46_v35  ;;  %541 = vmatprep.subr.mxu0 %v427_v57  ;;  %v391_v28 = vrot.slane %v386_v21, %v390_v19  ;;  %v395_v31 = vrot.slane %v386_v21, %v394_v22 }
  0x1d   :  { %179 = vmatpush1.msra.mxu1 %v45_v36  ;;  %542 = vmatpush3.msra.mxu0 %v411_v58 }
  0x1e   :  { %180 = vmatprep.subr.mxu1 %v44_v37  ;;  %543 = vmatprep.subr.mxu0 %v426_v59 }
  0x1f   :  { %181 = vmatpush1.msra.mxu1 %v43_v38  ;;  %544 = vmatpush3.msra.mxu0 %v410_v60  ;;  %v16_v38 = vstv %s885_s10 }
  0x20   :  { %182 = vmatprep.subr.mxu1 %v42_v39  ;;  %545 = vmatprep.subr.mxu0 %v425_v61  ;;  %17 = vst [vmem:[#allocation2] sm:$0x1] %v16_v38 }
  0x21   :  { %183 = vmatpush1.msra.mxu1 %v41_v40  ;;  %546 = vmatpush3.msra.mxu0 %v409_v62 }
  0x22   :  { %524 = vmatmul.mubr.msk.f32.vlgmr.msra.gmra.mxu1 %vm74_vm1, %v40_v41  ;;  %341 = vmatprep.subr.mxu1 %v309_v42 }
  0x23   :  { %342 = vmatpush1.msra.mxu1 %v308_v43  ;;  %377 = vmatprep.mubr.f32.mxu1 %v569_v3  ;;  %v422_v3 = vld [vmem:[%s880_s9 + $0xa0] sm:$0xff] }
  0x24   :  { %343 = vmatprep.subr.mxu1 %v307_v44  ;;  %547 = vmatprep.subr.mxu0 %v424_v63 }
  0x25   :  { %344 = vmatpush1.msra.mxu1 %v306_v45  ;;  %548 = vmatpush3.msra.mxu0 %v408_v0 }
  0x26   :  { %526 = vmatmul.mubr.msk.f32.vlgmr.msra.gmra.mxu1 %vm228_vm0, %v305_v46  ;;  %549 = vmatprep.subr.mxu0 %v423_v1 }
  0x27   :  { %550 = vmatpush3.msra.mxu0 %v407_v2  ;;  %v527_v40 = vld [vmem:[#allocation2] ss:$0 sm:$0xff] }
  0x28   :  { %551 = vmatprep.subr.mxu0 %v422_v3 }
  0x29   :  { %552 = vmatpush3.msra.mxu0 %v406_v4 }
  0x2a   :  { %553 = vmatprep.subr.mxu0 %v421_v5 }
  0x2b   :  { %554 = vmatpush3.msra.mxu0 %v405_v6 }
  0x2c   :  { %555 = vmatprep.subr.mxu0 %v420_v7 }
  0x2d   :  { %556 = vmatpush3.msra.mxu0 %v404_v8 }
  0x2e   :  { %557 = vmatprep.subr.mxu0 %v419_v9 }
  0x2f   :  { %558 = vmatpush3.msra.mxu0 %v403_v10 }
  0x30   :  { %559 = vmatprep.subr.mxu0 %v418_v11 }
  0x31   :  { %560 = vmatpush3.msra.mxu0 %v402_v12 }
  0xcb   :  { %v298_v18 = vpop.f32.mrf.mxu0 }
  0xcd   :  { %v300_v26 = vpop.f32.mrf.mxu0 }
  0xd2   :  { %v144_v14 = vpop.f32.mrf.mxu1 }
  0xd4   :  { %v146_v16 = vpop.f32.mrf.mxu1 }
  0xe2   :  { %v218_v17 = vpop.f32.mrf.mxu1 }
  0xe3   :  { %v219_v20 = vadd.f32 %v218_v17, %v144_v14 }
  0xe4   :  { %v220_v23 = vpop.f32.mrf.mxu1 }
  0xe5   :  { %v303_v24 = vadd.f32 %v298_v18, %v219_v20  ;;  %v221_v25 = vadd.f32 %v220_v23, %v146_v16 }
  0xe6   :  { %v379_v27 = vpop.f32.mrf.mxu1 }
  0xe7   :  { %v304_v29 = vadd.f32 %v300_v26, %v221_v25  ;;  %v384_v30 = vadd.f32 %v379_v27, %v303_v24 }
  0xe8   :  { %v381_v32 = vpop.f32.mrf.mxu1 }
  0xe9   :  { %v385_v33 = vadd.f32 %v381_v32, %v304_v29  ;;  %v398_v34 = vadd.f32 %v391_v28, %v384_v30 }
  0xeb   :  { %v399_v35 = vadd.f32 %v395_v31, %v385_v33  ;;  %v400_v37 = vmax.f32 %v398_v34, 0.0 }
  0xed   :  { %v401_v36 = vmax.f32 %v399_v35, 0.0 }
  0xef   :  { %505 = vmatprep.mubr.f32.mxu0 %v401_v36 }
  0xf0   :  { %506 = vmatmul.mubr.f32.vlgmr.msra.gmra.mxu0 %v400_v37 }
 0x1b0   :  { %v561_v39 = vpop.f32.mrf.mxu0 }
 0x1b2   :  { %v562_v41 = vpop.f32.mrf.mxu0 }
 0x1b3   :  { %v563_v42 = vadd.f32 %v562_v41, %v561_v39 }
 0x1b5   :  { %v508_v43 = vadd.f32 %v563_v42, %v527_v40 }
 0x1b7   :  { %v528_v44 = vmul.f32 -1.442695, %v508_v43 }
 0x1b9   :  { %565 = vpow2.f32 %v528_v44 }
 0x1c6   :  { %v566_v45 = vpop.eup %565 }
 0x1c7   :  { %v514_v46 = vadd.f32 1.0, %v566_v45 }
 0x1c9   :  { %567 = vrcp.f32 %v514_v46 }
 0x1d6   :  { %v568_v47 = vpop.eup %567 }
 0x1d7   :  { %518 = vst.msk [vmem:[%s886_s11] sm:$0xf] %vm517_vm2, %v568_v47 }

// kernel: pass_model_forward.6
= control target key start
LH: loop header
LB: loop body
LE: loop exit
PB: predicated region body
PF: predicated region fallthrough
CT: control target
= control target key end

     0   :  { %v556_v0 = vmov 0.0   ;;  %vm557_vm0 = vmmov 0   ;;  %vm37_vm1 = vcmask 523264   ;;  %v558_v5 = vmov 0   ;;  %s732_s4 = inlined_call_operand.vmem [shape: f32[64,1], index: 4, kind: input, shape index: {}]   ;;  %s733_s1 = inlined_call_operand.vmem [shape: f32[8,64], index: 1, kind: input, shape index: {}, may-alias: {1,2}]   ;;  %s734_s3 = inlined_call_operand.vmem [shape: f32[1,64], index: 3, kind: input, shape index: {}]   ;;  %s735_s2 = inlined_call_operand.vmem [shape: f32[8,64], index: 2, kind: input, shape index: {}, may-alias: {1,2}]   ;;  %s736_s5 = inlined_call_operand.vmem [shape: f32[64,64], index: 5, kind: input, shape index: {}]   ;;  %s737_s0 = inlined_call_operand.vmem [shape: f32[8,8], index: 0, kind: input, shape index: {}]   ;;  %s738_s6 = inlined_call_operand.vmem [shape: f32[64,64], index: 6, kind: input, shape index: {}]   ;;  %s739_s7 = inlined_call_operand.vmem [shape: f32[8,64], index: 7, kind: output, shape index: {}]  }
   0x1   :  { %481 = vmatprep.subr.mxu0 %v556_v0  ;;  %v36_v1 = vld [vmem:[%s732_s4 + $0x38] sm:$0xff]  ;;  %v35_v2 = vld [vmem:[%s732_s4 + $0x30] sm:$0xff]  ;;  %497 = vmatprep.mubr.msk.f32.mxu0 %vm557_vm0, %v556_v0  ;;  %v34_v3 = vld [vmem:[%s732_s4 + $0x28] sm:$0xff]  ;;  %v193_v24 = vlaneseq  ;;  %vm205_vm2 = vcmask 64512  }
   0x2   :  { %482 = vmatpush3.msra.mxu0 %v36_v1  ;;  %500 = vmatprep.subr.mxu1 %v556_v0  ;;  %v27_v4 = vld [vmem:[%s733_s1] sm:$0xff]  ;;  %v32_v8 = vld [vmem:[%s732_s4 + $0x18] sm:$0xff]  ;;  %v31_v9 = vld [vmem:[%s732_s4 + $0x10] sm:$0xff] }
   0x3   :  { %483 = vmatprep.subr.mxu0 %v556_v0  ;;  %502 = vmatprep.mubr.msk.f32.mxu1 %vm557_vm0, %v556_v0  ;;  %v33_v6 = vld [vmem:[%s732_s4 + $0x20] sm:$0xff]  ;;  %v30_v10 = vld [vmem:[%s732_s4 + $0x8] sm:$0xff]  ;;  %v286_v17 = vld [vmem:[%s736_s5 + $0x38] sm:$0xff]  ;;  %v194_v25 = vshrl.u32 %v193_v24, 7 }
   0x4   :  { %484 = vmatpush3.msra.mxu0 %v35_v2  ;;  %551 = vset.pattern.permute.xlu0 %v558_v5  ;;  %v111_v7 = vld [vmem:[%s734_s3] sm:$0x1]  ;;  %v285_v18 = vld [vmem:[%s736_s5 + $0x30] sm:$0xff]  ;;  %v284_v19 = vld [vmem:[%s736_s5 + $0x28] sm:$0xff] }
   0x5   :  { %485 = vmatprep.subr.mxu0 %v556_v0  ;;  %501 = vmatpush3.xpose.msk.msra.mxu1 %vm37_vm1, %v27_v4  ;;  %v29_v11 = vld [vmem:[%s732_s4] sm:$0xff]  ;;  %v282_v21 = vld [vmem:[%s736_s5 + $0x18] sm:$0xff]  ;;  %v281_v22 = vld [vmem:[%s736_s5 + $0x10] sm:$0xff]  ;;  %v195_v26 = vsub.s32 0, %v194_v25 }
   0x6   :  { %486 = vmatpush3.msra.mxu0 %v34_v3  ;;  %505 = vmatprep.subr.mxu1 %v556_v0  ;;  %v650_v12 = vld [vmem:[%s735_s2] sm:$0xff]  ;;  %v280_v23 = vld [vmem:[%s736_s5 + $0x8] sm:$0xff]  ;;  %v294_v36 = vld [vmem:[%s738_s6 + $0x38] sm:$0xff] }
   0x7   :  { %487 = vmatprep.subr.mxu0 %v556_v0  ;;  %v283_v20 = vld [vmem:[%s736_s5 + $0x20] sm:$0xff]  ;;  %v293_v37 = vld [vmem:[%s738_s6 + $0x30] sm:$0xff]  ;;  %v292_v38 = vld [vmem:[%s738_s6 + $0x28] sm:$0xff] }
   0x8   :  { %488 = vmatpush3.msra.mxu0 %v33_v6  ;;  %503 = vmatmul.mubr.msk.f32.vlgmr.msra.gmra.mxu1 %vm37_vm1, %v111_v7  ;;  %v26_v33 = vld [vmem:[%s737_s0] sm:$0xff]  ;;  %v290_v40 = vld [vmem:[%s738_s6 + $0x18] sm:$0xff]  ;;  %v289_v41 = vld [vmem:[%s738_s6 + $0x10] sm:$0xff] }
   0x9   :  { %489 = vmatprep.subr.mxu0 %v556_v0  ;;  %506 = vmatpush3.msra.mxu1 %v27_v4  ;;  %v291_v39 = vld [vmem:[%s738_s6 + $0x20] sm:$0xff]  ;;  %v288_v42 = vld [vmem:[%s738_s6 + $0x8] sm:$0xff] }
   0xa   :  { %490 = vmatpush3.msra.mxu0 %v32_v8  ;;  %507 = vmatprep.mubr.msk.f32.mxu1 %vm557_vm0, %v556_v0  ;;  %v287_v43 = vld [vmem:[%s738_s6] sm:$0xff] }
   0xb   :  { %491 = vmatprep.subr.mxu0 %v556_v0  ;;  %510 = vmatprep.subr.mxu1 %v556_v0  ;;  %v279_v44 = vld [vmem:[%s736_s5] sm:$0xff] }
   0xc   :  { %492 = vmatpush3.msra.mxu0 %v31_v9 }
   0xd   :  { %493 = vmatprep.subr.mxu0 %v556_v0 }
   0xe   :  { %494 = vmatpush3.msra.mxu0 %v30_v10 }
   0xf   :  { %495 = vmatprep.subr.mxu0 %v556_v0 }
  0x10   :  { %496 = vmatpush3.msra.mxu0 %v29_v11 }
  0x11   :  { %498 = vmatmul.mubr.msk.f32.vlgmr.msra.gmra.mxu0 %vm37_vm1, %v650_v12  ;;  %529 = vmatprep.subr.mxu0 %v556_v0 }
  0x12   :  { %545 = vmatprep.mubr.msk.f32.mxu0 %vm557_vm0, %v556_v0  ;;  %530 = vmatpush3.msra.mxu0 %v286_v17 }
  0x13   :  { %531 = vmatprep.subr.mxu0 %v556_v0 }
  0x14   :  { %532 = vmatpush3.msra.mxu0 %v285_v18 }
  0x15   :  { %533 = vmatprep.subr.mxu0 %v556_v0 }
  0x16   :  { %534 = vmatpush3.msra.mxu0 %v284_v19 }
  0x17   :  { %535 = vmatprep.subr.mxu0 %v556_v0 }
  0x18   :  { %536 = vmatpush3.msra.mxu0 %v283_v20 }
  0x19   :  { %537 = vmatprep.subr.mxu0 %v556_v0 }
  0x1a   :  { %538 = vmatpush3.msra.mxu0 %v282_v21 }
  0x1b   :  { %539 = vmatprep.subr.mxu0 %v556_v0 }
  0x1c   :  { %540 = vmatpush3.msra.mxu0 %v281_v22 }
  0x1d   :  { %541 = vmatprep.subr.mxu0 %v556_v0 }
  0x1e   :  { %542 = vmatpush3.msra.mxu0 %v280_v23 }
  0x1f   :  { %543 = vmatprep.subr.mxu0 %v556_v0 }
  0x20   :  { %544 = vmatpush3.msra.mxu0 %v279_v44 }
  0xc8   :  { %v184_v13 = vpop.f32.mrf.mxu1 }
  0xc9   :  { %v196_v27 = vrot.slane %v184_v13, %v195_v26 }
  0xca   :  { %v504_v14 = vpop.f32.mrf.mxu1 }
  0xd1   :  { %v107_v15 = vpop.f32.mrf.mxu0 }
  0xd2   :  { %190 = vperm.xlu0 %551, %v107_v15  }
  0xd3   :  { %v499_v16 = vpop.f32.mrf.mxu0 }
 0x14d   :  { %v191_v28 = vpop.permute.xlu0 %190 }
 0x14e   :  { %v197_v29 = vadd.f32 %v196_v27, %v191_v28 }
 0x150   :  { %v446_v30 = vmul.f32 -1.442695, %v197_v29 }
 0x152   :  { %552 = vpow2.f32 %v446_v30 }
 0x15f   :  { %v553_v31 = vpop.eup %552 }
 0x160   :  { %v201_v32 = vadd.f32 1.0, %v553_v31 }
 0x162   :  { %554 = vrcp.f32 %v201_v32 }
 0x16f   :  { %v555_v34 = vpop.eup %554 }
 0x170   :  { %v204_v35 = vmul.f32 %v555_v34, %v26_v33 }
 0x172   :  { %508 = vmatmul.mubr.msk.f32.vlgmr.msra.gmra.mxu1 %vm205_vm2, %v204_v35 }
 0x173   :  { %511 = vmatpush3.msra.mxu1 %v294_v36  ;;  %526 = vmatprep.mubr.msk.f32.mxu1 %vm557_vm0, %v556_v0 }
 0x174   :  { %512 = vmatprep.subr.mxu1 %v556_v0 }
 0x175   :  { %513 = vmatpush3.msra.mxu1 %v293_v37 }
 0x176   :  { %514 = vmatprep.subr.mxu1 %v556_v0 }
 0x177   :  { %515 = vmatpush3.msra.mxu1 %v292_v38 }
 0x178   :  { %516 = vmatprep.subr.mxu1 %v556_v0 }
 0x179   :  { %517 = vmatpush3.msra.mxu1 %v291_v39 }
 0x17a   :  { %518 = vmatprep.subr.mxu1 %v556_v0 }
 0x17b   :  { %519 = vmatpush3.msra.mxu1 %v290_v40 }
 0x17c   :  { %520 = vmatprep.subr.mxu1 %v556_v0 }
 0x17d   :  { %521 = vmatpush3.msra.mxu1 %v289_v41 }
 0x17e   :  { %522 = vmatprep.subr.mxu1 %v556_v0 }
 0x17f   :  { %523 = vmatpush3.msra.mxu1 %v288_v42 }
 0x180   :  { %524 = vmatprep.subr.mxu1 %v556_v0 }
 0x181   :  { %525 = vmatpush3.msra.mxu1 %v287_v43 }
 0x182   :  { %527 = vmatmul.mubr.msk.f32.vlgmr.msra.gmra.mxu1 %vm37_vm1, %v650_v12 }
 0x232   :  { %v275_v45 = vpop.f32.mrf.mxu1 }
 0x233   :  { %546 = vmatmul.mubr.msk.f32.vlgmr.msra.gmra.mxu0 %vm37_vm1, %v275_v45 }
 0x234   :  { %v509_v46 = vpop.f32.mrf.mxu1 }
 0x242   :  { %v361_v47 = vpop.f32.mrf.mxu1 }
 0x244   :  { %v528_v48 = vpop.f32.mrf.mxu1 }
 0x2f3   :  { %v434_v49 = vpop.f32.mrf.mxu0 }
 0x2f4   :  { %v435_v50 = vadd.f32 %v434_v49, %v361_v47 }
 0x2f5   :  { %v547_v51 = vpop.f32.mrf.mxu0 }
 0x2f6   :  { %438 = vst.msk [vmem:[%s739_s7] sm:$0xff] %vm37_vm1, %v435_v50 }

// kernel: pass_model_forward.5
= control target key start
LH: loop header
LB: loop body
LE: loop exit
PB: predicated region body
PF: predicated region fallthrough
CT: control target
= control target key end

     0   :  { %v1748_v0 = vmov 0.0   ;;  %vm1749_vm0 = vmmov 0   ;;  %vm48_vm1 = vcmask 130048   ;;  %v1750_v4 = vmov 0   ;;  %s2099_s6 = inlined_call_operand.vmem [shape: f32[4,16,1], index: 6, kind: input, shape index: {}]   ;;  %s2100_s4 = inlined_call_operand.vmem [shape: f32[8,16], index: 4, kind: input, shape index: {}, may-alias: {3,4}]   ;;  %s2101_s3 = inlined_call_operand.vmem [shape: f32[8,16], index: 3, kind: input, shape index: {}, may-alias: {3,4}]   ;;  %s2102_s5 = inlined_call_operand.vmem [shape: f32[4,1,16], index: 5, kind: input, shape index: {}]   ;;  %s2103_s7 = inlined_call_operand.vmem [shape: f32[4,1,1], index: 7, kind: input, shape index: {}]   ;;  %s2104_s1 = inlined_call_operand.vmem [shape: f32[8,48], index: 1, kind: input, shape index: {}, may-alias: {1,2}]   ;;  %s2105_s8 = inlined_call_operand.vmem [shape: f32[4,48,64], index: 8, kind: input, shape index: {}]   ;;  %s2106_s0 = inlined_call_operand.vmem [shape: f32[8,8], index: 0, kind: input, shape index: {}]   ;;  %s2107_s9 = inlined_call_operand.vmem [shape: f32[48,64], index: 9, kind: input, shape index: {}]   ;;  %s2108_s2 = inlined_call_operand.vmem [shape: f32[8,48], index: 2, kind: input, shape index: {}, may-alias: {1,2}]   ;;  %s2109_s10 = inlined_call_operand.vmem [shape: f32[8,64], index: 10, kind: output, shape index: {}]  }
   0x1   :  { %1582 = vmatprep.subr.mxu1 %v1748_v0  ;;  %v47_v1 = vld [vmem:[%s2099_s6 + $0x8] sm:$0xff]  ;;  %v46_v2 = vld [vmem:[%s2099_s6] sm:$0xff]  ;;  %1586 = vmatprep.mubr.msk.f32.mxu1 %vm1749_vm0, %v1748_v0  ;;  %v304_v15 = vld [vmem:[%s2105_s8 + $0x18] sm:$0xff]  ;;  %v204_v19 = vlaneseq  ;;  %vm227_vm2 = vcmask 64512   ;;  %vm307_vm3 = vcmask 392192   ;;  %vm1453_vm4 = vcmask 523264  }
   0x2   :  { %1583 = vmatpush3.msra.mxu1 %v47_v1  ;;  %v1818_v3 = vld [vmem:[%s2100_s4] sm:$0xff]  ;;  %1728 = vset.pattern.permute.xlu0 %v1750_v4  ;;  %v306_v13 = vld [vmem:[%s2105_s8 + $0x28] sm:$0xff]  ;;  %v303_v16 = vld [vmem:[%s2105_s8 + $0x10] sm:$0xff] }
   0x3   :  { %1584 = vmatprep.subr.mxu1 %v1748_v0  ;;  %v1824_v5 = vld [vmem:[%s2101_s3] sm:$0xff]  ;;  %1594 = vmatprep.subr.mxu0 %v1748_v0  ;;  %v302_v17 = vld [vmem:[%s2105_s8 + $0x8] sm:$0xff]  ;;  %v205_v20 = vshrl.u32 %v204_v19, 7  ;;  %v43_v35 = vld [vmem:[%s2107_s9 + $0x18] sm:$0xff] }
   0x4   :  { %1585 = vmatpush3.msra.mxu1 %v46_v2  ;;  %1596 = vmatprep.mubr.msk.f32.mxu0 %vm1749_vm0, %v1748_v0  ;;  %v122_v6 = vld [vmem:[%s2102_s5] sm:$0x1]  ;;  %v45_v33 = vld [vmem:[%s2107_s9 + $0x28] sm:$0xff]  ;;  %v42_v36 = vld [vmem:[%s2107_s9 + $0x10] sm:$0xff] }
   0x5   :  { %1587 = vmatmul.mubr.msk.f32.vlgmr.msra.gmra.mxu1 %vm48_vm1, %v1818_v3  ;;  %1589 = vmatprep.subr.mxu1 %v1748_v0  ;;  %v1462_v9 = vld [vmem:[%s2103_s7] ss:$0 sm:$0xff]  ;;  %v1877_v21 = vsub.s32 0, %v205_v20  ;;  %v41_v37 = vld [vmem:[%s2107_s9 + $0x8] sm:$0xff]  ;;  %v1470_v40 = vld [vmem:[%s2102_s5 + $0x1] sm:$0x1] }
   0x6   :  { %1590 = vmatpush3.xpose.msk.msra.mxu1 %vm48_vm1, %v1824_v5  ;;  %1591 = vmatprep.mubr.msk.f32.mxu1 %vm1749_vm0, %v1748_v0  ;;  %v1849_v12 = vld [vmem:[%s2104_s1] sm:$0xff]  ;;  %v1468_v41 = vld [vmem:[%s2099_s6 + $0x18] sm:$0xff]  ;;  %v1467_v43 = vld [vmem:[%s2099_s6 + $0x10] sm:$0xff] }
   0x7   :  { %1599 = vmatprep.subr.mxu1 %v1748_v0  ;;  %1729 = vset.pattern.permute.xlu1 %v1750_v4  ;;  %v305_v14 = vld [vmem:[%s2105_s8 + $0x20] sm:$0xff]  ;;  %v1482_v56 = vld [vmem:[%s2105_s8 + $0x58] sm:$0xff]  ;;  %v1481_v57 = vld [vmem:[%s2105_s8 + $0x50] sm:$0xff] }
   0x8   :  { %1595 = vmatpush3.msra.mxu0 %v1849_v12  ;;  %v301_v18 = vld [vmem:[%s2105_s8] sm:$0xff]  ;;  %v1480_v58 = vld [vmem:[%s2105_s8 + $0x48] sm:$0xff]  ;;  %v1478_v60 = vld [vmem:[%s2105_s8 + $0x38] sm:$0xff] }
   0x9   :  { %1592 = vmatmul.mubr.msk.f32.vlgmr.msra.gmra.mxu1 %vm48_vm1, %v122_v6  ;;  %1614 = vmatprep.subr.mxu0 %v1748_v0  ;;  %v1883_v30 = vld [vmem:[%s2106_s0] sm:$0xff] }
   0xa   :  { %1611 = vmatprep.mubr.msk.f32.mxu1 %vm1749_vm0, %v1748_v0  ;;  %1600 = vmatpush3.msra.mxu1 %v306_v13  ;;  %v44_v34 = vld [vmem:[%s2107_s9 + $0x20] sm:$0xff] }
   0xb   :  { %1601 = vmatprep.subr.mxu1 %v1748_v0  ;;  %v40_v38 = vld [vmem:[%s2107_s9] sm:$0xff] }
   0xc   :  { %1602 = vmatpush3.msra.mxu1 %v305_v14  ;;  %v37_v39 = vld [vmem:[%s2108_s2] sm:$0xff]  ;;  %v1477_v14 = vld [vmem:[%s2105_s8 + $0x30] sm:$0xff] }
   0xd   :  { %1603 = vmatprep.subr.mxu1 %v1748_v0  ;;  %v1474_v53 = vld [vmem:[%s2103_s7 + $0x1] ss:$0 sm:$0xff]  ;;  %v1491_v54 = vld [vmem:[%s2103_s7 + $0x2] ss:$0 sm:$0xff]  ;;  %v1508_v55 = vld [vmem:[%s2103_s7 + $0x3] ss:$0 sm:$0xff] }
   0xe   :  { %1604 = vmatpush3.msra.mxu1 %v304_v15  ;;  %v1479_v59 = vld [vmem:[%s2105_s8 + $0x40] sm:$0xff] }
   0xf   :  { %1605 = vmatprep.subr.mxu1 %v1748_v0  ;;  %v1487_v13 = vld [vmem:[%s2102_s5 + $0x2] sm:$0x1] }
  0x10   :  { %1606 = vmatpush3.msra.mxu1 %v303_v16 }
  0x11   :  { %1607 = vmatprep.subr.mxu1 %v1748_v0 }
  0x12   :  { %1608 = vmatpush3.msra.mxu1 %v302_v17 }
  0x13   :  { %1609 = vmatprep.subr.mxu1 %v1748_v0 }
  0x14   :  { %1610 = vmatpush3.msra.mxu1 %v301_v18 }
  0x15   :  { %1629 = vmatprep.subr.mxu1 %v1748_v0 }
  0xc5   :  { %v118_v7 = vpop.f32.mrf.mxu1 }
  0xc6   :  { %201 = vperm.xlu0 %1728, %v118_v7  }
  0xc7   :  { %v1588_v8 = vpop.f32.mrf.mxu1 }
  0xc9   :  { %v195_v10 = vpop.f32.mrf.mxu1 }
  0xca   :  { %216 = vperm.xlu0 %1728, %v1462_v9   ;;  %v207_v22 = vrot.slane %v195_v10, %v1877_v21  ;;  %v1485_v10 = vld [vmem:[%s2099_s6 + $0x28] sm:$0xff] }
  0xcb   :  { %v1593_v11 = vpop.f32.mrf.mxu1 }
  0xcc   :  { %v1484_v11 = vld [vmem:[%s2099_s6 + $0x20] sm:$0xff] }
 0x141   :  { %v202_v23 = vpop.permute.xlu0 %201 }
 0x142   :  { %v208_v24 = vadd.f32 %v207_v22, %v202_v23  ;;  %v1499_v22 = vld [vmem:[%s2105_s8 + $0x88] sm:$0xff]  ;;  %v1498_v23 = vld [vmem:[%s2105_s8 + $0x80] sm:$0xff] }
 0x145   :  { %v217_v25 = vpop.permute.xlu0 %216 }
 0x146   :  { %v219_v26 = vadd.f32 %v217_v25, %v208_v24  ;;  %v1497_v24 = vld [vmem:[%s2105_s8 + $0x78] sm:$0xff]  ;;  %v1496_v25 = vld [vmem:[%s2105_s8 + $0x70] sm:$0xff] }
 0x148   :  { %v1463_v27 = vmul.f32 -1.442695, %v219_v26  ;;  %v1495_v26 = vld [vmem:[%s2105_s8 + $0x68] sm:$0xff] }
 0x14a   :  { %1730 = vpow2.f32 %v1463_v27 }
 0x157   :  { %v1731_v28 = vpop.eup %1730 }
 0x158   :  { %v223_v29 = vadd.f32 1.0, %v1731_v28 }
 0x15a   :  { %1732 = vrcp.f32 %v223_v29 }
 0x167   :  { %v1733_v31 = vpop.eup %1732 }
 0x168   :  { %v226_v32 = vmul.f32 %v1733_v31, %v1883_v30 }
 0x16a   :  { %1597 = vmatmul.mubr.msk.f32.vlgmr.msra.gmra.mxu0 %vm227_vm2, %v226_v32 }
 0x16b   :  { %1615 = vmatpush3.msra.mxu0 %v45_v33  ;;  %1626 = vmatprep.mubr.msk.f32.mxu0 %vm1749_vm0, %v1748_v0 }
 0x16c   :  { %1616 = vmatprep.subr.mxu0 %v1748_v0 }
 0x16d   :  { %1617 = vmatpush3.msra.mxu0 %v44_v34 }
 0x16e   :  { %1618 = vmatprep.subr.mxu0 %v1748_v0 }
 0x16f   :  { %1619 = vmatpush3.msra.mxu0 %v43_v35 }
 0x170   :  { %1620 = vmatprep.subr.mxu0 %v1748_v0 }
 0x171   :  { %1621 = vmatpush3.msra.mxu0 %v42_v36 }
 0x172   :  { %1622 = vmatprep.subr.mxu0 %v1748_v0 }
 0x173   :  { %1623 = vmatpush3.msra.mxu0 %v41_v37 }
 0x174   :  { %1624 = vmatprep.subr.mxu0 %v1748_v0 }
 0x175   :  { %1625 = vmatpush3.msra.mxu0 %v40_v38  ;;  %v1502_v38 = vld [vmem:[%s2099_s6 + $0x38] sm:$0xff] }
 0x176   :  { %1627 = vmatmul.mubr.msk.f32.vlgmr.msra.gmra.mxu0 %vm307_vm3, %v37_v39  ;;  %1636 = vmatprep.subr.mxu0 %v1748_v0  ;;  %v1501_v39 = vld [vmem:[%s2099_s6 + $0x30] sm:$0xff] }
 0x177   :  { %1637 = vmatpush3.xpose.msk.msra.mxu0 %vm48_vm1, %v1824_v5  ;;  %1638 = vmatprep.mubr.msk.f32.mxu0 %vm1749_vm0, %v1748_v0 }
 0x178   :  { %1646 = vmatprep.subr.mxu0 %v1748_v0 }
 0x17a   :  { %1639 = vmatmul.mubr.msk.f32.vlgmr.msra.gmra.mxu0 %vm48_vm1, %v1470_v40  ;;  %v1504_v40 = vld [vmem:[%s2102_s5 + $0x3] sm:$0x1] }
 0x17b   :  { %1658 = vmatprep.mubr.msk.f32.mxu0 %vm1749_vm0, %v1748_v0  ;;  %1647 = vmatpush3.msra.mxu0 %v1482_v56 }
 0x17c   :  { %1648 = vmatprep.subr.mxu0 %v1748_v0 }
 0x17d   :  { %1649 = vmatpush3.msra.mxu0 %v1481_v57 }
 0x17e   :  { %1650 = vmatprep.subr.mxu0 %v1748_v0 }
 0x17f   :  { %1651 = vmatpush3.msra.mxu0 %v1480_v58 }
 0x180   :  { %1652 = vmatprep.subr.mxu0 %v1748_v0 }
 0x181   :  { %1653 = vmatpush3.msra.mxu0 %v1479_v59 }
 0x182   :  { %1654 = vmatprep.subr.mxu0 %v1748_v0 }
 0x183   :  { %1655 = vmatpush3.msra.mxu0 %v1478_v60 }
 0x184   :  { %1656 = vmatprep.subr.mxu0 %v1748_v0 }
 0x185   :  { %1657 = vmatpush3.msra.mxu0 %v1477_v14 }
 0x186   :  { %1678 = vmatprep.subr.mxu0 %v1748_v0 }
 0x22a   :  { %v297_v42 = vpop.f32.mrf.mxu0 }
 0x22b   :  { %1612 = vmatmul.mubr.msk.f32.vlgmr.msra.gmra.mxu1 %vm307_vm3, %v297_v42 }
 0x22c   :  { %1630 = vmatpush3.msra.mxu1 %v1468_v41  ;;  %v1598_v44 = vpop.f32.mrf.mxu0  ;;  %1633 = vmatprep.mubr.msk.f32.mxu1 %vm1749_vm0, %v1748_v0 }
 0x22d   :  { %1631 = vmatprep.subr.mxu1 %v1748_v0 }
 0x22e   :  { %1632 = vmatpush3.msra.mxu1 %v1467_v43  ;;  %v1494_v43 = vld [vmem:[%s2105_s8 + $0x60] sm:$0xff] }
 0x22f   :  { %1634 = vmatmul.mubr.msk.f32.vlgmr.msra.gmra.mxu1 %vm48_vm1, %v1818_v3  ;;  %1641 = vmatprep.subr.mxu1 %v1748_v0 }
 0x230   :  { %1642 = vmatpush3.msra.mxu1 %v1849_v12  ;;  %1643 = vmatprep.mubr.msk.f32.mxu1 %vm1749_vm0, %v1748_v0 }
 0x231   :  { %1661 = vmatprep.subr.mxu1 %v1748_v0 }
 0x236   :  { %v1945_v45 = vpop.f32.mrf.mxu0 }
 0x238   :  { %v1628_v46 = vpop.f32.mrf.mxu0 }
 0x23a   :  { %v598_v47 = vpop.f32.mrf.mxu0 }
 0x23b   :  { %v610_v61 = vrot.slane %v598_v47, %v1877_v21 }
 0x23c   :  { %v1640_v48 = vpop.f32.mrf.mxu0 }
 0x2eb   :  { %v1947_v49 = vpop.f32.mrf.mxu1 }
 0x2ed   :  { %v1613_v50 = vpop.f32.mrf.mxu1 }
 0x2ee   :  { %v1515_v50 = vld [vmem:[%s2105_s8 + $0xb0] sm:$0xff] }
 0x2ef   :  { %v523_v51 = vpop.f32.mrf.mxu1 }
 0x2f0   :  { %604 = vperm.xlu1 %1729, %v523_v51   ;;  %v1514_v51 = vld [vmem:[%s2105_s8 + $0xa8] sm:$0xff] }
 0x2f1   :  { %v1635_v52 = vpop.f32.mrf.mxu1 }
 0x2f2   :  { %v1513_v52 = vld [vmem:[%s2105_s8 + $0xa0] sm:$0xff] }
 0x2f4   :  { %620 = vperm.xlu1 %1729, %v1474_v53   ;;  %v1512_v53 = vld [vmem:[%s2105_s8 + $0x98] sm:$0xff] }
 0x2f8   :  { %951 = vperm.xlu1 %1729, %v1491_v54  }
 0x2fc   :  { %1282 = vperm.xlu1 %1729, %v1508_v55  }
 0x36b   :  { %v605_v62 = vpop.permute.xlu1 %604 }
 0x36c   :  { %v611_v63 = vadd.f32 %v610_v61, %v605_v62 }
 0x36f   :  { %v621_v1 = vpop.permute.xlu1 %620 }
 0x370   :  { %v623_v2 = vadd.f32 %v621_v1, %v611_v63 }
 0x372   :  { %v1475_v4 = vmul.f32 -1.442695, %v623_v2 }
 0x373   :  { %v952_v31 = vpop.permute.xlu1 %951 }
 0x374   :  { %1734 = vpow2.f32 %v1475_v4 }
 0x377   :  { %v1283_v57 = vpop.permute.xlu1 %1282 }
 0x381   :  { %v1735_v6 = vpop.eup %1734 }
 0x382   :  { %v627_v7 = vadd.f32 1.0, %v1735_v6 }
 0x384   :  { %1736 = vrcp.f32 %v627_v7 }
 0x391   :  { %v1737_v8 = vpop.eup %1736 }
 0x392   :  { %v630_v9 = vmul.f32 %v1737_v8, %v1883_v30 }
 0x394   :  { %1644 = vmatmul.mubr.msk.f32.vlgmr.msra.gmra.mxu1 %vm227_vm2, %v630_v9 }
 0x395   :  { %1662 = vmatpush3.msra.mxu1 %v1485_v10  ;;  %1665 = vmatprep.mubr.msk.f32.mxu1 %vm1749_vm0, %v1748_v0 }
 0x396   :  { %1663 = vmatprep.subr.mxu1 %v1748_v0 }
 0x397   :  { %1664 = vmatpush3.msra.mxu1 %v1484_v11 }
 0x398   :  { %1666 = vmatmul.mubr.msk.f32.vlgmr.msra.gmra.mxu1 %vm48_vm1, %v1818_v3  ;;  %1668 = vmatprep.subr.mxu1 %v1748_v0 }
 0x399   :  { %1669 = vmatpush3.xpose.msk.msra.mxu1 %vm48_vm1, %v1824_v5  ;;  %1670 = vmatprep.mubr.msk.f32.mxu1 %vm1749_vm0, %v1748_v0 }
 0x39a   :  { %1673 = vmatprep.subr.mxu1 %v1748_v0 }
 0x39c   :  { %1671 = vmatmul.mubr.msk.f32.vlgmr.msra.gmra.mxu1 %vm48_vm1, %v1487_v13 }
 0x39d   :  { %1674 = vmatpush3.msra.mxu1 %v1849_v12  ;;  %1675 = vmatprep.mubr.msk.f32.mxu1 %vm1749_vm0, %v1748_v0 }
 0x39e   :  { %1693 = vmatprep.subr.mxu1 %v1748_v0 }
 0x454   :  { %v700_v15 = vpop.f32.mrf.mxu1 }
 0x455   :  { %1659 = vmatmul.mubr.msk.f32.vlgmr.msra.gmra.mxu0 %vm307_vm3, %v700_v15 }
 0x456   :  { %v1645_v16 = vpop.f32.mrf.mxu1  ;;  %1690 = vmatprep.mubr.msk.f32.mxu0 %vm1749_vm0, %v1748_v0  ;;  %1679 = vmatpush3.msra.mxu0 %v1499_v22 }
 0x457   :  { %1680 = vmatprep.subr.mxu0 %v1748_v0 }
 0x458   :  { %v854_v17 = vpop.f32.mrf.mxu1  ;;  %1681 = vmatpush3.msra.mxu0 %v1498_v23 }
 0x459   :  { %935 = vperm.xlu0 %1728, %v854_v17   ;;  %1682 = vmatprep.subr.mxu0 %v1748_v0 }
 0x45a   :  { %v1667_v18 = vpop.f32.mrf.mxu1  ;;  %1683 = vmatpush3.msra.mxu0 %v1497_v24 }
 0x45b   :  { %1684 = vmatprep.subr.mxu0 %v1748_v0 }
 0x45c   :  { %v929_v19 = vpop.f32.mrf.mxu1  ;;  %1685 = vmatpush3.msra.mxu0 %v1496_v25 }
 0x45d   :  { %1686 = vmatprep.subr.mxu0 %v1748_v0  ;;  %v941_v27 = vrot.slane %v929_v19, %v1877_v21 }
 0x45e   :  { %v1672_v20 = vpop.f32.mrf.mxu1  ;;  %1687 = vmatpush3.msra.mxu0 %v1495_v26 }
 0x45f   :  { %1688 = vmatprep.subr.mxu0 %v1748_v0 }
 0x460   :  { %1689 = vmatpush3.msra.mxu0 %v1494_v43 }
 0x461   :  { %1710 = vmatprep.subr.mxu0 %v1748_v0 }
 0x4d4   :  { %v936_v28 = vpop.permute.xlu0 %935 }
 0x4d5   :  { %v942_v29 = vadd.f32 %v941_v27, %v936_v28 }
 0x4d7   :  { %v954_v32 = vadd.f32 %v952_v31, %v942_v29 }
 0x4d9   :  { %v1492_v33 = vmul.f32 -1.442695, %v954_v32 }
 0x4db   :  { %1738 = vpow2.f32 %v1492_v33 }
 0x4e8   :  { %v1739_v34 = vpop.eup %1738 }
 0x4e9   :  { %v958_v35 = vadd.f32 1.0, %v1739_v34 }
 0x4eb   :  { %1740 = vrcp.f32 %v958_v35 }
 0x4f8   :  { %v1741_v36 = vpop.eup %1740 }
 0x4f9   :  { %v961_v37 = vmul.f32 %v1741_v36, %v1883_v30 }
 0x4fb   :  { %1676 = vmatmul.mubr.msk.f32.vlgmr.msra.gmra.mxu1 %vm227_vm2, %v961_v37 }
 0x4fc   :  { %1694 = vmatpush3.msra.mxu1 %v1502_v38  ;;  %1697 = vmatprep.mubr.msk.f32.mxu1 %vm1749_vm0, %v1748_v0 }
 0x4fd   :  { %1695 = vmatprep.subr.mxu1 %v1748_v0 }
 0x4fe   :  { %1696 = vmatpush3.msra.mxu1 %v1501_v39 }
 0x4ff   :  { %1698 = vmatmul.mubr.msk.f32.vlgmr.msra.gmra.mxu1 %vm48_vm1, %v1818_v3  ;;  %1700 = vmatprep.subr.mxu1 %v1748_v0  ;;  %v451_v3 = vadd.f32 %v1945_v45, %v1947_v49  ;;  %v1516_v49 = vld [vmem:[%s2105_s8 + $0xb8] sm:$0xff] }
 0x500   :  { %1701 = vmatpush3.xpose.msk.msra.mxu1 %vm48_vm1, %v1824_v5  ;;  %1702 = vmatprep.mubr.msk.f32.mxu1 %vm1749_vm0, %v1748_v0 }
 0x501   :  { %1705 = vmatprep.subr.mxu1 %v1748_v0 }
 0x503   :  { %1703 = vmatmul.mubr.msk.f32.vlgmr.msra.gmra.mxu1 %vm48_vm1, %v1504_v40 }
 0x504   :  { %1706 = vmatpush3.msra.mxu1 %v1849_v12  ;;  %1707 = vmatprep.mubr.msk.f32.mxu1 %vm1749_vm0, %v1748_v0 }
 0x515   :  { %v780_v5 = vpop.f32.mrf.mxu0 }
 0x516   :  { %v784_v41 = vadd.f32 %v780_v5, %v451_v3 }
 0x517   :  { %v1660_v42 = vpop.f32.mrf.mxu0 }
 0x5bb   :  { %v1031_v44 = vpop.f32.mrf.mxu1 }
 0x5bc   :  { %1691 = vmatmul.mubr.msk.f32.vlgmr.msra.gmra.mxu0 %vm307_vm3, %v1031_v44 }
 0x5bd   :  { %v1677_v12 = vpop.f32.mrf.mxu1  ;;  %1722 = vmatprep.mubr.msk.f32.mxu0 %vm1749_vm0, %v1748_v0  ;;  %1711 = vmatpush3.msra.mxu0 %v1516_v49 }
 0x5be   :  { %1712 = vmatprep.subr.mxu0 %v1748_v0 }
 0x5bf   :  { %v1185_v46 = vpop.f32.mrf.mxu1  ;;  %1713 = vmatpush3.msra.mxu0 %v1515_v50 }
 0x5c0   :  { %1266 = vperm.xlu0 %1728, %v1185_v46   ;;  %1714 = vmatprep.subr.mxu0 %v1748_v0 }
 0x5c1   :  { %v1699_v45 = vpop.f32.mrf.mxu1  ;;  %1715 = vmatpush3.msra.mxu0 %v1514_v51 }
 0x5c2   :  { %1716 = vmatprep.subr.mxu0 %v1748_v0 }
 0x5c3   :  { %v1260_v47 = vpop.f32.mrf.mxu1  ;;  %1717 = vmatpush3.msra.mxu0 %v1513_v52 }
 0x5c4   :  { %1718 = vmatprep.subr.mxu0 %v1748_v0  ;;  %v1272_v54 = vrot.slane %v1260_v47, %v1877_v21 }
 0x5c5   :  { %v1704_v48 = vpop.f32.mrf.mxu1  ;;  %1719 = vmatpush3.msra.mxu0 %v1512_v53 }
 0x5c6   :  { %1720 = vmatprep.subr.mxu0 %v1748_v0  ;;  %v1511_v0 = vld [vmem:[%s2105_s8 + $0x90] sm:$0xff] }
 0x5c7   :  { %1721 = vmatpush3.msra.mxu0 %v1511_v0 }
 0x63b   :  { %v1267_v55 = vpop.permute.xlu0 %1266 }
 0x63c   :  { %v1273_v56 = vadd.f32 %v1272_v54, %v1267_v55 }
 0x63e   :  { %v1285_v58 = vadd.f32 %v1283_v57, %v1273_v56 }
 0x640   :  { %v1509_v59 = vmul.f32 -1.442695, %v1285_v58 }
 0x642   :  { %1742 = vpow2.f32 %v1509_v59 }
 0x64f   :  { %v1743_v60 = vpop.eup %1742 }
 0x650   :  { %v1289_v61 = vadd.f32 1.0, %v1743_v60 }
 0x652   :  { %1744 = vrcp.f32 %v1289_v61 }
 0x65f   :  { %v1745_v62 = vpop.eup %1744 }
 0x660   :  { %v1292_v63 = vmul.f32 %v1745_v62, %v1883_v30 }
 0x662   :  { %1708 = vmatmul.mubr.msk.f32.vlgmr.msra.gmra.mxu1 %vm227_vm2, %v1292_v63 }
 0x67c   :  { %v1111_v1 = vpop.f32.mrf.mxu0 }
 0x67d   :  { %v1115_v2 = vadd.f32 %v1111_v1, %v784_v41 }
 0x67e   :  { %v1692_v4 = vpop.f32.mrf.mxu0 }
 0x722   :  { %v1362_v21 = vpop.f32.mrf.mxu1 }
 0x723   :  { %1723 = vmatmul.mubr.msk.f32.vlgmr.msra.gmra.mxu0 %vm307_vm3, %v1362_v21 }
 0x724   :  { %v1709_v6 = vpop.f32.mrf.mxu1 }
 0x7e3   :  { %v1442_v7 = vpop.f32.mrf.mxu0 }
 0x7e4   :  { %v1446_v8 = vadd.f32 %v1442_v7, %v1115_v2 }
 0x7e5   :  { %v1724_v9 = vpop.f32.mrf.mxu0 }
 0x7e6   :  { %v1448_v10 = vmin.f32 %v1446_v8, 0.0  ;;  %vm1447_vm5 = vcmp.gt.f32.partialorder %v1446_v8, 0.0 }
 0x7e8   :  { %v1449_v11 = vmul.f32 1.442695, %v1448_v10 }
 0x7ea   :  { %1746 = vpow2.f32 %v1449_v11 }
 0x7f7   :  { %v1747_v30 = vpop.eup %1746 }
 0x7f8   :  { %v1518_v13 = vadd.f32 -1.0, %v1747_v30 }
 0x7fa   :  { %v1452_v14 = vsel %vm1447_vm5, %v1446_v8, %v1518_v13 }
 0x7fb   :  { %1454 = vst.msk [vmem:[%s2109_s10] sm:$0xff] %vm1453_vm4, %v1452_v14 }

// kernel: pass_model_forward.4
= control target key start
LH: loop header
LB: loop body
LE: loop exit
PB: predicated region body
PF: predicated region fallthrough
CT: control target
= control target key end

     0   :  { %11 = vsyncpa [#allocation7], 0  ;;  %s3657_s0 = inlined_call_operand.vmem [shape: f32[8,8,4], index: 0, kind: input, shape index: {}]   ;;  %s3658_s1 = inlined_call_operand.vmem [shape: f32[3,4,48], index: 1, kind: input, shape index: {}]   ;;  %s3659_s2 = inlined_call_operand.hbm [shape: f32[2,3,48,48], index: 2, kind: input, shape index: {}]   ;;  %s3660_s3 = inlined_call_operand.hbm [shape: f32[3,3,48,48], index: 3, kind: input, shape index: {}]   ;;  %s3661_s4 = inlined_call_operand.vmem [shape: f32[3,3,1,48], index: 4, kind: input, shape index: {}]   ;;  %s3662_s5 = inlined_call_operand.vmem [shape: f32[3,3,1,48], index: 5, kind: input, shape index: {}]   ;;  %s3663_s6 = inlined_call_operand.vmem [shape: f32[3,8,48], index: 6, kind: output, shape index: {}]  }
   0x1   :  { %12 = vsyncpa [#allocation9], 0  ;;  %s3067_s21 = smov [#allocation6]  }
   0x2   :  { %s22_s22 = sshll.u32 %s3067_s21, 4  ;;  %s23_s22 = int_to_ptr.vmem [resolvable:$true] %s22_s22 }
   0x3   :  { %s2983_s23 = scalar_lea.vmem %s23_s22, 4608  ;;  %p2988_p1 = scmp.lt.s32.totalorder %s23_s22, %s23_s22 }
   0x4   :  { %p2984_p0 = scmp.ne.s32.totalorder %s23_s22, %s2983_s23  ;;  %p2989_p2 = scmp.lt.s32.totalorder %s2983_s23, %s2983_s23 }
   0x6   :  { %p2990_p3 = por %p2989_p2, %p2988_p1 }
   0x8   :  { %p2991_p4 = pnand %p2990_p3, %p2984_p0 }
   0xa   :  { %2994 = shalt.err (!%p2991_p4)
}
   0xb   :  { %s3068_s24 = smov 128   ;;  %s3069_s25 = smov 8  }
   0xc   :  { %28 = dma.hbm_to_vmem [thread:$0]  %s3659_s2, 4608, %s23_s22, [#allocation7], %s3068_s24, %s3068_s24, %s3069_s25  }
   0xd   :  { %s3070_s28 = smov [#allocation8]  }
   0xe   :  { %s34_s29 = sshll.u32 %s3070_s28, 4  ;;  %s35_s29 = int_to_ptr.vmem [resolvable:$true] %s34_s29 }
   0xf   :  { %s3003_s30 = scalar_lea.vmem %s35_s29, 6912  ;;  %p3008_p6 = scmp.lt.s32.totalorder %s35_s29, %s35_s29 }
  0x10   :  { %p3004_p5 = scmp.ne.s32.totalorder %s35_s29, %s3003_s30  ;;  %p3009_p7 = scmp.lt.s32.totalorder %s3003_s30, %s3003_s30 }
  0x12   :  { %p3010_p8 = por %p3009_p7, %p3008_p6 }
  0x14   :  { %p3011_p9 = pnand %p3010_p8, %p3004_p5 }
  0x16   :  { %3014 = shalt.err (!%p3011_p9)
}
  0x17   :  { %40 = dma.hbm_to_vmem [thread:$0]  %s3660_s3, 6912, %s35_s29, [#allocation9], %s3068_s24, %s3068_s24, %s3069_s25  }
  0x18   :  { %3039 = dma.done.wait [#allocation7], 4608  }
  0x19   :  { %3040 = vsyncadd [#allocation7], 4294962688 }
  0x1a   :  { %3041 = dma.done.wait [#allocation9], 6912  }
  0x1b   :  { %3042 = vsyncadd [#allocation9], 4294960384  ;;  %v3118_v0 = vld [vmem:[#allocation8] sm:$0xff]  ;;  %v3120_v1 = vld [vmem:[#allocation8 + $0x8] sm:$0xff]  ;;  %vm96_vm0 = vcmask 1043456   ;;  %vm71_vm1 = vcmask 31744  }
  0x1c   :  { %v3122_v2 = vld [vmem:[#allocation8 + $0x10] sm:$0xff]  ;;  %v3124_v3 = vld [vmem:[#allocation8 + $0x18] sm:$0xff]  ;;  %v3126_v4 = vld [vmem:[#allocation8 + $0x20] sm:$0xff]  ;;  %vm205_vm2 = vcmask 392192   ;;  %s3269_s13 = smov 0  }
  0x1d   :  { %v3128_v5 = vld [vmem:[#allocation8 + $0x28] sm:$0xff]  ;;  %v3130_v6 = vld [vmem:[#allocation8 + $0x30] sm:$0xff]  ;;  %v3132_v7 = vld [vmem:[#allocation8 + $0x38] sm:$0xff] }
  0x1e   :  { %v3134_v8 = vld [vmem:[#allocation8 + $0x40] sm:$0xff]  ;;  %v3136_v9 = vld [vmem:[#allocation8 + $0x48] sm:$0xff]  ;;  %v3138_v10 = vld [vmem:[#allocation8 + $0x50] sm:$0xff] }
  0x1f   :  { %v3140_v11 = vld [vmem:[#allocation8 + $0x58] sm:$0xff]  ;;  %v3142_v12 = vld [vmem:[#allocation8 + $0x60] sm:$0xff]  ;;  %v3144_v13 = vld [vmem:[#allocation8 + $0x68] sm:$0xff] }
  0x20   :  { %v3146_v14 = vld [vmem:[#allocation8 + $0x70] sm:$0xff]  ;;  %v3148_v15 = vld [vmem:[#allocation8 + $0x78] sm:$0xff]  ;;  %v3150_v16 = vld [vmem:[#allocation8 + $0x80] sm:$0xff] }
  0x21   :  { %v3152_v17 = vld [vmem:[#allocation8 + $0x88] sm:$0xff]  ;;  %v3157_v18 = vld [vmem:[%s3662_s5] ss:$0 sm:$0xff]  ;;  %v3162_v19 = vld [vmem:[%s3662_s5 + $0x1] ss:$0 sm:$0xff] }
  0x22   :  { %v3167_v20 = vld [vmem:[%s3662_s5 + $0x2] ss:$0 sm:$0xff]  ;;  %v52_v24 = vld [vmem:[%s3657_s0 + $0x8] sm:$0xff]  ;;  %v2235_v26 = vld [vmem:[%s3658_s1 + $0x4] sm:$0xf] }
  0x23   :  { %v59_v21 = vld [vmem:[%s3658_s1] sm:$0xf]  ;;  %v56_v25 = vld [vmem:[%s3657_s0 + $0x28] sm:$0xff]  ;;  %v53_v28 = vld [vmem:[%s3657_s0 + $0x10] sm:$0xff] }
  0x24   :  { %v51_v22 = vld [vmem:[%s3657_s0] sm:$0xff]  ;;  %2540 = vmatprep.subr.msk.mxu0 %vm96_vm0, %v59_v21  ;;  %2861 = vmatprep.subr.msk.mxu1 %vm96_vm0, %v59_v21  ;;  %v2236_v27 = vld [vmem:[%s3658_s1 + $0x8] sm:$0xf]  ;;  %v57_v29 = vld [vmem:[%s3657_s0 + $0x30] sm:$0xff] }
  0x25   :  { %v55_v23 = vld [vmem:[%s3657_s0 + $0x20] sm:$0xff]  ;;  %2541 = vmatpush3.msk.msra.mxu0 %vm96_vm0, %v59_v21  ;;  %2862 = vmatpush3.msk.msra.mxu1 %vm96_vm0, %v59_v21  ;;  %v54_v30 = vld [vmem:[%s3657_s0 + $0x18] sm:$0xff] }
  0x26   :  { %2542 = vmatprep.mubr.msk.f32.mxu0 %vm71_vm1, %v51_v22  ;;  %2548 = vmatprep.mubr.msk.f32.mxu1 %vm71_vm1, %v55_v23  ;;  %v58_v31 = vld [vmem:[%s3657_s0 + $0x38] sm:$0xff]  ;;  %v2237_v32 = vld [vmem:[%s3661_s4] ss:$0 sm:$0xff]  ;;  %v2248_v47 = vld [vmem:[%s3661_s4 + $0x1] ss:$0 sm:$0xff] }
  0x27   :  { %2543 = vmatmul.mubr.msk.f32.vlgmr.msra.gmra.mxu0 %vm71_vm1, %v52_v24  ;;  %2549 = vmatmul.mubr.msk.f32.vlgmr.msra.gmra.mxu1 %vm71_vm1, %v56_v25  ;;  %v2259_v48 = vld [vmem:[%s3661_s4 + $0x2] ss:$0 sm:$0xff] }
  0x28   :  { %2554 = vmatprep.subr.msk.mxu1 %vm96_vm0, %v2235_v26  ;;  %2568 = vmatprep.subr.msk.mxu0 %vm96_vm0, %v2236_v27 }
  0x29   :  { %2555 = vmatpush3.msk.msra.mxu1 %vm96_vm0, %v2235_v26  ;;  %2569 = vmatpush3.msk.msra.mxu0 %vm96_vm0, %v2236_v27 }
  0x2a   :  { %2545 = vmatprep.mubr.msk.f32.mxu0 %vm71_vm1, %v53_v28  ;;  %2551 = vmatprep.mubr.msk.f32.mxu1 %vm71_vm1, %v57_v29 }
  0x2b   :  { %2546 = vmatmul.mubr.msk.f32.gmra.mxu0 %vm71_vm1, %v54_v30  ;;  %2552 = vmatmul.mubr.msk.f32.gmra.mxu1 %vm71_vm1, %v58_v31 }
  0x2c   :  { %2556 = vmatprep.mubr.msk.f32.mxu1 %vm71_vm1, %v51_v22  ;;  %2570 = vmatprep.mubr.msk.f32.mxu0 %vm71_vm1, %v51_v22 }
  0x2f   :  { %2557 = vmatmul.mubr.msk.f32.vlgmr.msra.gmra.mxu1 %vm71_vm1, %v52_v24  ;;  %2571 = vmatmul.mubr.msk.f32.vlgmr.msra.gmra.mxu0 %vm71_vm1, %v52_v24 }
  0x30   :  { %2559 = vmatprep.mubr.msk.f32.mxu1 %vm71_vm1, %v53_v28  ;;  %2573 = vmatprep.mubr.msk.f32.mxu0 %vm71_vm1, %v53_v28 }
  0x33   :  { %2560 = vmatmul.mubr.msk.f32.gmra.mxu1 %vm71_vm1, %v54_v30  ;;  %2574 = vmatmul.mubr.msk.f32.gmra.mxu0 %vm71_vm1, %v54_v30 }
  0x34   :  { %2562 = vmatprep.mubr.msk.f32.mxu1 %vm71_vm1, %v55_v23  ;;  %2576 = vmatprep.mubr.msk.f32.mxu0 %vm71_vm1, %v55_v23 }
  0x37   :  { %2563 = vmatmul.mubr.msk.f32.gmra.mxu1 %vm71_vm1, %v56_v25  ;;  %2577 = vmatmul.mubr.msk.f32.gmra.mxu0 %vm71_vm1, %v56_v25 }
  0x38   :  { %2565 = vmatprep.mubr.msk.f32.mxu1 %vm71_vm1, %v57_v29  ;;  %2579 = vmatprep.mubr.msk.f32.mxu0 %vm71_vm1, %v57_v29 }
  0x3b   :  { %2566 = vmatmul.mubr.msk.f32.gmra.mxu1 %vm71_vm1, %v58_v31  ;;  %2580 = vmatmul.mubr.msk.f32.gmra.mxu0 %vm71_vm1, %v58_v31 }
  0xe7   :  { %v2544_v33 = vpop.f32.mrf.mxu0  ;;  %v2550_v34 = vpop.f32.mrf.mxu1 }
  0xe8   :  { %v172_v35 = vadd.f32 %v2544_v33, %v2237_v32  ;;  %v192_v36 = vadd.f32 %v2550_v34, %v2237_v32 }
  0xe9   :  { %v166_v37 = vpop.f32.mrf.mxu0  ;;  %v186_v38 = vpop.f32.mrf.mxu1 }
  0xea   :  { %207 = vst.msk [vmem:[#allocation3 + $0x8] sm:$0xff] %vm205_vm2, %v172_v35  ;;  %211 = vst.msk [vmem:[#allocation3 + $0x28] sm:$0xff] %vm205_vm2, %v192_v36  ;;  %v167_v39 = vadd.f32 %v2237_v32, %v166_v37  ;;  %v187_v40 = vadd.f32 %v2237_v32, %v186_v38 }
  0xeb   :  { %v2547_v41 = vpop.f32.mrf.mxu0  ;;  %v2553_v42 = vpop.f32.mrf.mxu1 }
  0xec   :  { %206 = vst.msk [vmem:[#allocation3] sm:$0xff] %vm205_vm2, %v167_v39  ;;  %210 = vst.msk [vmem:[#allocation3 + $0x20] sm:$0xff] %vm205_vm2, %v187_v40  ;;  %v182_v43 = vadd.f32 %v2547_v41, %v2237_v32  ;;  %v202_v44 = vadd.f32 %v2553_v42, %v2237_v32  ;;  %v3267_v40 = vmov 0.0  }
  0xed   :  { %v176_v45 = vpop.f32.mrf.mxu0  ;;  %v196_v46 = vpop.f32.mrf.mxu1 }
  0xee   :  { %209 = vst.msk [vmem:[#allocation3 + $0x18] sm:$0xff] %vm205_vm2, %v182_v43  ;;  %213 = vst.msk [vmem:[#allocation3 + $0x38] sm:$0xff] %vm205_vm2, %v202_v44  ;;  %v177_v49 = vadd.f32 %v2237_v32, %v176_v45  ;;  %v197_v50 = vadd.f32 %v2237_v32, %v196_v46 }
  0xef   :  { %v2558_v51 = vpop.f32.mrf.mxu1  ;;  %v2572_v52 = vpop.f32.mrf.mxu0 }
  0xf0   :  { %208 = vst.msk [vmem:[#allocation3 + $0x10] sm:$0xff] %vm205_vm2, %v177_v49  ;;  %212 = vst.msk [vmem:[#allocation3 + $0x30] sm:$0xff] %vm205_vm2, %v197_v50  ;;  %v297_v53 = vadd.f32 %v2558_v51, %v2248_v47  ;;  %v421_v54 = vadd.f32 %v2572_v52, %v2259_v48 }
  0xf1   :  { %v291_v55 = vpop.f32.mrf.mxu1  ;;  %v415_v56 = vpop.f32.mrf.mxu0 }
  0xf2   :  { %331 = vst.msk [vmem:[#allocation4 + $0x8] sm:$0xff] %vm205_vm2, %v297_v53  ;;  %455 = vst.msk [vmem:[#allocation5 + $0x8] sm:$0xff] %vm205_vm2, %v421_v54  ;;  %v292_v57 = vadd.f32 %v2248_v47, %v291_v55  ;;  %v416_v58 = vadd.f32 %v2259_v48, %v415_v56 }
  0xf3   :  { %v2561_v59 = vpop.f32.mrf.mxu1  ;;  %v2575_v60 = vpop.f32.mrf.mxu0 }
  0xf4   :  { %330 = vst.msk [vmem:[#allocation4] sm:$0xff] %vm205_vm2, %v292_v57  ;;  %454 = vst.msk [vmem:[#allocation5] sm:$0xff] %vm205_vm2, %v416_v58  ;;  %v307_v61 = vadd.f32 %v2561_v59, %v2248_v47  ;;  %v431_v62 = vadd.f32 %v2575_v60, %v2259_v48 }
  0xf5   :  { %v301_v63 = vpop.f32.mrf.mxu1  ;;  %v425_v21 = vpop.f32.mrf.mxu0 }
  0xf6   :  { %333 = vst.msk [vmem:[#allocation4 + $0x18] sm:$0xff] %vm205_vm2, %v307_v61  ;;  %457 = vst.msk [vmem:[#allocation5 + $0x18] sm:$0xff] %vm205_vm2, %v431_v62  ;;  %v302_v22 = vadd.f32 %v2248_v47, %v301_v63  ;;  %v426_v23 = vadd.f32 %v2259_v48, %v425_v21 }
  0xf7   :  { %v2564_v24 = vpop.f32.mrf.mxu1  ;;  %v2578_v25 = vpop.f32.mrf.mxu0 }
  0xf8   :  { %332 = vst.msk [vmem:[#allocation4 + $0x10] sm:$0xff] %vm205_vm2, %v302_v22  ;;  %456 = vst.msk [vmem:[#allocation5 + $0x10] sm:$0xff] %vm205_vm2, %v426_v23  ;;  %v317_v26 = vadd.f32 %v2564_v24, %v2248_v47  ;;  %v441_v27 = vadd.f32 %v2578_v25, %v2259_v48 }
  0xf9   :  { %v311_v28 = vpop.f32.mrf.mxu1  ;;  %v435_v29 = vpop.f32.mrf.mxu0 }
  0xfa   :  { %335 = vst.msk [vmem:[#allocation4 + $0x28] sm:$0xff] %vm205_vm2, %v317_v26  ;;  %459 = vst.msk [vmem:[#allocation5 + $0x28] sm:$0xff] %vm205_vm2, %v441_v27  ;;  %v312_v30 = vadd.f32 %v2248_v47, %v311_v28  ;;  %v436_v31 = vadd.f32 %v2259_v48, %v435_v29 }
  0xfb   :  { %v2567_v32 = vpop.f32.mrf.mxu1  ;;  %v2581_v33 = vpop.f32.mrf.mxu0 }
  0xfc   :  { %334 = vst.msk [vmem:[#allocation4 + $0x20] sm:$0xff] %vm205_vm2, %v312_v30  ;;  %458 = vst.msk [vmem:[#allocation5 + $0x20] sm:$0xff] %vm205_vm2, %v436_v31  ;;  %v327_v34 = vadd.f32 %v2567_v32, %v2248_v47  ;;  %v451_v35 = vadd.f32 %v2581_v33, %v2259_v48 }
  0xfd   :  { %v321_v36 = vpop.f32.mrf.mxu1  ;;  %v445_v37 = vpop.f32.mrf.mxu0 }
  0xfe   :  { %337 = vst.msk [vmem:[#allocation4 + $0x38] sm:$0xff] %vm205_vm2, %v327_v34  ;;  %461 = vst.msk [vmem:[#allocation5 + $0x38] sm:$0xff] %vm205_vm2, %v451_v35  ;;  %v322_v38 = vadd.f32 %v2248_v47, %v321_v36  ;;  %v446_v39 = vadd.f32 %v2259_v48, %v445_v37 }
 0x100   :  { %336 = vst.msk [vmem:[#allocation4 + $0x30] sm:$0xff] %vm205_vm2, %v322_v38  ;;  %460 = vst.msk [vmem:[#allocation5 + $0x30] sm:$0xff] %vm205_vm2, %v446_v39 }
 0x101 LB: > { %v3071_v41 = vmov 0.0   ;;  %vm3072_vm3 = vmmov 0   ;;  %s3305_s14 = sshll.u32 %s3049_s13, 3  ;;  %s492_s13 = sadd.s32 1, %s3049_s13   ;;  %s3049_s13 = sphi %s3269_s13, %s492_s13   ;;  %v3045_v40 = vphi %v3267_v40, %v3664_v40  }
 0x102   : > { %2582 = vmatprep.subr.mxu0 %v3071_v41  ;;  %2594 = vmatprep.mubr.msk.f32.mxu0 %vm3072_vm3, %v3071_v41  ;;  %s726_s15 = scalar_lea.vmem [#allocation3], %s3305_s14  ;;  %s735_s16 = scalar_lea.vmem [#allocation4], %s3305_s14 }
 0x103   : > { %2583 = vmatpush3.msra.mxu0 %v3128_v5  ;;  %2597 = vmatprep.subr.mxu1 %v3071_v41  ;;  %v727_v43 = vld [vmem:[%s726_s15] sm:$0xff]  ;;  %s744_s17 = scalar_lea.vmem [#allocation5], %s3305_s14  ;;  %s753_s18 = scalar_lea.vmem [#allocation2], %s3305_s14 }
 0x104   : > { %2584 = vmatprep.subr.mxu0 %v3071_v41  ;;  %2598 = vmatpush3.msra.mxu1 %v3140_v11  ;;  %p489_p10 = scmp.ge.s32.totalorder %s492_s13, 8  }
 0x105   : > { %2585 = vmatpush3.msra.mxu0 %v3126_v4  ;;  %2599 = vmatprep.subr.mxu1 %v3071_v41  ;;  %v769_v28 = vld [vmem:[#allocation6 + $0x28] sm:$0xff] (%p489_p10)  ;;  %v776_v29 = vld [vmem:[#allocation6 + $0x58] sm:$0xff] (%p489_p10)  ;;  %v768_v30 = vld [vmem:[#allocation6 + $0x20] sm:$0xff] (%p489_p10)  ;;  %s3435_s8 = smov (%p489_p10), 0  }
 0x106   : > { %2586 = vmatprep.subr.mxu0 %v3071_v41  ;;  %2600 = vmatpush3.msra.mxu1 %v3138_v10  ;;  %v775_v31 = vld [vmem:[#allocation6 + $0x50] sm:$0xff] (%p489_p10)  ;;  %v767_v32 = vld [vmem:[#allocation6 + $0x18] sm:$0xff] (%p489_p10)  ;;  %v774_v33 = vld [vmem:[#allocation6 + $0x48] sm:$0xff] (%p489_p10) }
 0x107   : > { %2587 = vmatpush3.msra.mxu0 %v3124_v3  ;;  %2601 = vmatprep.subr.mxu1 %v3071_v41  ;;  %v736_v49 = vld [vmem:[%s735_s16] sm:$0xff]  ;;  %v766_v34 = vld [vmem:[#allocation6 + $0x10] sm:$0xff] (%p489_p10)  ;;  %v781_v11 = vld [vmem:[#allocation6 + $0x78] sm:$0xff] (%p489_p10) }
 0x108   : > { %2588 = vmatprep.subr.mxu0 %v3071_v41  ;;  %2602 = vmatpush3.msra.mxu1 %v3136_v9  ;;  %v745_v62 = vld [vmem:[%s744_s17] sm:$0xff]  ;;  %v771_v4 = vld [vmem:[#allocation6 + $0x30] sm:$0xff] (%p489_p10)  ;;  %v3355_v36 = vld [vmem:[#allocation8 + $0xa8] sm:$0xff] (%p489_p10) }
 0x109   : > { %2589 = vmatpush3.msra.mxu0 %v3122_v2  ;;  %2603 = vmatprep.subr.mxu1 %v3071_v41  ;;  %v772_v2 = vld [vmem:[#allocation6 + $0x38] sm:$0xff] (%p489_p10)  ;;  %v764_v3 = vld [vmem:[#allocation6] sm:$0xff] (%p489_p10)  ;;  %v3357_v37 = vld [vmem:[#allocation8 + $0xb0] sm:$0xff] (%p489_p10) }
 0x10a   : > { %2590 = vmatprep.subr.mxu0 %v3071_v41  ;;  %2604 = vmatpush3.msra.mxu1 %v3134_v8  ;;  %v782_v9 = vld [vmem:[#allocation6 + $0x80] sm:$0xff] (%p489_p10)  ;;  %v3359_v38 = vld [vmem:[#allocation8 + $0xb8] sm:$0xff] (%p489_p10) }
 0x10b   : > { %2591 = vmatpush3.msra.mxu0 %v3120_v1  ;;  %2605 = vmatprep.subr.mxu1 %v3071_v41  ;;  %v765_v1 = vld [vmem:[#allocation6 + $0x8] sm:$0xff] (%p489_p10)  ;;  %v3353_v35 = vld [vmem:[#allocation8 + $0xa0] sm:$0xff] (%p489_p10) }
 0x10c   : > { %2592 = vmatprep.subr.mxu0 %v3071_v41  ;;  %2606 = vmatpush3.msra.mxu1 %v3132_v7  ;;  %v783_v7 = vld [vmem:[#allocation6 + $0x88] sm:$0xff] (%p489_p10)  ;;  %v3361_v39 = vld [vmem:[#allocation8 + $0xc0] sm:$0xff] (%p489_p10) }
 0x10d   : > { %2593 = vmatpush3.msra.mxu0 %v3118_v0  ;;  %2607 = vmatprep.subr.mxu1 %v3071_v41  ;;  %v773_v0 = vld [vmem:[#allocation6 + $0x40] sm:$0xff] (%p489_p10) }
 0x10e   : > { %2595 = vmatmul.mubr.msk.f32.vlgmr.msra.gmra.mxu0 %vm205_vm2, %v3045_v40  ;;  %2608 = vmatpush3.msra.mxu1 %v3130_v6 }
 0x10f   : > { %2609 = vmatprep.mubr.msk.f32.mxu1 %vm3072_vm3, %v3071_v41  ;;  %2612 = vmatprep.subr.mxu0 %v3071_v41 }
 0x110   : > { %2610 = vmatmul.mubr.msk.f32.vlgmr.msra.gmra.mxu1 %vm205_vm2, %v3045_v40  ;;  %2613 = vmatpush3.msra.mxu0 %v3152_v17 }
 0x111   : > { %2614 = vmatprep.subr.mxu0 %v3071_v41  ;;  %2624 = vmatprep.mubr.msk.f32.mxu0 %vm3072_vm3, %v3071_v41 }
 0x112   : > { %2615 = vmatpush3.msra.mxu0 %v3150_v16  ;;  %2651 = vmatprep.subr.mxu1 (%p489_p10), %v776_v29  ;;  %v779_v16 = vld [vmem:[#allocation6 + $0x68] sm:$0xff] (%p489_p10) }
 0x113   : > { %2616 = vmatprep.subr.mxu0 %v3071_v41  ;;  %2652 = vmatpush3.msra.mxu1 (%p489_p10), %v776_v29 }
 0x114   : > { %2617 = vmatpush3.msra.mxu0 %v3148_v15  ;;  %2653 = vmatprep.subr.mxu1 (%p489_p10), %v775_v31 }
 0x115   : > { %2618 = vmatprep.subr.mxu0 %v3071_v41  ;;  %2654 = vmatpush3.msra.mxu1 (%p489_p10), %v775_v31 }
 0x116   : > { %2619 = vmatpush3.msra.mxu0 %v3146_v14  ;;  %2655 = vmatprep.subr.mxu1 (%p489_p10), %v774_v33  ;;  %v780_v14 = vld [vmem:[#allocation6 + $0x70] sm:$0xff] (%p489_p10) }
 0x117   : > { %2620 = vmatprep.subr.mxu0 %v3071_v41  ;;  %2656 = vmatpush3.msra.mxu1 (%p489_p10), %v774_v33 }
 0x118   : > { %2621 = vmatpush3.msra.mxu0 %v3144_v13  ;;  %2657 = vmatprep.subr.mxu1 (%p489_p10), %v773_v0 }
 0x119   : > { %2622 = vmatprep.subr.mxu0 %v3071_v41  ;;  %2658 = vmatpush3.msra.mxu1 (%p489_p10), %v773_v0  ;;  %v3365_v41 = vld [vmem:[#allocation8 + $0xd0] sm:$0xff] (%p489_p10) }
 0x11a   : > { %2623 = vmatpush3.msra.mxu0 %v3142_v12  ;;  %2659 = vmatprep.subr.mxu1 (%p489_p10), %v772_v2 }
 0x11b   : > { %2625 = vmatmul.mubr.msk.f32.vlgmr.msra.gmra.mxu0 %vm205_vm2, %v3045_v40  ;;  %2627 = vmatprep.subr.mxu0 (%p489_p10), %v769_v28 }
 0x11c   :  { %2628 = vmatpush3.msra.mxu0 (%p489_p10), %v769_v28  ;;  %2660 = vmatpush3.msra.mxu1 (%p489_p10), %v772_v2 }
 0x11d   :  { %2629 = vmatprep.subr.mxu0 (%p489_p10), %v768_v30  ;;  %2661 = vmatprep.subr.mxu1 (%p489_p10), %v771_v4 }
 0x11e   :  { %2630 = vmatpush3.msra.mxu0 (%p489_p10), %v768_v30  ;;  %2662 = vmatpush3.msra.mxu1 (%p489_p10), %v771_v4 }
 0x11f   :  { %2631 = vmatprep.subr.mxu0 (%p489_p10), %v767_v32  ;;  %2863 = vmatprep.subr.mxu1 (%p489_p10), %v783_v7 }
 0x120   :  { %2632 = vmatpush3.msra.mxu0 (%p489_p10), %v767_v32 }
 0x121   :  { %2633 = vmatprep.subr.mxu0 (%p489_p10), %v766_v34 }
 0x122   :  { %2634 = vmatpush3.msra.mxu0 (%p489_p10), %v766_v34 }
 0x123   :  { %2635 = vmatprep.subr.mxu0 (%p489_p10), %v765_v1 }
 0x124   :  { %2636 = vmatpush3.msra.mxu0 (%p489_p10), %v765_v1 }
 0x125   :  { %2637 = vmatprep.subr.mxu0 (%p489_p10), %v764_v3 }
 0x126   :  { %2638 = vmatpush3.msra.mxu0 (%p489_p10), %v764_v3 }
 0x127   :  { %2675 = vmatprep.subr.mxu0 (%p489_p10), %v783_v7 }
 0x1ce   : > { %v570_v42 = vpop.f32.mrf.mxu0 }
 0x1cf   : > { %v571_v44 = vadd.f32 %v3157_v18, %v570_v42  ;;  %v778_v18 = vld [vmem:[#allocation6 + $0x60] sm:$0xff] (%p489_p10)  ;;  %v3367_v42 = vld [vmem:[#allocation8 + $0xd8] sm:$0xff] (%p489_p10) }
 0x1d0   : > { %v2596_v45 = vpop.f32.mrf.mxu0  ;;  %v646_v46 = vpop.f32.mrf.mxu1 }
 0x1d1   : > { %v728_v47 = vadd.f32 %v727_v43, %v571_v44  ;;  %v647_v48 = vadd.f32 %v3162_v19, %v646_v46  ;;  %v3349_v19 = vld [vmem:[#allocation8 + $0x90] sm:$0xff] (%p489_p10)  ;;  %v3369_v43 = vld [vmem:[#allocation8 + $0xe0] sm:$0xff] (%p489_p10)  ;;  %v3371_v44 = vld [vmem:[#allocation8 + $0xe8] sm:$0xff] (%p489_p10) }
 0x1d2   : > { %v2611_v50 = vpop.f32.mrf.mxu1  ;;  %v3373_v45 = vld [vmem:[#allocation8 + $0xf0] sm:$0xff] (%p489_p10)  ;;  %v3375_v46 = vld [vmem:[#allocation8 + $0xf8] sm:$0xff] (%p489_p10) }
 0x1d3   : > { %v2278_v51 = vmul.f32 -1.442695, %v728_v47  ;;  %v737_v52 = vadd.f32 %v736_v49, %v647_v48  ;;  %v3377_v47 = vld [vmem:[#allocation8 + $0x100] sm:$0xff] (%p489_p10)  ;;  %v3379_v48 = vld [vmem:[#allocation8 + $0x108] sm:$0xff] (%p489_p10)  ;;  %v3381_v49 = vld [vmem:[#allocation8 + $0x110] sm:$0xff] (%p489_p10) }
 0x1d4   :  { %v3383_v50 = vld [vmem:[#allocation8 + $0x118] sm:$0xff] (%p489_p10) }
 0x1d5   : > { %2945 = vpow2.f32 %v2278_v51  ;;  %v2279_v53 = vmul.f32 -1.442695, %v737_v52  ;;  %v3388_v51 = vld [vmem:[%s3662_s5 + $0x3] ss:$0 sm:$0xff] (%p489_p10)  ;;  %v3393_v52 = vld [vmem:[%s3662_s5 + $0x4] ss:$0 sm:$0xff] (%p489_p10) }
 0x1d7   : > { %2947 = vpow2.f32 %v2279_v53  ;;  %v3398_v53 = vld [vmem:[%s3662_s5 + $0x5] ss:$0 sm:$0xff] (%p489_p10) }
 0x1db   : > { %v722_v54 = vpop.f32.mrf.mxu0 }
 0x1dc   : > { %v723_v60 = vadd.f32 %v3167_v20, %v722_v54  ;;  %v3351_v20 = vld [vmem:[#allocation8 + $0x98] sm:$0xff] (%p489_p10)  ;;  %v2281_v54 = vld [vmem:[%s3661_s4 + $0x3] ss:$0 sm:$0xff] (%p489_p10) }
 0x1dd   : > { %v2626_v55 = vpop.f32.mrf.mxu0 }
 0x1de   :  { %v2291_v55 = vld [vmem:[%s3661_s4 + $0x4] ss:$0 sm:$0xff] (%p489_p10) }
 0x1e2   : > { %v2946_v56 = vpop.eup %2945 }
 0x1e3   : > { %v732_v57 = vadd.f32 1.0, %v2946_v56 }
 0x1e4   : > { %v2948_v58 = vpop.eup %2947 }
 0x1e5   : > { %2949 = vrcp.f32 %v732_v57  ;;  %v741_v59 = vadd.f32 1.0, %v2948_v58 }
 0x1e7   : > { %2951 = vrcp.f32 %v741_v59 }
 0x1f2   : > { %v2950_v61 = vpop.eup %2949 }
 0x1f3   : > { %v746_v63 = vmul.f32 %v2950_v61, %v723_v60 }
 0x1f4   : > { %v2952_v22 = vpop.eup %2951 }
 0x1f5   : > { %v747_v21 = vadd.f32 %v746_v63, %v745_v62  ;;  %v749_v23 = vsub.f32 1.0, %v2952_v22  ;;  %v751_v25 = vmul.f32 %v3045_v40, %v2952_v22 }
 0x1f7   : > { %2953 = vtanh.f32 %v747_v21 }
 0x204   : > { %v2954_v24 = vpop.eup %2953 }
 0x205   : > { %v750_v26 = vmul.f32 %v2954_v24, %v749_v23  ;;  %491 = sbr.rel (!%p489_p10) target bundleno = 257 (0x101), region = 118 }
 0x207   : > { %v752_v27 = vadd.f32 %v751_v25, %v750_v26  }
 0x209   : > { %754 = vst.msk [vmem:[%s753_s18] sm:$0xff] %vm205_vm2, %v752_v27  ;;  %v3664_v40 = vmov %v752_v27  ;;  %755 = vst.msk [vmem:[%s3663_s6] sm:$0xff] (%p489_p10), %vm205_vm2, %v752_v27 }
 0x20a   :  { %v3363_v40 = vld [vmem:[#allocation8 + $0xc8] sm:$0xff] }
 0x210   :  { %v756_v5 = vld [vmem:[#allocation2] sm:$0xff]  ;;  %v757_v6 = vld [vmem:[#allocation2 + $0x8] sm:$0xff]  ;;  %v758_v8 = vld [vmem:[#allocation2 + $0x10] sm:$0xff] }
 0x211   :  { %2639 = vmatprep.mubr.msk.f32.mxu0 %vm205_vm2, %v756_v5  ;;  %2663 = vmatprep.mubr.msk.f32.mxu1 %vm205_vm2, %v756_v5  ;;  %v759_v10 = vld [vmem:[#allocation2 + $0x18] sm:$0xff]  ;;  %v760_v12 = vld [vmem:[#allocation2 + $0x20] sm:$0xff]  ;;  %v761_v13 = vld [vmem:[#allocation2 + $0x28] sm:$0xff] }
 0x212   :  { %2640 = vmatmul.mubr.msk.f32.vlgmr.msra.gmra.mxu0 %vm205_vm2, %v757_v6  ;;  %2664 = vmatmul.mubr.msk.f32.vlgmr.msra.gmra.mxu1 %vm205_vm2, %v757_v6  ;;  %v762_v15 = vld [vmem:[#allocation2 + $0x30] sm:$0xff]  ;;  %v763_v17 = vld [vmem:[#allocation2 + $0x38] sm:$0xff] }
 0x213   :  { %2676 = vmatpush3.msra.mxu0 %v783_v7  ;;  %2869 = vmatpush3.msra.mxu1 %v783_v7 }
 0x214   :  { %2642 = vmatprep.mubr.msk.f32.mxu0 %vm205_vm2, %v758_v8  ;;  %2666 = vmatprep.mubr.msk.f32.mxu1 %vm205_vm2, %v758_v8 }
 0x215   :  { %2677 = vmatprep.subr.mxu0 %v782_v9  ;;  %2864 = vmatprep.subr.mxu1 %v782_v9 }
 0x216   :  { %2643 = vmatmul.mubr.msk.f32.gmra.mxu0 %vm205_vm2, %v759_v10  ;;  %2667 = vmatmul.mubr.msk.f32.gmra.mxu1 %vm205_vm2, %v759_v10 }
 0x217   :  { %2678 = vmatpush3.msra.mxu0 %v782_v9  ;;  %2870 = vmatpush3.msra.mxu1 %v782_v9 }
 0x218   :  { %2679 = vmatprep.subr.mxu0 %v781_v11  ;;  %2865 = vmatprep.subr.mxu1 %v781_v11 }
 0x219   :  { %2645 = vmatprep.mubr.msk.f32.mxu0 %vm205_vm2, %v760_v12  ;;  %2669 = vmatprep.mubr.msk.f32.mxu1 %vm205_vm2, %v760_v12 }
 0x21a   :  { %2680 = vmatpush3.msra.mxu0 %v781_v11  ;;  %2871 = vmatpush3.msra.mxu1 %v781_v11 }
 0x21b   :  { %2646 = vmatmul.mubr.msk.f32.gmra.mxu0 %vm205_vm2, %v761_v13  ;;  %2670 = vmatmul.mubr.msk.f32.gmra.mxu1 %vm205_vm2, %v761_v13 }
 0x21c   :  { %2681 = vmatprep.subr.mxu0 %v780_v14  ;;  %2866 = vmatprep.subr.mxu1 %v780_v14 }
 0x21d   :  { %2682 = vmatpush3.msra.mxu0 %v780_v14  ;;  %2872 = vmatpush3.msra.mxu1 %v780_v14 }
 0x21e   :  { %2648 = vmatprep.mubr.msk.f32.mxu0 %vm205_vm2, %v762_v15  ;;  %2672 = vmatprep.mubr.msk.f32.mxu1 %vm205_vm2, %v762_v15 }
 0x21f   :  { %2683 = vmatprep.subr.mxu0 %v779_v16  ;;  %2867 = vmatprep.subr.mxu1 %v779_v16 }
 0x220   :  { %2649 = vmatmul.mubr.msk.f32.gmra.mxu0 %vm205_vm2, %v763_v17  ;;  %2673 = vmatmul.mubr.msk.f32.gmra.mxu1 %vm205_vm2, %v763_v17 }
 0x221   :  { %2684 = vmatpush3.msra.mxu0 %v779_v16  ;;  %2873 = vmatpush3.msra.mxu1 %v779_v16 }
 0x222   :  { %2685 = vmatprep.subr.mxu0 %v778_v18  ;;  %2868 = vmatprep.subr.mxu1 %v778_v18 }
 0x223   :  { %2686 = vmatpush3.msra.mxu0 %v778_v18  ;;  %2874 = vmatpush3.msra.mxu1 %v778_v18 }
 0x224   :  { %2687 = vmatprep.mubr.msk.f32.mxu0 %vm205_vm2, %v756_v5  ;;  %2693 = vmatprep.mubr.msk.f32.mxu1 %vm205_vm2, %v760_v12 }
 0x225   :  { %2688 = vmatmul.mubr.msk.f32.vlgmr.msra.gmra.mxu0 %vm205_vm2, %v757_v6  ;;  %2694 = vmatmul.mubr.msk.f32.vlgmr.msra.gmra.mxu1 %vm205_vm2, %v761_v13 }
 0x226   :  { %2690 = vmatprep.mubr.msk.f32.mxu0 %vm205_vm2, %v758_v8  ;;  %2696 = vmatprep.mubr.msk.f32.mxu1 %vm205_vm2, %v762_v15 }
 0x229   :  { %2691 = vmatmul.mubr.msk.f32.gmra.mxu0 %vm205_vm2, %v759_v10  ;;  %2697 = vmatmul.mubr.msk.f32.gmra.mxu1 %vm205_vm2, %v763_v17  ;;  %v2301_v10 = vld [vmem:[%s3661_s4 + $0x5] ss:$0 sm:$0xff] }
 0x2d2   :  { %v2641_v56 = vpop.f32.mrf.mxu0  ;;  %v2665_v57 = vpop.f32.mrf.mxu1 }
 0x2d3   :  { %v888_v58 = vadd.f32 %v2641_v56, %v2281_v54  ;;  %v1009_v59 = vadd.f32 %v2665_v57, %v2291_v55 }
 0x2d4   :  { %v882_v60 = vpop.f32.mrf.mxu0  ;;  %v1003_v61 = vpop.f32.mrf.mxu1 }
 0x2d5   :  { %922 = vst.msk [vmem:[#allocation3 + $0x8] sm:$0xff] %vm205_vm2, %v888_v58  ;;  %1043 = vst.msk [vmem:[#allocation4 + $0x8] sm:$0xff] %vm205_vm2, %v1009_v59  ;;  %v883_v62 = vadd.f32 %v2281_v54, %v882_v60  ;;  %v1004_v63 = vadd.f32 %v2291_v55, %v1003_v61 }
 0x2d6   :  { %v2644_v21 = vpop.f32.mrf.mxu0  ;;  %v2668_v22 = vpop.f32.mrf.mxu1 }
 0x2d7   :  { %921 = vst.msk [vmem:[#allocation3] sm:$0xff] %vm205_vm2, %v883_v62  ;;  %1042 = vst.msk [vmem:[#allocation4] sm:$0xff] %vm205_vm2, %v1004_v63  ;;  %v898_v23 = vadd.f32 %v2644_v21, %v2281_v54  ;;  %v1019_v24 = vadd.f32 %v2668_v22, %v2291_v55  ;;  %v3433_v62 = vmov 0.0  }
 0x2d8   :  { %v892_v25 = vpop.f32.mrf.mxu0  ;;  %v1013_v26 = vpop.f32.mrf.mxu1 }
 0x2d9   :  { %924 = vst.msk [vmem:[#allocation3 + $0x18] sm:$0xff] %vm205_vm2, %v898_v23  ;;  %1045 = vst.msk [vmem:[#allocation4 + $0x18] sm:$0xff] %vm205_vm2, %v1019_v24  ;;  %v893_v27 = vadd.f32 %v2281_v54, %v892_v25  ;;  %v1014_v28 = vadd.f32 %v2291_v55, %v1013_v26 }
 0x2db   :  { %923 = vst.msk [vmem:[#allocation3 + $0x10] sm:$0xff] %vm205_vm2, %v893_v27  ;;  %1044 = vst.msk [vmem:[#allocation4 + $0x10] sm:$0xff] %vm205_vm2, %v1014_v28  ;;  %v2647_v29 = vpop.f32.mrf.mxu0  ;;  %v2671_v30 = vpop.f32.mrf.mxu1 }
 0x2dc   :  { %v908_v31 = vadd.f32 %v2647_v29, %v2281_v54  ;;  %v1029_v32 = vadd.f32 %v2671_v30, %v2291_v55 }
 0x2dd   :  { %v902_v33 = vpop.f32.mrf.mxu0  ;;  %v1023_v34 = vpop.f32.mrf.mxu1 }
 0x2de   :  { %926 = vst.msk [vmem:[#allocation3 + $0x28] sm:$0xff] %vm205_vm2, %v908_v31  ;;  %1047 = vst.msk [vmem:[#allocation4 + $0x28] sm:$0xff] %vm205_vm2, %v1029_v32  ;;  %v903_v0 = vadd.f32 %v2281_v54, %v902_v33  ;;  %v1024_v1 = vadd.f32 %v2291_v55, %v1023_v34 }
 0x2e0   :  { %925 = vst.msk [vmem:[#allocation3 + $0x20] sm:$0xff] %vm205_vm2, %v903_v0  ;;  %1046 = vst.msk [vmem:[#allocation4 + $0x20] sm:$0xff] %vm205_vm2, %v1024_v1  ;;  %v2650_v2 = vpop.f32.mrf.mxu0  ;;  %v2674_v3 = vpop.f32.mrf.mxu1 }
 0x2e1   :  { %v918_v4 = vadd.f32 %v2650_v2, %v2281_v54  ;;  %v1039_v5 = vadd.f32 %v2674_v3, %v2291_v55 }
 0x2e2   :  { %v912_v6 = vpop.f32.mrf.mxu0  ;;  %v1033_v7 = vpop.f32.mrf.mxu1 }
 0x2e3   :  { %928 = vst.msk [vmem:[#allocation3 + $0x38] sm:$0xff] %vm205_vm2, %v918_v4  ;;  %1049 = vst.msk [vmem:[#allocation4 + $0x38] sm:$0xff] %vm205_vm2, %v1039_v5  ;;  %v913_v8 = vadd.f32 %v2281_v54, %v912_v6  ;;  %v1034_v9 = vadd.f32 %v2291_v55, %v1033_v7 }
 0x2e5   :  { %927 = vst.msk [vmem:[#allocation3 + $0x30] sm:$0xff] %vm205_vm2, %v913_v8  ;;  %1048 = vst.msk [vmem:[#allocation4 + $0x30] sm:$0xff] %vm205_vm2, %v1034_v9  ;;  %v2689_v11 = vpop.f32.mrf.mxu0  ;;  %v2695_v12 = vpop.f32.mrf.mxu1 }
 0x2e6   :  { %v1130_v13 = vadd.f32 %v2689_v11, %v2301_v10  ;;  %v1150_v14 = vadd.f32 %v2695_v12, %v2301_v10 }
 0x2e7   :  { %v1124_v15 = vpop.f32.mrf.mxu0  ;;  %v1144_v16 = vpop.f32.mrf.mxu1 }
 0x2e8   :  { %1164 = vst.msk [vmem:[#allocation5 + $0x8] sm:$0xff] %vm205_vm2, %v1130_v13  ;;  %1168 = vst.msk [vmem:[#allocation5 + $0x28] sm:$0xff] %vm205_vm2, %v1150_v14  ;;  %v1125_v17 = vadd.f32 %v2301_v10, %v1124_v15  ;;  %v1145_v18 = vadd.f32 %v2301_v10, %v1144_v16 }
 0x2e9   :  { %v2692_v54 = vpop.f32.mrf.mxu0  ;;  %v2698_v55 = vpop.f32.mrf.mxu1 }
 0x2ea   :  { %1163 = vst.msk [vmem:[#allocation5] sm:$0xff] %vm205_vm2, %v1125_v17  ;;  %1167 = vst.msk [vmem:[#allocation5 + $0x20] sm:$0xff] %vm205_vm2, %v1145_v18  ;;  %v1140_v56 = vadd.f32 %v2692_v54, %v2301_v10  ;;  %v1160_v57 = vadd.f32 %v2698_v55, %v2301_v10 }
 0x2eb   :  { %v1134_v58 = vpop.f32.mrf.mxu0  ;;  %v1154_v59 = vpop.f32.mrf.mxu1 }
 0x2ec   :  { %1166 = vst.msk [vmem:[#allocation5 + $0x18] sm:$0xff] %vm205_vm2, %v1140_v56  ;;  %1170 = vst.msk [vmem:[#allocation5 + $0x38] sm:$0xff] %vm205_vm2, %v1160_v57  ;;  %v1135_v60 = vadd.f32 %v2301_v10, %v1134_v58  ;;  %v1155_v61 = vadd.f32 %v2301_v10, %v1154_v59 }
 0x2ee   :  { %1165 = vst.msk [vmem:[#allocation5 + $0x10] sm:$0xff] %vm205_vm2, %v1135_v60  ;;  %1169 = vst.msk [vmem:[#allocation5 + $0x30] sm:$0xff] %vm205_vm2, %v1155_v61 }
 0x2ef LB: > { %v3073_v63 = vmov 0.0   ;;  %vm3074_vm4 = vmmov 0   ;;  %s3471_s2 = sshll.u32 %s3057_s8, 3  ;;  %s1203_s8 = sadd.s32 1, %s3057_s8   ;;  %s3057_s8 = sphi %s3435_s8, %s1203_s8   ;;  %v3053_v62 = vphi %v3433_v62, %v3665_v62  }
 0x2f0   : > { %2699 = vmatprep.subr.mxu0 %v3073_v63  ;;  %2711 = vmatprep.mubr.msk.f32.mxu0 %vm3074_vm4, %v3073_v63  ;;  %s1437_s0 = scalar_lea.vmem [#allocation3], %s3471_s2  ;;  %s1446_s3 = scalar_lea.vmem [#allocation4], %s3471_s2 }
 0x2f1   : > { %2700 = vmatpush3.msra.mxu0 %v3359_v38  ;;  %2714 = vmatprep.subr.mxu1 %v3073_v63  ;;  %v1438_v22 = vld [vmem:[%s1437_s0] sm:$0xff]  ;;  %s1455_s9 = scalar_lea.vmem [#allocation5], %s3471_s2  ;;  %s1464_s10 = scalar_lea.vmem [#allocation2], %s3471_s2 }
 0x2f2   : > { %2701 = vmatprep.subr.mxu0 %v3073_v63  ;;  %2715 = vmatpush3.msra.mxu1 %v3371_v44  ;;  %v1447_v28 = vld [vmem:[%s1446_s3] sm:$0xff]  ;;  %p1200_p11 = scmp.ge.s32.totalorder %s1203_s8, 8  }
 0x2f3   : > { %2702 = vmatpush3.msra.mxu0 %v3357_v37  ;;  %2716 = vmatprep.subr.mxu1 %v3073_v63  ;;  %v1482_v15 = vld [vmem:[#allocation6 + $0xb8] sm:$0xff] (%p1200_p11)  ;;  %v1489_v16 = vld [vmem:[#allocation6 + $0xe8] sm:$0xff] (%p1200_p11)  ;;  %v1481_v17 = vld [vmem:[#allocation6 + $0xb0] sm:$0xff] (%p1200_p11) }
 0x2f4   : > { %2703 = vmatprep.subr.mxu0 %v3073_v63  ;;  %2717 = vmatpush3.msra.mxu1 %v3369_v43  ;;  %v1488_v18 = vld [vmem:[#allocation6 + $0xe0] sm:$0xff] (%p1200_p11)  ;;  %v1480_v54 = vld [vmem:[#allocation6 + $0xa8] sm:$0xff] (%p1200_p11)  ;;  %v1487_v55 = vld [vmem:[#allocation6 + $0xd8] sm:$0xff] (%p1200_p11) }
 0x2f5   : > { %2704 = vmatpush3.msra.mxu0 %v3355_v36  ;;  %2718 = vmatprep.subr.mxu1 %v3073_v63  ;;  %v1456_v6 = vld [vmem:[%s1455_s9] sm:$0xff]  ;;  %v1477_v36 = vld [vmem:[#allocation6 + $0x90] sm:$0xff] (%p1200_p11)  ;;  %v1494_v44 = vld [vmem:[#allocation6 + $0x108] sm:$0xff] (%p1200_p11) }
 0x2f6   : > { %2705 = vmatprep.subr.mxu0 %v3073_v63  ;;  %2719 = vmatpush3.msra.mxu1 %v3367_v42  ;;  %v1479_v56 = vld [vmem:[#allocation6 + $0xa0] sm:$0xff] (%p1200_p11)  ;;  %v1495_v42 = vld [vmem:[#allocation6 + $0x110] sm:$0xff] (%p1200_p11)  ;;  %v3521_v58 = vld [vmem:[#allocation8 + $0x138] sm:$0xff] (%p1200_p11) }
 0x2f7   : > { %2706 = vmatpush3.msra.mxu0 %v3353_v35  ;;  %2720 = vmatprep.subr.mxu1 %v3073_v63  ;;  %v1485_v35 = vld [vmem:[#allocation6 + $0xc8] sm:$0xff] (%p1200_p11)  ;;  %v1484_v37 = vld [vmem:[#allocation6 + $0xc0] sm:$0xff] (%p1200_p11)  ;;  %v3519_v57 = vld [vmem:[#allocation8 + $0x130] sm:$0xff] (%p1200_p11) }
 0x2f8   : > { %2707 = vmatprep.subr.mxu0 %v3073_v63  ;;  %2721 = vmatpush3.msra.mxu1 %v3365_v41  ;;  %v3523_v59 = vld [vmem:[#allocation8 + $0x140] sm:$0xff] (%p1200_p11)  ;;  %v3525_v60 = vld [vmem:[#allocation8 + $0x148] sm:$0xff] (%p1200_p11)  ;;  %v3527_v61 = vld [vmem:[#allocation8 + $0x150] sm:$0xff] (%p1200_p11) }
 0x2f9   : > { %2708 = vmatpush3.msra.mxu0 %v3351_v20  ;;  %2722 = vmatprep.subr.mxu1 %v3073_v63  ;;  %v1478_v20 = vld [vmem:[#allocation6 + $0x98] sm:$0xff] (%p1200_p11) }
 0x2fa   : > { %2709 = vmatprep.subr.mxu0 %v3073_v63  ;;  %2723 = vmatpush3.msra.mxu1 %v3363_v40  ;;  %v1496_v40 = vld [vmem:[#allocation6 + $0x118] sm:$0xff] (%p1200_p11) }
 0x2fb   : > { %2710 = vmatpush3.msra.mxu0 %v3349_v19  ;;  %2724 = vmatprep.subr.mxu1 %v3073_v63  ;;  %v1486_v19 = vld [vmem:[#allocation6 + $0xd0] sm:$0xff] (%p1200_p11) }
 0x2fc   : > { %2712 = vmatmul.mubr.msk.f32.vlgmr.msra.gmra.mxu0 %vm205_vm2, %v3053_v62  ;;  %2725 = vmatpush3.msra.mxu1 %v3361_v39 }
 0x2fd   : > { %2726 = vmatprep.mubr.msk.f32.mxu1 %vm3074_vm4, %v3073_v63  ;;  %2729 = vmatprep.subr.mxu0 %v3073_v63 }
 0x2fe   : > { %2727 = vmatmul.mubr.msk.f32.vlgmr.msra.gmra.mxu1 %vm205_vm2, %v3053_v62  ;;  %2730 = vmatpush3.msra.mxu0 %v3383_v50 }
 0x2ff   : > { %2731 = vmatprep.subr.mxu0 %v3073_v63  ;;  %2741 = vmatprep.mubr.msk.f32.mxu0 %vm3074_vm4, %v3073_v63 }
 0x300   : > { %2732 = vmatpush3.msra.mxu0 %v3381_v49  ;;  %2768 = vmatprep.subr.mxu1 (%p1200_p11), %v1489_v16  ;;  %v1492_v49 = vld [vmem:[#allocation6 + $0xf8] sm:$0xff] (%p1200_p11) }
 0x301   : > { %2733 = vmatprep.subr.mxu0 %v3073_v63  ;;  %2769 = vmatpush3.msra.mxu1 (%p1200_p11), %v1489_v16 }
 0x302   : > { %2734 = vmatpush3.msra.mxu0 %v3379_v48  ;;  %2770 = vmatprep.subr.mxu1 (%p1200_p11), %v1488_v18 }
 0x303   : > { %2735 = vmatprep.subr.mxu0 %v3073_v63  ;;  %2771 = vmatpush3.msra.mxu1 (%p1200_p11), %v1488_v18 }
 0x304   : > { %2736 = vmatpush3.msra.mxu0 %v3377_v47  ;;  %2772 = vmatprep.subr.mxu1 (%p1200_p11), %v1487_v55  ;;  %v1493_v47 = vld [vmem:[#allocation6 + $0x100] sm:$0xff] (%p1200_p11) }
 0x305   : > { %2737 = vmatprep.subr.mxu0 %v3073_v63  ;;  %2773 = vmatpush3.msra.mxu1 (%p1200_p11), %v1487_v55 }
 0x306   : > { %2738 = vmatpush3.msra.mxu0 %v3375_v46  ;;  %2774 = vmatprep.subr.mxu1 (%p1200_p11), %v1486_v19 }
 0x307   : > { %2739 = vmatprep.subr.mxu0 %v3073_v63  ;;  %2775 = vmatpush3.msra.mxu1 (%p1200_p11), %v1486_v19  ;;  %v3531_v63 = vld [vmem:[#allocation8 + $0x160] sm:$0xff] (%p1200_p11) }
 0x308   : > { %2740 = vmatpush3.msra.mxu0 %v3373_v45  ;;  %2776 = vmatprep.subr.mxu1 (%p1200_p11), %v1485_v35 }
 0x309   : > { %2742 = vmatmul.mubr.msk.f32.vlgmr.msra.gmra.mxu0 %vm205_vm2, %v3053_v62  ;;  %2744 = vmatprep.subr.mxu0 (%p1200_p11), %v1482_v15 }
 0x30a   :  { %2745 = vmatpush3.msra.mxu0 (%p1200_p11), %v1482_v15  ;;  %2777 = vmatpush3.msra.mxu1 (%p1200_p11), %v1485_v35 }
 0x30b   :  { %2746 = vmatprep.subr.mxu0 (%p1200_p11), %v1481_v17  ;;  %2778 = vmatprep.subr.mxu1 (%p1200_p11), %v1484_v37 }
 0x30c   :  { %2747 = vmatpush3.msra.mxu0 (%p1200_p11), %v1481_v17  ;;  %2779 = vmatpush3.msra.mxu1 (%p1200_p11), %v1484_v37 }
 0x30d   :  { %2748 = vmatprep.subr.mxu0 (%p1200_p11), %v1480_v54  ;;  %2875 = vmatprep.subr.mxu1 (%p1200_p11), %v1496_v40 }
 0x30e   :  { %2749 = vmatpush3.msra.mxu0 (%p1200_p11), %v1480_v54 }
 0x30f   :  { %2750 = vmatprep.subr.mxu0 (%p1200_p11), %v1479_v56 }
 0x310   :  { %2751 = vmatpush3.msra.mxu0 (%p1200_p11), %v1479_v56 }
 0x311   :  { %2752 = vmatprep.subr.mxu0 (%p1200_p11), %v1478_v20 }
 0x312   :  { %2753 = vmatpush3.msra.mxu0 (%p1200_p11), %v1478_v20 }
 0x313   :  { %2754 = vmatprep.subr.mxu0 (%p1200_p11), %v1477_v36 }
 0x314   :  { %2755 = vmatpush3.msra.mxu0 (%p1200_p11), %v1477_v36 }
 0x315   :  { %2792 = vmatprep.subr.mxu0 (%p1200_p11), %v1496_v40 }
 0x3bc   : > { %v1281_v21 = vpop.f32.mrf.mxu0 }
 0x3bd   : > { %v1282_v23 = vadd.f32 %v3388_v51, %v1281_v21  ;;  %v1491_v51 = vld [vmem:[#allocation6 + $0xf0] sm:$0xff] (%p1200_p11)  ;;  %v3533_v21 = vld [vmem:[#allocation8 + $0x168] sm:$0xff] (%p1200_p11) }
 0x3be   : > { %v2713_v24 = vpop.f32.mrf.mxu0  ;;  %v1357_v25 = vpop.f32.mrf.mxu1 }
 0x3bf   : > { %v1439_v26 = vadd.f32 %v1438_v22, %v1282_v23  ;;  %v1358_v27 = vadd.f32 %v3393_v52, %v1357_v25  ;;  %v3515_v52 = vld [vmem:[#allocation8 + $0x120] sm:$0xff] (%p1200_p11)  ;;  %v3535_v22 = vld [vmem:[#allocation8 + $0x170] sm:$0xff] (%p1200_p11)  ;;  %v3537_v23 = vld [vmem:[#allocation8 + $0x178] sm:$0xff] (%p1200_p11) }
 0x3c0   : > { %v2728_v29 = vpop.f32.mrf.mxu1  ;;  %v3539_v24 = vld [vmem:[#allocation8 + $0x180] sm:$0xff] (%p1200_p11)  ;;  %v3541_v25 = vld [vmem:[#allocation8 + $0x188] sm:$0xff] (%p1200_p11) }
 0x3c1   : > { %v2320_v30 = vmul.f32 -1.442695, %v1439_v26  ;;  %v1448_v31 = vadd.f32 %v1447_v28, %v1358_v27  ;;  %v3543_v26 = vld [vmem:[#allocation8 + $0x190] sm:$0xff] (%p1200_p11)  ;;  %v3545_v27 = vld [vmem:[#allocation8 + $0x198] sm:$0xff] (%p1200_p11)  ;;  %v3547_v28 = vld [vmem:[#allocation8 + $0x1a0] sm:$0xff] (%p1200_p11) }
 0x3c2   :  { %v3549_v29 = vld [vmem:[#allocation8 + $0x1a8] sm:$0xff] (%p1200_p11) }
 0x3c3   : > { %2955 = vpow2.f32 %v2320_v30  ;;  %v2321_v32 = vmul.f32 -1.442695, %v1448_v31  ;;  %v3554_v30 = vld [vmem:[%s3662_s5 + $0x6] ss:$0 sm:$0xff] (%p1200_p11)  ;;  %v3559_v31 = vld [vmem:[%s3662_s5 + $0x7] ss:$0 sm:$0xff] (%p1200_p11) }
 0x3c5   : > { %2957 = vpow2.f32 %v2321_v32  ;;  %v3564_v32 = vld [vmem:[%s3662_s5 + $0x8] ss:$0 sm:$0xff] (%p1200_p11) }
 0x3c9   : > { %v1433_v33 = vpop.f32.mrf.mxu0 }
 0x3ca   : > { %v1434_v4 = vadd.f32 %v3398_v53, %v1433_v33  ;;  %v3517_v53 = vld [vmem:[#allocation8 + $0x128] sm:$0xff] (%p1200_p11)  ;;  %v2324_v33 = vld [vmem:[%s3661_s4 + $0x6] ss:$0 sm:$0xff] (%p1200_p11) }
 0x3cb   : > { %v2743_v34 = vpop.f32.mrf.mxu0 }
 0x3cc   :  { %v2334_v34 = vld [vmem:[%s3661_s4 + $0x7] ss:$0 sm:$0xff] (%p1200_p11) }
 0x3d0   : > { %v2956_v0 = vpop.eup %2955 }
 0x3d1   : > { %v1443_v1 = vadd.f32 1.0, %v2956_v0 }
 0x3d2   : > { %v2958_v2 = vpop.eup %2957 }
 0x3d3   : > { %2959 = vrcp.f32 %v1443_v1  ;;  %v1452_v3 = vadd.f32 1.0, %v2958_v2 }
 0x3d5   : > { %2961 = vrcp.f32 %v1452_v3 }
 0x3e0   : > { %v2960_v5 = vpop.eup %2959 }
 0x3e1   : > { %v1457_v7 = vmul.f32 %v2960_v5, %v1434_v4 }
 0x3e2   : > { %v2962_v9 = vpop.eup %2961 }
 0x3e3   : > { %v1458_v8 = vadd.f32 %v1457_v7, %v1456_v6  ;;  %v1460_v10 = vsub.f32 1.0, %v2962_v9  ;;  %v1462_v12 = vmul.f32 %v3053_v62, %v2962_v9 }
 0x3e5   : > { %2963 = vtanh.f32 %v1458_v8 }
 0x3f2   : > { %v2964_v11 = vpop.eup %2963 }
 0x3f3   : > { %v1461_v13 = vmul.f32 %v2964_v11, %v1460_v10  ;;  %1202 = sbr.rel (!%p1200_p11) target bundleno = 751 (0x2ef), region = 129 }
 0x3f5   : > { %v1463_v14 = vadd.f32 %v1462_v12, %v1461_v13  }
 0x3f7   : > { %1465 = vst.msk [vmem:[%s1464_s10] sm:$0xff] %vm205_vm2, %v1463_v14  ;;  %v3665_v62 = vmov %v1463_v14  ;;  %2322 = vst.msk [vmem:[%s3663_s6 + $0x8] sm:$0xff] (%p1200_p11), %vm205_vm2, %v1463_v14 }
 0x3f8   :  { %v3529_v62 = vld [vmem:[#allocation8 + $0x158] sm:$0xff] }
 0x3fe   :  { %v1468_v38 = vld [vmem:[#allocation2] sm:$0xff]  ;;  %v1469_v39 = vld [vmem:[#allocation2 + $0x8] sm:$0xff]  ;;  %v1470_v41 = vld [vmem:[#allocation2 + $0x10] sm:$0xff] }
 0x3ff   :  { %2756 = vmatprep.mubr.msk.f32.mxu0 %vm205_vm2, %v1468_v38  ;;  %2780 = vmatprep.mubr.msk.f32.mxu1 %vm205_vm2, %v1468_v38  ;;  %v1471_v43 = vld [vmem:[#allocation2 + $0x18] sm:$0xff]  ;;  %v1472_v45 = vld [vmem:[#allocation2 + $0x20] sm:$0xff]  ;;  %v1473_v46 = vld [vmem:[#allocation2 + $0x28] sm:$0xff] }
 0x400   :  { %2757 = vmatmul.mubr.msk.f32.vlgmr.msra.gmra.mxu0 %vm205_vm2, %v1469_v39  ;;  %2781 = vmatmul.mubr.msk.f32.vlgmr.msra.gmra.mxu1 %vm205_vm2, %v1469_v39  ;;  %v1474_v48 = vld [vmem:[#allocation2 + $0x30] sm:$0xff]  ;;  %v1475_v50 = vld [vmem:[#allocation2 + $0x38] sm:$0xff] }
 0x401   :  { %2793 = vmatpush3.msra.mxu0 %v1496_v40  ;;  %2881 = vmatpush3.msra.mxu1 %v1496_v40 }
 0x402   :  { %2759 = vmatprep.mubr.msk.f32.mxu0 %vm205_vm2, %v1470_v41  ;;  %2783 = vmatprep.mubr.msk.f32.mxu1 %vm205_vm2, %v1470_v41 }
 0x403   :  { %2794 = vmatprep.subr.mxu0 %v1495_v42  ;;  %2876 = vmatprep.subr.mxu1 %v1495_v42 }
 0x404   :  { %2760 = vmatmul.mubr.msk.f32.gmra.mxu0 %vm205_vm2, %v1471_v43  ;;  %2784 = vmatmul.mubr.msk.f32.gmra.mxu1 %vm205_vm2, %v1471_v43 }
 0x405   :  { %2795 = vmatpush3.msra.mxu0 %v1495_v42  ;;  %2882 = vmatpush3.msra.mxu1 %v1495_v42 }
 0x406   :  { %2796 = vmatprep.subr.mxu0 %v1494_v44  ;;  %2877 = vmatprep.subr.mxu1 %v1494_v44 }
 0x407   :  { %2762 = vmatprep.mubr.msk.f32.mxu0 %vm205_vm2, %v1472_v45  ;;  %2786 = vmatprep.mubr.msk.f32.mxu1 %vm205_vm2, %v1472_v45 }
 0x408   :  { %2797 = vmatpush3.msra.mxu0 %v1494_v44  ;;  %2883 = vmatpush3.msra.mxu1 %v1494_v44 }
 0x409   :  { %2763 = vmatmul.mubr.msk.f32.gmra.mxu0 %vm205_vm2, %v1473_v46  ;;  %2787 = vmatmul.mubr.msk.f32.gmra.mxu1 %vm205_vm2, %v1473_v46 }
 0x40a   :  { %2798 = vmatprep.subr.mxu0 %v1493_v47  ;;  %2878 = vmatprep.subr.mxu1 %v1493_v47 }
 0x40b   :  { %2799 = vmatpush3.msra.mxu0 %v1493_v47  ;;  %2884 = vmatpush3.msra.mxu1 %v1493_v47 }
 0x40c   :  { %2765 = vmatprep.mubr.msk.f32.mxu0 %vm205_vm2, %v1474_v48  ;;  %2789 = vmatprep.mubr.msk.f32.mxu1 %vm205_vm2, %v1474_v48 }
 0x40d   :  { %2800 = vmatprep.subr.mxu0 %v1492_v49  ;;  %2879 = vmatprep.subr.mxu1 %v1492_v49 }
 0x40e   :  { %2766 = vmatmul.mubr.msk.f32.gmra.mxu0 %vm205_vm2, %v1475_v50  ;;  %2790 = vmatmul.mubr.msk.f32.gmra.mxu1 %vm205_vm2, %v1475_v50 }
 0x40f   :  { %2801 = vmatpush3.msra.mxu0 %v1492_v49  ;;  %2885 = vmatpush3.msra.mxu1 %v1492_v49 }
 0x410   :  { %2802 = vmatprep.subr.mxu0 %v1491_v51  ;;  %2880 = vmatprep.subr.mxu1 %v1491_v51 }
 0x411   :  { %2803 = vmatpush3.msra.mxu0 %v1491_v51  ;;  %2886 = vmatpush3.msra.mxu1 %v1491_v51 }
 0x412   :  { %2804 = vmatprep.mubr.msk.f32.mxu0 %vm205_vm2, %v1468_v38  ;;  %2810 = vmatprep.mubr.msk.f32.mxu1 %vm205_vm2, %v1472_v45 }
 0x413   :  { %2805 = vmatmul.mubr.msk.f32.vlgmr.msra.gmra.mxu0 %vm205_vm2, %v1469_v39  ;;  %2811 = vmatmul.mubr.msk.f32.vlgmr.msra.gmra.mxu1 %vm205_vm2, %v1473_v46 }
 0x414   :  { %2807 = vmatprep.mubr.msk.f32.mxu0 %vm205_vm2, %v1470_v41  ;;  %2813 = vmatprep.mubr.msk.f32.mxu1 %vm205_vm2, %v1474_v48 }
 0x417   :  { %2808 = vmatmul.mubr.msk.f32.gmra.mxu0 %vm205_vm2, %v1471_v43  ;;  %2814 = vmatmul.mubr.msk.f32.gmra.mxu1 %vm205_vm2, %v1475_v50  ;;  %v2344_v43 = vld [vmem:[%s3661_s4 + $0x8] ss:$0 sm:$0xff]  ;;  %s3601_s4 = smov 0  }
 0x4c0   :  { %v2758_v0 = vpop.f32.mrf.mxu0  ;;  %v2782_v1 = vpop.f32.mrf.mxu1 }
 0x4c1   :  { %v1601_v2 = vadd.f32 %v2758_v0, %v2324_v33  ;;  %v1722_v3 = vadd.f32 %v2782_v1, %v2334_v34 }
 0x4c2   :  { %v1595_v4 = vpop.f32.mrf.mxu0  ;;  %v1716_v5 = vpop.f32.mrf.mxu1 }
 0x4c3   :  { %1635 = vst.msk [vmem:[#allocation3 + $0x8] sm:$0xff] %vm205_vm2, %v1601_v2  ;;  %1756 = vst.msk [vmem:[#allocation4 + $0x8] sm:$0xff] %vm205_vm2, %v1722_v3  ;;  %v1596_v6 = vadd.f32 %v2324_v33, %v1595_v4  ;;  %v1717_v7 = vadd.f32 %v2334_v34, %v1716_v5 }
 0x4c4   :  { %v2761_v8 = vpop.f32.mrf.mxu0  ;;  %v2785_v9 = vpop.f32.mrf.mxu1 }
 0x4c5   :  { %1634 = vst.msk [vmem:[#allocation3] sm:$0xff] %vm205_vm2, %v1596_v6  ;;  %1755 = vst.msk [vmem:[#allocation4] sm:$0xff] %vm205_vm2, %v1717_v7  ;;  %v1611_v10 = vadd.f32 %v2761_v8, %v2324_v33  ;;  %v1732_v11 = vadd.f32 %v2785_v9, %v2334_v34  ;;  %v3599_v6 = vmov 0.0  }
 0x4c6   :  { %v1605_v12 = vpop.f32.mrf.mxu0  ;;  %v1726_v13 = vpop.f32.mrf.mxu1 }
 0x4c7   :  { %1637 = vst.msk [vmem:[#allocation3 + $0x18] sm:$0xff] %vm205_vm2, %v1611_v10  ;;  %1758 = vst.msk [vmem:[#allocation4 + $0x18] sm:$0xff] %vm205_vm2, %v1732_v11  ;;  %v1606_v14 = vadd.f32 %v2324_v33, %v1605_v12  ;;  %v1727_v15 = vadd.f32 %v2334_v34, %v1726_v13 }
 0x4c9   :  { %1636 = vst.msk [vmem:[#allocation3 + $0x10] sm:$0xff] %vm205_vm2, %v1606_v14  ;;  %1757 = vst.msk [vmem:[#allocation4 + $0x10] sm:$0xff] %vm205_vm2, %v1727_v15  ;;  %v2764_v16 = vpop.f32.mrf.mxu0  ;;  %v2788_v17 = vpop.f32.mrf.mxu1 }
 0x4ca   :  { %v1621_v18 = vadd.f32 %v2764_v16, %v2324_v33  ;;  %v1742_v54 = vadd.f32 %v2788_v17, %v2334_v34 }
 0x4cb   :  { %v1615_v55 = vpop.f32.mrf.mxu0  ;;  %v1736_v56 = vpop.f32.mrf.mxu1 }
 0x4cc   :  { %1639 = vst.msk [vmem:[#allocation3 + $0x28] sm:$0xff] %vm205_vm2, %v1621_v18  ;;  %1760 = vst.msk [vmem:[#allocation4 + $0x28] sm:$0xff] %vm205_vm2, %v1742_v54  ;;  %v1616_v19 = vadd.f32 %v2324_v33, %v1615_v55  ;;  %v1737_v20 = vadd.f32 %v2334_v34, %v1736_v56 }
 0x4ce   :  { %1638 = vst.msk [vmem:[#allocation3 + $0x20] sm:$0xff] %vm205_vm2, %v1616_v19  ;;  %1759 = vst.msk [vmem:[#allocation4 + $0x20] sm:$0xff] %vm205_vm2, %v1737_v20  ;;  %v2767_v35 = vpop.f32.mrf.mxu0  ;;  %v2791_v36 = vpop.f32.mrf.mxu1 }
 0x4cf   :  { %v1631_v37 = vadd.f32 %v2767_v35, %v2324_v33  ;;  %v1752_v38 = vadd.f32 %v2791_v36, %v2334_v34 }
 0x4d0   :  { %v1625_v39 = vpop.f32.mrf.mxu0  ;;  %v1746_v40 = vpop.f32.mrf.mxu1 }
 0x4d1   :  { %1641 = vst.msk [vmem:[#allocation3 + $0x38] sm:$0xff] %vm205_vm2, %v1631_v37  ;;  %1762 = vst.msk [vmem:[#allocation4 + $0x38] sm:$0xff] %vm205_vm2, %v1752_v38  ;;  %v1626_v41 = vadd.f32 %v2324_v33, %v1625_v39  ;;  %v1747_v42 = vadd.f32 %v2334_v34, %v1746_v40 }
 0x4d3   :  { %1640 = vst.msk [vmem:[#allocation3 + $0x30] sm:$0xff] %vm205_vm2, %v1626_v41  ;;  %1761 = vst.msk [vmem:[#allocation4 + $0x30] sm:$0xff] %vm205_vm2, %v1747_v42  ;;  %v2806_v44 = vpop.f32.mrf.mxu0  ;;  %v2812_v45 = vpop.f32.mrf.mxu1 }
 0x4d4   :  { %v1843_v46 = vadd.f32 %v2806_v44, %v2344_v43  ;;  %v1863_v47 = vadd.f32 %v2812_v45, %v2344_v43 }
 0x4d5   :  { %v1837_v48 = vpop.f32.mrf.mxu0  ;;  %v1857_v49 = vpop.f32.mrf.mxu1 }
 0x4d6   :  { %1877 = vst.msk [vmem:[#allocation5 + $0x8] sm:$0xff] %vm205_vm2, %v1843_v46  ;;  %1881 = vst.msk [vmem:[#allocation5 + $0x28] sm:$0xff] %vm205_vm2, %v1863_v47  ;;  %v1838_v50 = vadd.f32 %v2344_v43, %v1837_v48  ;;  %v1858_v51 = vadd.f32 %v2344_v43, %v1857_v49 }
 0x4d7   :  { %v2809_v33 = vpop.f32.mrf.mxu0  ;;  %v2815_v34 = vpop.f32.mrf.mxu1 }
 0x4d8   :  { %1876 = vst.msk [vmem:[#allocation5] sm:$0xff] %vm205_vm2, %v1838_v50  ;;  %1880 = vst.msk [vmem:[#allocation5 + $0x20] sm:$0xff] %vm205_vm2, %v1858_v51  ;;  %v1853_v0 = vadd.f32 %v2809_v33, %v2344_v43  ;;  %v1873_v1 = vadd.f32 %v2815_v34, %v2344_v43 }
 0x4d9   :  { %v1847_v2 = vpop.f32.mrf.mxu0  ;;  %v1867_v3 = vpop.f32.mrf.mxu1 }
 0x4da   :  { %1879 = vst.msk [vmem:[#allocation5 + $0x18] sm:$0xff] %vm205_vm2, %v1853_v0  ;;  %1883 = vst.msk [vmem:[#allocation5 + $0x38] sm:$0xff] %vm205_vm2, %v1873_v1  ;;  %v1848_v4 = vadd.f32 %v2344_v43, %v1847_v2  ;;  %v1868_v5 = vadd.f32 %v2344_v43, %v1867_v3 }
 0x4dc   :  { %1878 = vst.msk [vmem:[#allocation5 + $0x10] sm:$0xff] %vm205_vm2, %v1848_v4  ;;  %1882 = vst.msk [vmem:[#allocation5 + $0x30] sm:$0xff] %vm205_vm2, %v1868_v5 }
 0x4dd LB: > { %v3075_v7 = vmov 0.0   ;;  %vm3076_vm5 = vmmov 0   ;;  %s3637_s24 = sshll.u32 %s3065_s4, 3  ;;  %s1916_s4 = sadd.s32 1, %s3065_s4   ;;  %s3065_s4 = sphi %s3601_s4, %s1916_s4   ;;  %v3061_v6 = vphi %v3599_v6, %v3666_v6  }
 0x4de   : > { %2816 = vmatprep.subr.mxu0 %v3075_v7  ;;  %2828 = vmatprep.mubr.msk.f32.mxu0 %vm3076_vm5, %v3075_v7  ;;  %s2150_s25 = scalar_lea.vmem [#allocation3], %s3637_s24  ;;  %s2159_s26 = scalar_lea.vmem [#allocation4], %s3637_s24 }
 0x4df   : > { %2817 = vmatpush3.msra.mxu0 %v3525_v60  ;;  %2831 = vmatprep.subr.mxu1 %v3075_v7  ;;  %v2151_v9 = vld [vmem:[%s2150_s25] sm:$0xff]  ;;  %s2168_s27 = scalar_lea.vmem [#allocation5], %s3637_s24  ;;  %s2177_s28 = scalar_lea.vmem [#allocation2], %s3637_s24 }
 0x4e0   : > { %2818 = vmatprep.subr.mxu0 %v3075_v7  ;;  %2832 = vmatpush3.msra.mxu1 %v3537_v23  ;;  %v2160_v15 = vld [vmem:[%s2159_s26] sm:$0xff]  ;;  %p1913_p12 = scmp.ge.s32.totalorder %s1916_s4, 8  }
 0x4e1   : > { %2819 = vmatpush3.msra.mxu0 %v3523_v59  ;;  %2833 = vmatprep.subr.mxu1 %v3075_v7 }
 0x4e2   : > { %2820 = vmatprep.subr.mxu0 %v3075_v7  ;;  %2834 = vmatpush3.msra.mxu1 %v3535_v22 }
 0x4e3   : > { %2821 = vmatpush3.msra.mxu0 %v3521_v58  ;;  %2835 = vmatprep.subr.mxu1 %v3075_v7  ;;  %v2169_v39 = vld [vmem:[%s2168_s27] sm:$0xff] }
 0x4e4   : > { %2822 = vmatprep.subr.mxu0 %v3075_v7  ;;  %2836 = vmatpush3.msra.mxu1 %v3533_v21 }
 0x4e5   : > { %2823 = vmatpush3.msra.mxu0 %v3519_v57  ;;  %2837 = vmatprep.subr.mxu1 %v3075_v7 }
 0x4e6   : > { %2824 = vmatprep.subr.mxu0 %v3075_v7  ;;  %2838 = vmatpush3.msra.mxu1 %v3531_v63 }
 0x4e7   : > { %2825 = vmatpush3.msra.mxu0 %v3517_v53  ;;  %2839 = vmatprep.subr.mxu1 %v3075_v7 }
 0x4e8   : > { %2826 = vmatprep.subr.mxu0 %v3075_v7  ;;  %2840 = vmatpush3.msra.mxu1 %v3529_v62 }
 0x4e9   : > { %2827 = vmatpush3.msra.mxu0 %v3515_v52  ;;  %2841 = vmatprep.subr.mxu1 %v3075_v7 }
 0x4ea   : > { %2829 = vmatmul.mubr.msk.f32.vlgmr.msra.gmra.mxu0 %vm205_vm2, %v3061_v6  ;;  %2842 = vmatpush3.msra.mxu1 %v3527_v61 }
 0x4eb   : > { %2843 = vmatprep.mubr.msk.f32.mxu1 %vm3076_vm5, %v3075_v7  ;;  %2846 = vmatprep.subr.mxu0 %v3075_v7 }
 0x4ec   : > { %2844 = vmatmul.mubr.msk.f32.vlgmr.msra.gmra.mxu1 %vm205_vm2, %v3061_v6  ;;  %2847 = vmatpush3.msra.mxu0 %v3549_v29 }
 0x4ed   : > { %2848 = vmatprep.subr.mxu0 %v3075_v7  ;;  %2858 = vmatprep.mubr.msk.f32.mxu0 %vm3076_vm5, %v3075_v7 }
 0x4ee   : > { %2849 = vmatpush3.msra.mxu0 %v3547_v28 }
 0x4ef   : > { %2850 = vmatprep.subr.mxu0 %v3075_v7 }
 0x4f0   : > { %2851 = vmatpush3.msra.mxu0 %v3545_v27 }
 0x4f1   : > { %2852 = vmatprep.subr.mxu0 %v3075_v7 }
 0x4f2   : > { %2853 = vmatpush3.msra.mxu0 %v3543_v26 }
 0x4f3   : > { %2854 = vmatprep.subr.mxu0 %v3075_v7 }
 0x4f4   : > { %2855 = vmatpush3.msra.mxu0 %v3541_v25 }
 0x4f5   : > { %2856 = vmatprep.subr.mxu0 %v3075_v7 }
 0x4f6   : > { %2857 = vmatpush3.msra.mxu0 %v3539_v24 }
 0x4f7   : > { %2859 = vmatmul.mubr.msk.f32.vlgmr.msra.gmra.mxu0 %vm205_vm2, %v3061_v6 }
 0x5aa   : > { %v1994_v8 = vpop.f32.mrf.mxu0 }
 0x5ab   : > { %v1995_v10 = vadd.f32 %v3554_v30, %v1994_v8 }
 0x5ac   : > { %v2830_v11 = vpop.f32.mrf.mxu0  ;;  %v2070_v12 = vpop.f32.mrf.mxu1 }
 0x5ad   : > { %v2152_v13 = vadd.f32 %v2151_v9, %v1995_v10  ;;  %v2071_v14 = vadd.f32 %v3559_v31, %v2070_v12 }
 0x5ae   : > { %v2845_v16 = vpop.f32.mrf.mxu1 }
 0x5af   : > { %v2363_v17 = vmul.f32 -1.442695, %v2152_v13  ;;  %v2161_v18 = vadd.f32 %v2160_v15, %v2071_v14 }
 0x5b1   : > { %2965 = vpow2.f32 %v2363_v17  ;;  %v2364_v54 = vmul.f32 -1.442695, %v2161_v18 }
 0x5b3   : > { %2967 = vpow2.f32 %v2364_v54 }
 0x5b7   : > { %v2146_v55 = vpop.f32.mrf.mxu0 }
 0x5b8   : > { %v2147_v37 = vadd.f32 %v3564_v32, %v2146_v55 }
 0x5b9   : > { %v2860_v56 = vpop.f32.mrf.mxu0 }
 0x5be   : > { %v2966_v19 = vpop.eup %2965 }
 0x5bf   : > { %v2156_v20 = vadd.f32 1.0, %v2966_v19 }
 0x5c0   : > { %v2968_v35 = vpop.eup %2967 }
 0x5c1   : > { %2969 = vrcp.f32 %v2156_v20  ;;  %v2165_v36 = vadd.f32 1.0, %v2968_v35 }
 0x5c3   : > { %2971 = vrcp.f32 %v2165_v36 }
 0x5ce   : > { %v2970_v38 = vpop.eup %2969 }
 0x5cf   : > { %v2170_v40 = vmul.f32 %v2970_v38, %v2147_v37 }
 0x5d0   : > { %v2972_v42 = vpop.eup %2971 }
 0x5d1   : > { %v2171_v41 = vadd.f32 %v2170_v40, %v2169_v39  ;;  %v2173_v43 = vsub.f32 1.0, %v2972_v42  ;;  %v2175_v45 = vmul.f32 %v3061_v6, %v2972_v42 }
 0x5d3   : > { %2973 = vtanh.f32 %v2171_v41 }
 0x5e0   : > { %v2974_v44 = vpop.eup %2973 }
 0x5e1   : > { %v2174_v46 = vmul.f32 %v2974_v44, %v2173_v43  ;;  %1915 = sbr.rel (!%p1913_p12) target bundleno = 1245 (0x4dd), region = 140 }
 0x5e3   : > { %v2176_v47 = vadd.f32 %v2175_v45, %v2174_v46  }
 0x5e5   : > { %2178 = vst.msk [vmem:[%s2177_s28] sm:$0xff] %vm205_vm2, %v2176_v47  ;;  %v3666_v6 = vmov %v2176_v47  ;;  %2365 = vst.msk [vmem:[%s3663_s6 + $0x10] sm:$0xff] (%p1913_p12), %vm205_vm2, %v2176_v47 }
 0x5e6   :  { %2185 = vsyncpa [#allocation7], 1 }
 0x5e7   :  { %2186 = vsyncpa [#allocation9], 1 }

</bundles_post_ra>
